<compile_context>
chip_gen: v7x
topology: tpu7x:2x2x1
jax: 0.10.0
libtpu: 0.0.40
codegen_flags: <defaults>
</compile_context>

<pallas_src>
import jax
import jax.numpy as jnp
from jax.experimental import pallas as pl
from jax.experimental.pallas import tpu as pltpu

H1 = 1600    # fc1 output width  (as in the PyTorch module)
H2 = 200     # fc2 output width
F_DIM = 128  # per-input feature dim -> Relation1 h_dim = 2 * F_DIM = 256


# ----------------------------------------------------------------------------
# Fused pairwise-relation kernel: one x1 row-tile vs all x2 rows.
# ----------------------------------------------------------------------------
def _relation1_kernel(x1_ref, x2_ref, w1a_ref, w1b_ref, b1_ref,
                      w2_ref, b2_ref, w3_ref, b3_ref, o_ref):
    tn = x1_ref.shape[0]          # x1 rows in this tile (multiple of 8)
    m = x2_ref.shape[0]           # x2 rows (padded to a multiple of 8)

    # fc1, split over the two halves of the (virtual) concatenation.
    # bf16 MXU operands, f32 accumulation.
    a1 = jnp.dot(x1_ref[...].astype(jnp.bfloat16), w1a_ref[...],
                 preferred_element_type=jnp.float32)                # (tn, H1)
    a2 = jnp.dot(x2_ref[...].astype(jnp.bfloat16), w1b_ref[...],
                 preferred_element_type=jnp.float32) + b1_ref[...]  # (m, H1)

    # Pairwise hidden + ReLU (f32, VPU).  m % 8 == 0 and H1 % 128 == 0 keep the
    # flatten below a pure re-indexing (no VMEM relayout copy).
    h = jnp.maximum(a1[:, None, :] + a2[None, :, :], 0.0)           # (tn, m, H1)
    h = h.reshape(tn * m, H1)                                       # (tn*m, H1)

    # fc2 + ReLU: one (tn*m, 1600) x (1600, 200) MXU matmul, bf16 in / f32 acc.
    h2 = jnp.dot(h.astype(jnp.bfloat16), w2_ref[...],
                 preferred_element_type=jnp.float32) + b2_ref[...]
    h2 = jnp.maximum(h2, 0.0)                                       # (tn*m, H2)

    # fc3 (200 -> 1) as VPU multiply + XLU last-axis reduce on the 3-D view:
    # avoids the N=1 MXU mat-vec and yields the (tn, m) tile directly.
    prod = h2 * w3_ref[...]                                         # (tn*m, H2)
    o = jnp.sum(prod.reshape(tn, m, H2), axis=-1)                   # (tn, m)
    o_ref[...] = o + b3_ref[...]


def _round_up(x, k):
    return (x + k - 1) // k * k


def relation1_forward(x1, x2, params, *, tile_n=None,
                      hidden_vmem_budget=12 * 2**20):
    """Relation1 forward.  x1: (n, F), x2: (m, F)  ->  (n, m) float32."""
    w1a, w1b, b1, w2, b2, w3, b3 = params
    n, f = x1.shape
    m, f2 = x2.shape
    assert f == f2
    assert w1a.shape == (f, H1) and w1b.shape == (f, H1)

    # Pad m to a sublane multiple (relayout-free flatten inside the kernel).
    m_pad = _round_up(max(m, 8), 8)

    if tile_n is None:
        # Largest row tile whose f32 pairwise hidden (tile_n*m_pad*H1*4 B) stays
        # within budget.  At GCR episode sizes this collapses the grid to ONE
        # step: a2 computed once, 256-row MXU fill for fc2, no per-step
        # pipeline overhead.
        cap = max(8, (hidden_vmem_budget // (m_pad * H1 * 4)) // 8 * 8)
        tile_n = min(_round_up(max(n, 8), 8), cap)
    n_pad = _round_up(max(n, tile_n), tile_n)

    x1p = jnp.pad(x1.astype(jnp.float32), ((0, n_pad - n), (0, 0)))
    x2p = jnp.pad(x2.astype(jnp.float32), ((0, m_pad - m), (0, 0)))

    # bf16 MXU operands: halves the dominant weight DMA; accumulation is f32
    # in-kernel.  Biases / fc3 stay f32 (VPU path).
    w1a_b = w1a.astype(jnp.bfloat16)
    w1b_b = w1b.astype(jnp.bfloat16)
    w2_b = w2.astype(jnp.bfloat16)
    b1f = b1.astype(jnp.float32)
    b2f = b2.astype(jnp.float32)
    w3f = w3.astype(jnp.float32)
    b3f = b3.astype(jnp.float32)

    num_steps = n_pad // tile_n
    grid = (num_steps,)

    # Cross-TC splitting (v7x) only pays once per-core compute dwarfs the
    # duplicated per-core weight DMA; keep small grids on one core.
    semantics = ("parallel",) if num_steps >= 4 else ("arbitrary",)

    flops = (2 * n_pad * f * H1            # fc1, x1 half
             + 2 * m_pad * f * H1          # fc1, x2 half (computed once)
             + n_pad * m_pad * H1          # pairwise add
             + 2 * n_pad * m_pad * H1 * H2 # fc2
             + 2 * n_pad * m_pad * H2)     # fc3
    bytes_accessed = (x1p.size * 4 + x2p.size * 4
                      + (w1a_b.size + w1b_b.size + w2_b.size) * 2
                      + (b1f.size + b2f.size + w3f.size + b3f.size) * 4
                      + n_pad * m_pad * 4)
    cost = pl.CostEstimate(flops=flops, transcendentals=0,
                           bytes_accessed=bytes_accessed)

    out = pl.pallas_call(
        _relation1_kernel,
        grid=grid,
        in_specs=[
            pl.BlockSpec((tile_n, f), lambda i: (i, 0)),   # x1 row tile (streams)
            pl.BlockSpec((m_pad, f), lambda i: (0, 0)),    # x2 (VMEM resident)
            pl.BlockSpec((f, H1), lambda i: (0, 0)),       # fc1 weight, x1 half (bf16)
            pl.BlockSpec((f, H1), lambda i: (0, 0)),       # fc1 weight, x2 half (bf16)
            pl.BlockSpec((1, H1), lambda i: (0, 0)),       # fc1 bias (f32)
            pl.BlockSpec((H1, H2), lambda i: (0, 0)),      # fc2 weight (bf16)
            pl.BlockSpec((1, H2), lambda i: (0, 0)),       # fc2 bias (f32)
            pl.BlockSpec((1, H2), lambda i: (0, 0)),       # fc3 weight row (f32)
            pl.BlockSpec((1, 1), lambda i: (0, 0)),        # fc3 bias (f32)
        ],
        out_specs=pl.BlockSpec((tile_n, m_pad), lambda i: (i, 0)),
        out_shape=jax.ShapeDtypeStruct((n_pad, m_pad), jnp.float32),
        compiler_params=pltpu.CompilerParams(dimension_semantics=semantics),
        cost_estimate=cost,
    )(x1p, x2p, w1a_b, w1b_b, b1f, w2_b, b2f, w3f, b3f)

    return out[:n, :m]


# ----------------------------------------------------------------------------
# Pure-JAX reference (exact PyTorch semantics: expand + cat + 3-layer MLP, f32).
# ----------------------------------------------------------------------------
def relation1_reference(x1, x2, params):
    w1a, w1b, b1, w2, b2, w3, b3 = params
    n, m = x1.shape[0], x2.shape[0]
    w1 = jnp.concatenate([w1a, w1b], axis=0)                        # (2F, H1)
    x = jnp.concatenate([
        jnp.broadcast_to(x1[:, None, :], (n, m, x1.shape[1])),
        jnp.broadcast_to(x2[None, :, :], (n, m, x2.shape[1])),
    ], axis=-1)                                                     # (n, m, 2F)
    hp = jax.lax.Precision.HIGHEST
    h = jax.nn.relu(jnp.dot(x, w1, precision=hp) + b1)
    h = jax.nn.relu(jnp.dot(h, w2, precision=hp) + b2)
    o = jnp.dot(h, w3.T, precision=hp) + b3                         # (n, m, 1)
    return o[..., 0]


# ----------------------------------------------------------------------------
if __name__ == "__main__":
    # GCR-sized episode: n = query*way = 12 query features, m = 12 prototypes,
    # per-input feature dim F = 128  (Relation1 h_dim = 256).
    n, m = 12, 12

    key = jax.random.PRNGKey(0)
    ks = jax.random.split(key, 9)
    s = 0.05
    params = (
        (s * jax.random.normal(ks[0], (F_DIM, H1))).astype(jnp.float32),  # W1a
        (s * jax.random.normal(ks[1], (F_DIM, H1))).astype(jnp.float32),  # W1b
        (s * jax.random.normal(ks[2], (1, H1))).astype(jnp.float32),      # b1
        (s * jax.random.normal(ks[3], (H1, H2))).astype(jnp.float32),     # W2
        (s * jax.random.normal(ks[4], (1, H2))).astype(jnp.float32),      # b2
        (s * jax.random.normal(ks[5], (1, H2))).astype(jnp.float32),      # W3 row
        (s * jax.random.normal(ks[6], (1, 1))).astype(jnp.float32),       # b3
    )
    x1 = jax.random.normal(ks[7], (n, F_DIM), jnp.float32)
    x2 = jax.random.normal(ks[8], (m, F_DIM), jnp.float32)

    out = jax.block_until_ready(relation1_forward(x1, x2, params))
    assert out.shape == (n, m)

    ref = jax.block_until_ready(relation1_reference(x1, x2, params))
    # bf16 MXU operands (f32 accumulate) vs. the f32 HIGHEST-precision
    # reference: tolerance relaxed from 1e-2 to 5e-2 accordingly.
    max_err = float(jnp.max(jnp.abs(out - ref)))
    assert max_err < 5e-2, f"max abs error {max_err}"

    print("KERNEL_OK")
</pallas_src>

<mosaic_0001>
module attributes {stable_mosaic.version = 11 : i64} {
  func.func @_relation1_kernel(%arg0: i32, %arg1: memref<16x128xf32, #tpu.memory_space<vmem>>, %arg2: memref<16x128xf32, #tpu.memory_space<vmem>>, %arg3: memref<128x1600xbf16, #tpu.memory_space<vmem>>, %arg4: memref<128x1600xbf16, #tpu.memory_space<vmem>>, %arg5: memref<1x1600xf32, #tpu.memory_space<vmem>>, %arg6: memref<1600x200xbf16, #tpu.memory_space<vmem>>, %arg7: memref<1x200xf32, #tpu.memory_space<vmem>>, %arg8: memref<1x200xf32, #tpu.memory_space<vmem>>, %arg9: memref<1x1xf32, #tpu.memory_space<vmem>>, %arg10: memref<16x16xf32, #tpu.memory_space<vmem>>) attributes {dimension_semantics = [#tpu.dimension_semantics<arbitrary>], iteration_bounds = array<i64: 1>, scalar_prefetch = 0 : i64, scratch_operands = 0 : i64, tpu.core_type = #tpu.core_type<tc>, window_params = [{transform_indices = @transform_0, window_bounds = array<i64: 16, 128>}, {pipeline_mode = #tpu.pipeline_mode<synchronous>, transform_indices = @transform_1, window_bounds = array<i64: 16, 128>}, {pipeline_mode = #tpu.pipeline_mode<synchronous>, transform_indices = @transform_2, window_bounds = array<i64: 128, 1600>}, {pipeline_mode = #tpu.pipeline_mode<synchronous>, transform_indices = @transform_3, window_bounds = array<i64: 128, 1600>}, {pipeline_mode = #tpu.pipeline_mode<synchronous>, transform_indices = @transform_4, window_bounds = array<i64: 1, 1600>}, {pipeline_mode = #tpu.pipeline_mode<synchronous>, transform_indices = @transform_5, window_bounds = array<i64: 1600, 200>}, {pipeline_mode = #tpu.pipeline_mode<synchronous>, transform_indices = @transform_6, window_bounds = array<i64: 1, 200>}, {pipeline_mode = #tpu.pipeline_mode<synchronous>, transform_indices = @transform_7, window_bounds = array<i64: 1, 200>}, {pipeline_mode = #tpu.pipeline_mode<synchronous>, transform_indices = @transform_8, window_bounds = array<i64: 1, 1>}, {transform_indices = @transform_9, window_bounds = array<i64: 16, 16>}]} {
    %c0 = arith.constant 0 : index
    %c0_0 = arith.constant 0 : index
    %0 = vector.load %arg1[%c0, %c0_0] : memref<16x128xf32, #tpu.memory_space<vmem>>, vector<16x128xf32>
    %1 = arith.truncf %0 : vector<16x128xf32> to vector<16x128xbf16>
    %c0_1 = arith.constant 0 : index
    %c0_2 = arith.constant 0 : index
    %2 = vector.load %arg3[%c0_1, %c0_2] : memref<128x1600xbf16, #tpu.memory_space<vmem>>, vector<128x1600xbf16>
    %cst = arith.constant dense<0.000000e+00> : vector<16x1600xf32>
    %3 = tpu.matmul %1, %2, %cst {dimension_numbers = #tpu.dot_dimension_numbers<[1], [0], [0], [1], [0, 0, 1, 1], [], []>} : vector<16x128xbf16>, vector<128x1600xbf16>, vector<16x1600xf32> -> vector<16x1600xf32>
    %c0_3 = arith.constant 0 : index
    %c0_4 = arith.constant 0 : index
    %4 = vector.load %arg2[%c0_3, %c0_4] : memref<16x128xf32, #tpu.memory_space<vmem>>, vector<16x128xf32>
    %5 = arith.truncf %4 : vector<16x128xf32> to vector<16x128xbf16>
    %c0_5 = arith.constant 0 : index
    %c0_6 = arith.constant 0 : index
    %6 = vector.load %arg4[%c0_5, %c0_6] : memref<128x1600xbf16, #tpu.memory_space<vmem>>, vector<128x1600xbf16>
    %cst_7 = arith.constant dense<0.000000e+00> : vector<16x1600xf32>
    %7 = tpu.matmul %5, %6, %cst_7 {dimension_numbers = #tpu.dot_dimension_numbers<[1], [0], [0], [1], [0, 0, 1, 1], [], []>} : vector<16x128xbf16>, vector<128x1600xbf16>, vector<16x1600xf32> -> vector<16x1600xf32>
    %c0_8 = arith.constant 0 : index
    %c0_9 = arith.constant 0 : index
    %8 = vector.load %arg5[%c0_8, %c0_9] : memref<1x1600xf32, #tpu.memory_space<vmem>>, vector<1x1600xf32>
    %9 = vector.broadcast %8 : vector<1x1600xf32> to vector<16x1600xf32>
    %10 = arith.addf %7, %9 : vector<16x1600xf32>
    %11 = vector.shape_cast %3 : vector<16x1600xf32> to vector<16x1x1600xf32>
    %12 = vector.shape_cast %10 : vector<16x1600xf32> to vector<1x16x1600xf32>
    %13 = vector.broadcast %11 : vector<16x1x1600xf32> to vector<16x16x1600xf32>
    %14 = vector.broadcast %12 : vector<1x16x1600xf32> to vector<16x16x1600xf32>
    %15 = arith.addf %13, %14 : vector<16x16x1600xf32>
    %cst_10 = arith.constant 0.000000e+00 : f32
    %16 = vector.broadcast %cst_10 : f32 to vector<16x16x1600xf32>
    %17 = arith.maximumf %15, %16 : vector<16x16x1600xf32>
    %18 = vector.shape_cast %17 : vector<16x16x1600xf32> to vector<256x1600xf32>
    %19 = arith.truncf %18 : vector<256x1600xf32> to vector<256x1600xbf16>
    %c0_11 = arith.constant 0 : index
    %c0_12 = arith.constant 0 : index
    %20 = vector.load %arg6[%c0_11, %c0_12] : memref<1600x200xbf16, #tpu.memory_space<vmem>>, vector<1600x200xbf16>
    %cst_13 = arith.constant dense<0.000000e+00> : vector<256x200xf32>
    %21 = tpu.matmul %19, %20, %cst_13 {dimension_numbers = #tpu.dot_dimension_numbers<[1], [0], [0], [1], [0, 0, 1, 1], [], []>} : vector<256x1600xbf16>, vector<1600x200xbf16>, vector<256x200xf32> -> vector<256x200xf32>
    %c0_14 = arith.constant 0 : index
    %c0_15 = arith.constant 0 : index
    %22 = vector.load %arg7[%c0_14, %c0_15] : memref<1x200xf32, #tpu.memory_space<vmem>>, vector<1x200xf32>
    %23 = vector.broadcast %22 : vector<1x200xf32> to vector<256x200xf32>
    %24 = arith.addf %21, %23 : vector<256x200xf32>
    %cst_16 = arith.constant 0.000000e+00 : f32
    %25 = vector.broadcast %cst_16 : f32 to vector<256x200xf32>
    %26 = arith.maximumf %24, %25 : vector<256x200xf32>
    %c0_17 = arith.constant 0 : index
    %c0_18 = arith.constant 0 : index
    %27 = vector.load %arg8[%c0_17, %c0_18] : memref<1x200xf32, #tpu.memory_space<vmem>>, vector<1x200xf32>
    %28 = vector.broadcast %27 : vector<1x200xf32> to vector<256x200xf32>
    %29 = arith.mulf %26, %28 : vector<256x200xf32>
    %30 = vector.shape_cast %29 : vector<256x200xf32> to vector<16x16x200xf32>
    %cst_19 = arith.constant dense<0.000000e+00> : vector<16x16xf32>
    %31 = vector.multi_reduction <add>, %30, %cst_19 [2] : vector<16x16x200xf32> to vector<16x16xf32>
    %c0_20 = arith.constant 0 : index
    %c0_21 = arith.constant 0 : index
    %32 = vector.load %arg9[%c0_20, %c0_21] : memref<1x1xf32, #tpu.memory_space<vmem>>, vector<1x1xf32>
    %33 = vector.broadcast %32 : vector<1x1xf32> to vector<16x16xf32>
    %34 = arith.addf %31, %33 : vector<16x16xf32>
    %c0_22 = arith.constant 0 : index
    %c0_23 = arith.constant 0 : index
    %35 = vector.load %arg10[%c0_22, %c0_23] : memref<16x16xf32, #tpu.memory_space<vmem>>, vector<16x16xf32>
    tpu.vector_store %arg10[%c0_22, %c0_23], %34 {strides = array<i32>} : memref<16x16xf32, #tpu.memory_space<vmem>>, vector<16x16xf32>,
    return
  }
  func.func @transform_0(%arg0: i32) -> (i32, i32) {
    %c0_i32 = arith.constant 0 : i32
    %c0_i32_0 = arith.constant 0 : i32
    return %arg0, %c0_i32 : i32, i32
  }
  func.func @transform_1(%arg0: i32) -> (i32, i32) {
    %c0_i32 = arith.constant 0 : i32
    %c0_i32_0 = arith.constant 0 : i32
    %c0_i32_1 = arith.constant 0 : i32
    return %c0_i32, %c0_i32_0 : i32, i32
  }
  func.func @transform_2(%arg0: i32) -> (i32, i32) {
    %c0_i32 = arith.constant 0 : i32
    %c0_i32_0 = arith.constant 0 : i32
    %c0_i32_1 = arith.constant 0 : i32
    return %c0_i32, %c0_i32_0 : i32, i32
  }
  func.func @transform_3(%arg0: i32) -> (i32, i32) {
    %c0_i32 = arith.constant 0 : i32
    %c0_i32_0 = arith.constant 0 : i32
    %c0_i32_1 = arith.constant 0 : i32
    return %c0_i32, %c0_i32_0 : i32, i32
  }
  func.func @transform_4(%arg0: i32) -> (i32, i32) {
    %c0_i32 = arith.constant 0 : i32
    %c0_i32_0 = arith.constant 0 : i32
    %c0_i32_1 = arith.constant 0 : i32
    return %c0_i32, %c0_i32_0 : i32, i32
  }
  func.func @transform_5(%arg0: i32) -> (i32, i32) {
    %c0_i32 = arith.constant 0 : i32
    %c0_i32_0 = arith.constant 0 : i32
    %c0_i32_1 = arith.constant 0 : i32
    return %c0_i32, %c0_i32_0 : i32, i32
  }
  func.func @transform_6(%arg0: i32) -> (i32, i32) {
    %c0_i32 = arith.constant 0 : i32
    %c0_i32_0 = arith.constant 0 : i32
    %c0_i32_1 = arith.constant 0 : i32
    return %c0_i32, %c0_i32_0 : i32, i32
  }
  func.func @transform_7(%arg0: i32) -> (i32, i32) {
    %c0_i32 = arith.constant 0 : i32
    %c0_i32_0 = arith.constant 0 : i32
    %c0_i32_1 = arith.constant 0 : i32
    return %c0_i32, %c0_i32_0 : i32, i32
  }
  func.func @transform_8(%arg0: i32) -> (i32, i32) {
    %c0_i32 = arith.constant 0 : i32
    %c0_i32_0 = arith.constant 0 : i32
    %c0_i32_1 = arith.constant 0 : i32
    return %c0_i32, %c0_i32_0 : i32, i32
  }
  func.func @transform_9(%arg0: i32) -> (i32, i32) {
    %c0_i32 = arith.constant 0 : i32
    %c0_i32_0 = arith.constant 0 : i32
    return %arg0, %c0_i32 : i32, i32
  }
}

</mosaic_0001>

<bundles_post_ra>
// kernel: tpu_custom_call.1
= control target key start
LH: loop header
LB: loop body
LE: loop exit
PB: predicated region body
PF: predicated region fallthrough
CT: control target
= control target key end

     0   :  { %s12911_s0 = inlined_call_operand.vmem [shape: f32[16,128], index: 0, kind: input, shape index: {}]   ;;  %s12912_s1 = inlined_call_operand.vmem [shape: f32[16,128], index: 1, kind: input, shape index: {}]   ;;  %s12913_s2 = inlined_call_operand.vmem [shape: bf16[128,1600], index: 2, kind: input, shape index: {}]   ;;  %s12914_s3 = inlined_call_operand.vmem [shape: bf16[128,1600], index: 3, kind: input, shape index: {}]   ;;  %s12915_s4 = inlined_call_operand.vmem [shape: f32[1,1600], index: 4, kind: input, shape index: {}]   ;;  %s12916_s5 = inlined_call_operand.vmem [shape: bf16[1600,200], index: 5, kind: input, shape index: {}]   ;;  %s12917_s6 = inlined_call_operand.vmem [shape: f32[1,200], index: 6, kind: input, shape index: {}]   ;;  %s12918_s7 = inlined_call_operand.vmem [shape: f32[1,200], index: 7, kind: input, shape index: {}]   ;;  %s12919_s8 = inlined_call_operand.<no memory space> [shape: f32[1,1], index: 8, kind: input, shape index: {}]   ;;  %s12920_s9 = inlined_call_operand.hbm [shape: f32[16,16], index: 9, kind: output, shape index: {}]  }
   0x1   :  { %v14_v0 = vstv %s12919_s8 }
   0x2   :  { %15 = vst [vmem:[#allocation2] sm:$0x1] %v14_v0 }
   0x3   :  { %v8717_v1 = vld [vmem:[%s12913_s2 + $0x4] ss:$52 sps:$4 sm:$0xff]   ;;  %v8719_v2 = vld [vmem:[%s12913_s2 + $0xc] ss:$52 sps:$4 sm:$0xff]   ;;  %v12922_v3 = vmov 0   ;;  %vm9380_vm0 = vmmov 0  }
   0x4   :  { %711 = vmatprep.mubr.bf16.mxu0 %v12922_v3  ;;  %754 = vmatprep.mubr.bf16.mxu1 %v12922_v3  ;;  %v8721_v4 = vld [vmem:[%s12913_s2] ss:$52 sps:$4 sm:$0xff]   ;;  %v8722_v5 = vld [vmem:[%s12913_s2 + $0x8] ss:$52 sps:$4 sm:$0xff]   ;;  %v8728_v9 = vld [vmem:[%s12913_s2 + $0x70] ss:$52 sps:$4 sm:$0xff]  }
   0x5   :  { %679 = vmatprep.subr.bf16.mxu0 %v8717_v1  ;;  %8716 = vset.pattern.permute.xlu0 %v12922_v3  ;;  %v8723_v6 = vld [vmem:[%s12913_s2 + $0x6c] ss:$52 sps:$4 sm:$0xff]   ;;  %v8725_v7 = vld [vmem:[%s12913_s2 + $0x74] ss:$52 sps:$4 sm:$0xff]   ;;  %v8731_v11 = vld [vmem:[%s12913_s2 + $0xdc] ss:$52 sps:$4 sm:$0xff]  }
   0x6   :  { %722 = vmatprep.subr.bf16.mxu1 %v8719_v2  ;;  %680 = vmatpush1.bf16.msra.mxu0 %v8721_v4  ;;  %v8727_v8 = vld [vmem:[%s12913_s2 + $0x68] ss:$52 sps:$4 sm:$0xff]   ;;  %v8733_v12 = vld [vmem:[%s12913_s2 + $0xd0] ss:$52 sps:$4 sm:$0xff]   ;;  %v8734_v13 = vld [vmem:[%s12913_s2 + $0xd8] ss:$52 sps:$4 sm:$0xff]  }
   0x7   :  { %723 = vmatpush1.bf16.msra.mxu1 %v8722_v5  ;;  %681 = vmatprep.subr.bf16.mxu0 %v8723_v6  ;;  %v8729_v10 = vld [vmem:[%s12913_s2 + $0xd4] ss:$52 sps:$4 sm:$0xff]   ;;  %v8735_v14 = vld [vmem:[%s12913_s2 + $0x13c] ss:$52 sps:$4 sm:$0xff]   ;;  %v8737_v15 = vld [vmem:[%s12913_s2 + $0x144] ss:$52 sps:$4 sm:$0xff]  }
   0x8   :  { %724 = vmatprep.subr.bf16.mxu1 %v8725_v7  ;;  %v8739_v16 = vld [vmem:[%s12913_s2 + $0x138] ss:$52 sps:$4 sm:$0xff]   ;;  %v8740_v17 = vld [vmem:[%s12913_s2 + $0x140] ss:$52 sps:$4 sm:$0xff]   ;;  %v8746_v21 = vld [vmem:[%s12913_s2 + $0x1a8] ss:$52 sps:$4 sm:$0xff]  }
   0x9   :  { %v8741_v18 = vld [vmem:[%s12913_s2 + $0x1a4] ss:$52 sps:$4 sm:$0xff]   ;;  %v8743_v19 = vld [vmem:[%s12913_s2 + $0x1ac] ss:$52 sps:$4 sm:$0xff]   ;;  %v8749_v23 = vld [vmem:[%s12913_s2 + $0x214] ss:$52 sps:$4 sm:$0xff]  }
   0xa   :  { %682 = vmatpush1.bf16.msra.mxu0 %v8727_v8  ;;  %v8745_v20 = vld [vmem:[%s12913_s2 + $0x1a0] ss:$52 sps:$4 sm:$0xff]   ;;  %v8751_v24 = vld [vmem:[%s12913_s2 + $0x208] ss:$52 sps:$4 sm:$0xff]   ;;  %v8752_v25 = vld [vmem:[%s12913_s2 + $0x210] ss:$52 sps:$4 sm:$0xff]  }
   0xb   :  { %725 = vmatpush1.bf16.msra.mxu1 %v8728_v9  ;;  %683 = vmatprep.subr.bf16.mxu0 %v8729_v10  ;;  %v8747_v22 = vld [vmem:[%s12913_s2 + $0x20c] ss:$52 sps:$4 sm:$0xff]   ;;  %v8753_v26 = vld [vmem:[%s12913_s2 + $0x274] ss:$52 sps:$4 sm:$0xff]   ;;  %v8755_v27 = vld [vmem:[%s12913_s2 + $0x27c] ss:$52 sps:$4 sm:$0xff]  }
   0xc   :  { %726 = vmatprep.subr.bf16.mxu1 %v8731_v11  ;;  %v8757_v28 = vld [vmem:[%s12913_s2 + $0x270] ss:$52 sps:$4 sm:$0xff]   ;;  %v8758_v29 = vld [vmem:[%s12913_s2 + $0x278] ss:$52 sps:$4 sm:$0xff]   ;;  %v8764_v33 = vld [vmem:[%s12913_s2 + $0x2e0] ss:$52 sps:$4 sm:$0xff]  }
   0xd   :  { %v8759_v30 = vld [vmem:[%s12913_s2 + $0x2dc] ss:$52 sps:$4 sm:$0xff]   ;;  %v8761_v31 = vld [vmem:[%s12913_s2 + $0x2e4] ss:$52 sps:$4 sm:$0xff]   ;;  %v37_v35 = vld [vmem:[%s12911_s0 + $0x8] sm:$0xff] }
   0xe   :  { %684 = vmatpush1.bf16.msra.mxu0 %v8733_v12  ;;  %v8763_v32 = vld [vmem:[%s12913_s2 + $0x2d8] ss:$52 sps:$4 sm:$0xff]   ;;  %v36_v34 = vld [vmem:[%s12911_s0] sm:$0xff]  ;;  %v8767_v36 = vld [vmem:[%s12913_s2 + $0x14] ss:$52 sps:$4 sm:$0xff]  }
   0xf   :  { %727 = vmatpush1.bf16.msra.mxu1 %v8734_v13  ;;  %685 = vmatprep.subr.bf16.mxu0 %v8735_v14  ;;  %v8770_v37 = vld [vmem:[%s12913_s2 + $0x1c] ss:$52 sps:$4 sm:$0xff]   ;;  %v9549_v38 = vpack.c.bf16 %v37_v35, %v36_v34  ;;  %v8768_v40 = vld [vmem:[%s12913_s2 + $0x18] ss:$52 sps:$4 sm:$0xff]   ;;  %v8774_v44 = vld [vmem:[%s12913_s2 + $0x80] ss:$52 sps:$4 sm:$0xff]  }
  0x10   :  { %728 = vmatprep.subr.bf16.mxu1 %v8737_v15  ;;  %v8765_v39 = vld [vmem:[%s12913_s2 + $0x10] ss:$52 sps:$4 sm:$0xff]   ;;  %v8771_v43 = vld [vmem:[%s12913_s2 + $0x78] ss:$52 sps:$4 sm:$0xff]   ;;  %v8777_v47 = vld [vmem:[%s12913_s2 + $0xe0] ss:$52 sps:$4 sm:$0xff]  }
  0x11   :  { %v8773_v41 = vld [vmem:[%s12913_s2 + $0x7c] ss:$52 sps:$4 sm:$0xff]   ;;  %v8776_v42 = vld [vmem:[%s12913_s2 + $0x84] ss:$52 sps:$4 sm:$0xff]   ;;  %v8782_v46 = vld [vmem:[%s12913_s2 + $0xec] ss:$52 sps:$4 sm:$0xff]  }
  0x12   :  { %686 = vmatpush1.bf16.msra.mxu0 %v8739_v16  ;;  %v8779_v45 = vld [vmem:[%s12913_s2 + $0xe4] ss:$52 sps:$4 sm:$0xff]   ;;  %v8780_v48 = vld [vmem:[%s12913_s2 + $0xe8] ss:$52 sps:$4 sm:$0xff]   ;;  %v8785_v49 = vld [vmem:[%s12913_s2 + $0x14c] ss:$52 sps:$4 sm:$0xff]  }
  0x13   :  { %729 = vmatpush1.bf16.msra.mxu1 %v8740_v17  ;;  %687 = vmatprep.subr.bf16.mxu0 %v8741_v18  ;;  %v8788_v50 = vld [vmem:[%s12913_s2 + $0x154] ss:$52 sps:$4 sm:$0xff]   ;;  %v8786_v52 = vld [vmem:[%s12913_s2 + $0x150] ss:$52 sps:$4 sm:$0xff]   ;;  %v8792_v56 = vld [vmem:[%s12913_s2 + $0x1b8] ss:$52 sps:$4 sm:$0xff]  }
  0x14   :  { %730 = vmatprep.subr.bf16.mxu1 %v8743_v19  ;;  %v8783_v51 = vld [vmem:[%s12913_s2 + $0x148] ss:$52 sps:$4 sm:$0xff]   ;;  %v8789_v55 = vld [vmem:[%s12913_s2 + $0x1b0] ss:$52 sps:$4 sm:$0xff]   ;;  %v8795_v59 = vld [vmem:[%s12913_s2 + $0x218] ss:$52 sps:$4 sm:$0xff]  }
  0x15   :  { %v8791_v53 = vld [vmem:[%s12913_s2 + $0x1b4] ss:$52 sps:$4 sm:$0xff]   ;;  %v8794_v54 = vld [vmem:[%s12913_s2 + $0x1bc] ss:$52 sps:$4 sm:$0xff]   ;;  %v8800_v58 = vld [vmem:[%s12913_s2 + $0x224] ss:$52 sps:$4 sm:$0xff]  }
  0x16   :  { %688 = vmatpush1.bf16.msra.mxu0 %v8745_v20  ;;  %v8797_v57 = vld [vmem:[%s12913_s2 + $0x21c] ss:$52 sps:$4 sm:$0xff]   ;;  %v8798_v60 = vld [vmem:[%s12913_s2 + $0x220] ss:$52 sps:$4 sm:$0xff]   ;;  %v8803_v61 = vld [vmem:[%s12913_s2 + $0x284] ss:$52 sps:$4 sm:$0xff]  }
  0x17   :  { %731 = vmatpush1.bf16.msra.mxu1 %v8746_v21  ;;  %689 = vmatprep.subr.bf16.mxu0 %v8747_v22  ;;  %v8806_v62 = vld [vmem:[%s12913_s2 + $0x28c] ss:$52 sps:$4 sm:$0xff]   ;;  %v8804_v0 = vld [vmem:[%s12913_s2 + $0x288] ss:$52 sps:$4 sm:$0xff]   ;;  %v8810_v5 = vld [vmem:[%s12913_s2 + $0x2f0] ss:$52 sps:$4 sm:$0xff]  }
  0x18   :  { %732 = vmatprep.subr.bf16.mxu1 %v8749_v23  ;;  %v8801_v63 = vld [vmem:[%s12913_s2 + $0x280] ss:$52 sps:$4 sm:$0xff]   ;;  %v8807_v4 = vld [vmem:[%s12913_s2 + $0x2e8] ss:$52 sps:$4 sm:$0xff]   ;;  %v8815_v6 = vld [vmem:[%s12913_s2 + $0x24] ss:$52 sps:$4 sm:$0xff]  }
  0x19   :  { %v8809_v1 = vld [vmem:[%s12913_s2 + $0x2ec] ss:$52 sps:$4 sm:$0xff]   ;;  %v8812_v2 = vld [vmem:[%s12913_s2 + $0x2f4] ss:$52 sps:$4 sm:$0xff]   ;;  %v8822_v13 = vld [vmem:[%s12913_s2 + $0x90] ss:$52 sps:$4 sm:$0xff]  }
  0x1a   :  { %690 = vmatpush1.bf16.msra.mxu0 %v8751_v24  ;;  %v8818_v7 = vld [vmem:[%s12913_s2 + $0x2c] ss:$52 sps:$4 sm:$0xff]   ;;  %v8816_v9 = vld [vmem:[%s12913_s2 + $0x28] ss:$52 sps:$4 sm:$0xff]   ;;  %v8825_v16 = vld [vmem:[%s12913_s2 + $0xf0] ss:$52 sps:$4 sm:$0xff]  }
  0x1b   :  { %733 = vmatpush1.bf16.msra.mxu1 %v8752_v25  ;;  %691 = vmatprep.subr.bf16.mxu0 %v8753_v26  ;;  %v8813_v8 = vld [vmem:[%s12913_s2 + $0x20] ss:$52 sps:$4 sm:$0xff]   ;;  %v8819_v12 = vld [vmem:[%s12913_s2 + $0x88] ss:$52 sps:$4 sm:$0xff]   ;;  %v8828_v17 = vld [vmem:[%s12913_s2 + $0xf8] ss:$52 sps:$4 sm:$0xff]  }
  0x1c   :  { %734 = vmatprep.subr.bf16.mxu1 %v8755_v27  ;;  %v8821_v10 = vld [vmem:[%s12913_s2 + $0x8c] ss:$52 sps:$4 sm:$0xff]   ;;  %v8824_v11 = vld [vmem:[%s12913_s2 + $0x94] ss:$52 sps:$4 sm:$0xff]   ;;  %v8830_v15 = vld [vmem:[%s12913_s2 + $0xfc] ss:$52 sps:$4 sm:$0xff]  }
  0x1d   :  { %v8827_v14 = vld [vmem:[%s12913_s2 + $0xf4] ss:$52 sps:$4 sm:$0xff]   ;;  %v8833_v18 = vld [vmem:[%s12913_s2 + $0x15c] ss:$52 sps:$4 sm:$0xff]   ;;  %v8836_v19 = vld [vmem:[%s12913_s2 + $0x164] ss:$52 sps:$4 sm:$0xff]  }
  0x1e   :  { %692 = vmatpush1.bf16.msra.mxu0 %v8757_v28  ;;  %v8831_v20 = vld [vmem:[%s12913_s2 + $0x158] ss:$52 sps:$4 sm:$0xff]   ;;  %v8834_v21 = vld [vmem:[%s12913_s2 + $0x160] ss:$52 sps:$4 sm:$0xff]   ;;  %v8840_v25 = vld [vmem:[%s12913_s2 + $0x1c8] ss:$52 sps:$4 sm:$0xff]  }
  0x1f   :  { %735 = vmatpush1.bf16.msra.mxu1 %v8758_v29  ;;  %693 = vmatprep.subr.bf16.mxu0 %v8759_v30  ;;  %v8839_v22 = vld [vmem:[%s12913_s2 + $0x1c4] ss:$52 sps:$4 sm:$0xff]   ;;  %v8842_v23 = vld [vmem:[%s12913_s2 + $0x1cc] ss:$52 sps:$4 sm:$0xff]   ;;  %v8848_v27 = vld [vmem:[%s12913_s2 + $0x234] ss:$52 sps:$4 sm:$0xff]  }
  0x20   :  { %736 = vmatprep.subr.bf16.mxu1 %v8761_v31  ;;  %v8837_v24 = vld [vmem:[%s12913_s2 + $0x1c0] ss:$52 sps:$4 sm:$0xff]   ;;  %v8843_v28 = vld [vmem:[%s12913_s2 + $0x228] ss:$52 sps:$4 sm:$0xff]   ;;  %v8846_v29 = vld [vmem:[%s12913_s2 + $0x230] ss:$52 sps:$4 sm:$0xff]  }
  0x21   :  { %v8845_v26 = vld [vmem:[%s12913_s2 + $0x22c] ss:$52 sps:$4 sm:$0xff]   ;;  %v8851_v30 = vld [vmem:[%s12913_s2 + $0x294] ss:$52 sps:$4 sm:$0xff]   ;;  %v8854_v31 = vld [vmem:[%s12913_s2 + $0x29c] ss:$52 sps:$4 sm:$0xff]  }
  0x22   :  { %694 = vmatpush1.bf16.msra.mxu0 %v8763_v32  ;;  %v8849_v32 = vld [vmem:[%s12913_s2 + $0x290] ss:$52 sps:$4 sm:$0xff]  }
  0x23   :  { %737 = vmatpush1.bf16.msra.mxu1 %v8764_v33  ;;  %765 = vmatprep.subr.bf16.mxu0 %v8767_v36  ;;  %v8852_v33 = vld [vmem:[%s12913_s2 + $0x298] ss:$52 sps:$4 sm:$0xff]   ;;  %v8857_v34 = vld [vmem:[%s12913_s2 + $0x2fc] ss:$52 sps:$4 sm:$0xff]  }
  0x24   :  { %808 = vmatprep.subr.bf16.mxu1 %v8770_v37  ;;  %v8860_v35 = vld [vmem:[%s12913_s2 + $0x304] ss:$52 sps:$4 sm:$0xff]   ;;  %v8858_v37 = vld [vmem:[%s12913_s2 + $0x300] ss:$52 sps:$4 sm:$0xff]  }
  0x25   :  { %712 = vmatmul.mubr.bf16.vlgmr.msra.gmra.mrb[0].mxu0 %v9549_v38  ;;  %v8855_v36 = vld [vmem:[%s12913_s2 + $0x2f8] ss:$52 sps:$4 sm:$0xff]  }
  0x26   :  { %755 = vmatmul.mubr.bf16.vlgmr.msra.gmra.mrb[0].mxu1 %v9549_v38  ;;  %766 = vmatpush1.bf16.msra.mxu0 %v8765_v39  ;;  %v8863_v39 = vld [vmem:[%s12914_s3 + $0x4] ss:$52 sps:$4 sm:$0xff]  }
  0x27   :  { %809 = vmatpush1.bf16.msra.mxu1 %v8768_v40  ;;  %767 = vmatprep.subr.bf16.mxu0 %v8773_v41  ;;  %v8861_v40 = vld [vmem:[%s12914_s3] ss:$52 sps:$4 sm:$0xff]   ;;  %v8864_v41 = vld [vmem:[%s12913_s2 + $0x30] ss:$52 sps:$4 sm:$0xff]  }
  0x28   :  { %810 = vmatprep.subr.bf16.mxu1 %v8776_v42  ;;  %797 = vmatprep.mubr.bf16.mxu0 %v12922_v3  ;;  %v9379_v42 = vmov 0.0  }
  0x29   :  { %840 = vmatprep.mubr.bf16.mxu1 %v12922_v3 }
  0x2a   :  { %768 = vmatpush1.bf16.msra.mxu0 %v8771_v43  ;;  %v8867_v43 = vld [vmem:[%s12914_s3 + $0x6c] ss:$52 sps:$4 sm:$0xff]  }
  0x2b   :  { %811 = vmatpush1.bf16.msra.mxu1 %v8774_v44  ;;  %769 = vmatprep.subr.bf16.mxu0 %v8779_v45  ;;  %v8865_v44 = vld [vmem:[%s12914_s3 + $0x68] ss:$52 sps:$4 sm:$0xff]   ;;  %v8868_v45 = vld [vmem:[%s12913_s2 + $0x98] ss:$52 sps:$4 sm:$0xff]  }
  0x2c   :  { %812 = vmatprep.subr.bf16.mxu1 %v8782_v46  ;;  %v8871_v46 = vld [vmem:[%s12914_s3 + $0xd4] ss:$52 sps:$4 sm:$0xff]  }
  0x2e   :  { %770 = vmatpush1.bf16.msra.mxu0 %v8777_v47  ;;  %v8869_v47 = vld [vmem:[%s12914_s3 + $0xd0] ss:$52 sps:$4 sm:$0xff]  }
  0x2f   :  { %813 = vmatpush1.bf16.msra.mxu1 %v8780_v48  ;;  %771 = vmatprep.subr.bf16.mxu0 %v8785_v49  ;;  %v8872_v48 = vld [vmem:[%s12913_s2 + $0x100] ss:$52 sps:$4 sm:$0xff]   ;;  %v8875_v49 = vld [vmem:[%s12914_s3 + $0x13c] ss:$52 sps:$4 sm:$0xff]  }
  0x30   :  { %814 = vmatprep.subr.bf16.mxu1 %v8788_v50  ;;  %v8873_v50 = vld [vmem:[%s12914_s3 + $0x138] ss:$52 sps:$4 sm:$0xff]  }
  0x32   :  { %772 = vmatpush1.bf16.msra.mxu0 %v8783_v51  ;;  %v8876_v51 = vld [vmem:[%s12913_s2 + $0x168] ss:$52 sps:$4 sm:$0xff]  }
  0x33   :  { %815 = vmatpush1.bf16.msra.mxu1 %v8786_v52  ;;  %773 = vmatprep.subr.bf16.mxu0 %v8791_v53  ;;  %v8879_v52 = vld [vmem:[%s12914_s3 + $0x1a4] ss:$52 sps:$4 sm:$0xff]   ;;  %v8877_v53 = vld [vmem:[%s12914_s3 + $0x1a0] ss:$52 sps:$4 sm:$0xff]  }
  0x34   :  { %816 = vmatprep.subr.bf16.mxu1 %v8794_v54  ;;  %v8880_v54 = vld [vmem:[%s12913_s2 + $0x1d0] ss:$52 sps:$4 sm:$0xff]  }
  0x36   :  { %774 = vmatpush1.bf16.msra.mxu0 %v8789_v55  ;;  %v8883_v55 = vld [vmem:[%s12914_s3 + $0x20c] ss:$52 sps:$4 sm:$0xff]  }
  0x37   :  { %817 = vmatpush1.bf16.msra.mxu1 %v8792_v56  ;;  %775 = vmatprep.subr.bf16.mxu0 %v8797_v57  ;;  %v8881_v56 = vld [vmem:[%s12914_s3 + $0x208] ss:$52 sps:$4 sm:$0xff]   ;;  %v8884_v57 = vld [vmem:[%s12913_s2 + $0x238] ss:$52 sps:$4 sm:$0xff]  }
  0x38   :  { %818 = vmatprep.subr.bf16.mxu1 %v8800_v58  ;;  %v8887_v58 = vld [vmem:[%s12914_s3 + $0x274] ss:$52 sps:$4 sm:$0xff]  }
  0x3a   :  { %776 = vmatpush1.bf16.msra.mxu0 %v8795_v59  ;;  %v8885_v59 = vld [vmem:[%s12914_s3 + $0x270] ss:$52 sps:$4 sm:$0xff]  }
  0x3b   :  { %819 = vmatpush1.bf16.msra.mxu1 %v8798_v60  ;;  %777 = vmatprep.subr.bf16.mxu0 %v8803_v61  ;;  %v8888_v60 = vld [vmem:[%s12913_s2 + $0x2a0] ss:$52 sps:$4 sm:$0xff]   ;;  %v8891_v61 = vld [vmem:[%s12914_s3 + $0x2dc] ss:$52 sps:$4 sm:$0xff]  }
  0x3c   :  { %820 = vmatprep.subr.bf16.mxu1 %v8806_v62  ;;  %v8889_v62 = vld [vmem:[%s12914_s3 + $0x2d8] ss:$52 sps:$4 sm:$0xff]  }
  0x3e   :  { %778 = vmatpush1.bf16.msra.mxu0 %v8801_v63  ;;  %v8892_v63 = vld [vmem:[%s12913_s2 + $0x308] ss:$52 sps:$4 sm:$0xff]  }
  0x3f   :  { %821 = vmatpush1.bf16.msra.mxu1 %v8804_v0  ;;  %779 = vmatprep.subr.bf16.mxu0 %v8809_v1  ;;  %v978_v0 = vld [vmem:[%s12912_s1] sm:$0xff]  ;;  %v979_v1 = vld [vmem:[%s12912_s1 + $0x8] sm:$0xff] }
  0x40   :  { %822 = vmatprep.subr.bf16.mxu1 %v8812_v2  ;;  %v8895_v2 = vld [vmem:[%s12914_s3 + $0xc] ss:$52 sps:$4 sm:$0xff]  }
  0x42   :  { %780 = vmatpush1.bf16.msra.mxu0 %v8807_v4  ;;  %v8898_v4 = vld [vmem:[%s12914_s3 + $0x14] ss:$52 sps:$4 sm:$0xff]  }
  0x43   :  { %823 = vmatpush1.bf16.msra.mxu1 %v8810_v5  ;;  %851 = vmatprep.subr.bf16.mxu0 %v8815_v6  ;;  %v9842_v5 = vpack.c.bf16 %v979_v1, %v978_v0  ;;  %v8893_v6 = vld [vmem:[%s12914_s3 + $0x8] ss:$52 sps:$4 sm:$0xff]   ;;  %v8980_v0 = vld [vmem:[%s12914_s3 + $0x290] ss:$52 sps:$4 sm:$0xff]  }
  0x44   :  { %894 = vmatprep.subr.bf16.mxu1 %v8818_v7  ;;  %v8896_v7 = vld [vmem:[%s12914_s3 + $0x10] ss:$52 sps:$4 sm:$0xff]   ;;  %v8985_v1 = vld [vmem:[%s12914_s3 + $0x2f4] ss:$52 sps:$4 sm:$0xff]  }
  0x45   :  { %798 = vmatmul.mubr.bf16.vlgmr.msra.gmra.mrb[4].mxu0 %v9549_v38 }
  0x46   :  { %841 = vmatmul.mubr.bf16.vlgmr.msra.gmra.mrb[4].mxu1 %v9549_v38  ;;  %852 = vmatpush1.bf16.msra.mxu0 %v8813_v8  ;;  %v8901_v8 = vld [vmem:[%s12914_s3 + $0x74] ss:$52 sps:$4 sm:$0xff]  }
  0x47   :  { %895 = vmatpush1.bf16.msra.mxu1 %v8816_v9  ;;  %853 = vmatprep.subr.bf16.mxu0 %v8821_v10  ;;  %v8904_v9 = vld [vmem:[%s12914_s3 + $0x7c] ss:$52 sps:$4 sm:$0xff]  }
  0x48   :  { %896 = vmatprep.subr.bf16.mxu1 %v8824_v11  ;;  %883 = vmatprep.mubr.bf16.mxu0 %v12922_v3  ;;  %v8899_v10 = vld [vmem:[%s12914_s3 + $0x70] ss:$52 sps:$4 sm:$0xff]   ;;  %v8902_v11 = vld [vmem:[%s12914_s3 + $0x78] ss:$52 sps:$4 sm:$0xff]  }
  0x49   :  { %926 = vmatprep.mubr.bf16.mxu1 %v12922_v3 }
  0x4a   :  { %854 = vmatpush1.bf16.msra.mxu0 %v8819_v12  ;;  %v8907_v12 = vld [vmem:[%s12914_s3 + $0xdc] ss:$52 sps:$4 sm:$0xff]  }
  0x4b   :  { %897 = vmatpush1.bf16.msra.mxu1 %v8822_v13  ;;  %855 = vmatprep.subr.bf16.mxu0 %v8827_v14  ;;  %v8905_v13 = vld [vmem:[%s12914_s3 + $0xd8] ss:$52 sps:$4 sm:$0xff]   ;;  %v8908_v14 = vld [vmem:[%s12914_s3 + $0xe0] ss:$52 sps:$4 sm:$0xff]  }
  0x4c   :  { %898 = vmatprep.subr.bf16.mxu1 %v8830_v15  ;;  %v8913_v15 = vld [vmem:[%s12914_s3 + $0x144] ss:$52 sps:$4 sm:$0xff]  }
  0x4e   :  { %856 = vmatpush1.bf16.msra.mxu0 %v8825_v16  ;;  %v8916_v16 = vld [vmem:[%s12914_s3 + $0x14c] ss:$52 sps:$4 sm:$0xff]  }
  0x4f   :  { %899 = vmatpush1.bf16.msra.mxu1 %v8828_v17  ;;  %857 = vmatprep.subr.bf16.mxu0 %v8833_v18  ;;  %v8911_v17 = vld [vmem:[%s12914_s3 + $0x140] ss:$52 sps:$4 sm:$0xff]   ;;  %v8914_v18 = vld [vmem:[%s12914_s3 + $0x148] ss:$52 sps:$4 sm:$0xff]  }
  0x50   :  { %900 = vmatprep.subr.bf16.mxu1 %v8836_v19  ;;  %v8919_v19 = vld [vmem:[%s12914_s3 + $0x1ac] ss:$52 sps:$4 sm:$0xff]  }
  0x52   :  { %858 = vmatpush1.bf16.msra.mxu0 %v8831_v20  ;;  %v8922_v20 = vld [vmem:[%s12914_s3 + $0x1b4] ss:$52 sps:$4 sm:$0xff]  }
  0x53   :  { %901 = vmatpush1.bf16.msra.mxu1 %v8834_v21  ;;  %859 = vmatprep.subr.bf16.mxu0 %v8839_v22  ;;  %v8917_v21 = vld [vmem:[%s12914_s3 + $0x1a8] ss:$52 sps:$4 sm:$0xff]   ;;  %v8920_v22 = vld [vmem:[%s12914_s3 + $0x1b0] ss:$52 sps:$4 sm:$0xff]  }
  0x54   :  { %902 = vmatprep.subr.bf16.mxu1 %v8842_v23  ;;  %v8925_v23 = vld [vmem:[%s12914_s3 + $0x214] ss:$52 sps:$4 sm:$0xff]  }
  0x56   :  { %860 = vmatpush1.bf16.msra.mxu0 %v8837_v24  ;;  %v8928_v24 = vld [vmem:[%s12914_s3 + $0x21c] ss:$52 sps:$4 sm:$0xff]  }
  0x57   :  { %903 = vmatpush1.bf16.msra.mxu1 %v8840_v25  ;;  %861 = vmatprep.subr.bf16.mxu0 %v8845_v26  ;;  %v8923_v25 = vld [vmem:[%s12914_s3 + $0x210] ss:$52 sps:$4 sm:$0xff]   ;;  %v8926_v26 = vld [vmem:[%s12914_s3 + $0x218] ss:$52 sps:$4 sm:$0xff]  }
  0x58   :  { %904 = vmatprep.subr.bf16.mxu1 %v8848_v27  ;;  %v8931_v27 = vld [vmem:[%s12914_s3 + $0x27c] ss:$52 sps:$4 sm:$0xff]  }
  0x5a   :  { %862 = vmatpush1.bf16.msra.mxu0 %v8843_v28  ;;  %v8934_v28 = vld [vmem:[%s12914_s3 + $0x284] ss:$52 sps:$4 sm:$0xff]  }
  0x5b   :  { %905 = vmatpush1.bf16.msra.mxu1 %v8846_v29  ;;  %863 = vmatprep.subr.bf16.mxu0 %v8851_v30  ;;  %v8929_v29 = vld [vmem:[%s12914_s3 + $0x278] ss:$52 sps:$4 sm:$0xff]   ;;  %v8932_v30 = vld [vmem:[%s12914_s3 + $0x280] ss:$52 sps:$4 sm:$0xff]  }
  0x5c   :  { %906 = vmatprep.subr.bf16.mxu1 %v8854_v31  ;;  %v8937_v31 = vld [vmem:[%s12914_s3 + $0x2e4] ss:$52 sps:$4 sm:$0xff]  }
  0x5e   :  { %864 = vmatpush1.bf16.msra.mxu0 %v8849_v32  ;;  %v8940_v32 = vld [vmem:[%s12914_s3 + $0x2ec] ss:$52 sps:$4 sm:$0xff]  }
  0x5f   :  { %907 = vmatpush1.bf16.msra.mxu1 %v8852_v33  ;;  %865 = vmatprep.subr.bf16.mxu0 %v8857_v34  ;;  %v8935_v33 = vld [vmem:[%s12914_s3 + $0x2e0] ss:$52 sps:$4 sm:$0xff]   ;;  %v8938_v34 = vld [vmem:[%s12914_s3 + $0x2e8] ss:$52 sps:$4 sm:$0xff]  }
  0x60   :  { %908 = vmatprep.subr.bf16.mxu1 %v8860_v35  ;;  %v8943_v35 = vld [vmem:[%s12914_s3 + $0x1c] ss:$52 sps:$4 sm:$0xff]  }
  0x62   :  { %866 = vmatpush1.bf16.msra.mxu0 %v8855_v36  ;;  %v8946_v36 = vld [vmem:[%s12914_s3 + $0x24] ss:$52 sps:$4 sm:$0xff]  }
  0x63   :  { %909 = vmatpush1.bf16.msra.mxu1 %v8858_v37  ;;  %8189 = vmatprep.subr.bf16.mxu0 %v9379_v42  ;;  %v8941_v37 = vld [vmem:[%s12914_s3 + $0x18] ss:$52 sps:$4 sm:$0xff]  }
  0x64   :  { %1690 = vmatprep.subr.bf16.mxu1 %v8863_v39  ;;  %v8944_v39 = vld [vmem:[%s12914_s3 + $0x20] ss:$52 sps:$4 sm:$0xff]  }
  0x65   :  { %884 = vmatmul.mubr.bf16.vlgmr.msra.gmra.mrb[8].mxu0 %v9549_v38 }
  0x66   :  { %927 = vmatmul.mubr.bf16.vlgmr.msra.gmra.mrb[8].mxu1 %v9549_v38  ;;  %8190 = vmatpush3.bf16.msra.mxu0 %v8864_v41  ;;  %v8952_v41 = vld [vmem:[%s12914_s3 + $0x8c] ss:$52 sps:$4 sm:$0xff]  }
  0x67   :  { %1691 = vmatpush1.bf16.msra.mxu1 %v8861_v40  ;;  %8191 = vmatprep.subr.bf16.mxu0 %v9379_v42  ;;  %v8949_v40 = vld [vmem:[%s12914_s3 + $0x84] ss:$52 sps:$4 sm:$0xff]  }
  0x68   :  { %1692 = vmatprep.subr.bf16.mxu1 %v8867_v43  ;;  %8205 = vmatprep.mubr.msk.bf16.mxu0 %vm9380_vm0, %v9379_v42  ;;  %v8947_v43 = vld [vmem:[%s12914_s3 + $0x80] ss:$52 sps:$4 sm:$0xff]  }
  0x69   :  { %1722 = vmatprep.mubr.bf16.mxu1 %v12922_v3 }
  0x6a   :  { %8192 = vmatpush3.bf16.msra.mxu0 %v8868_v45  ;;  %v8955_v45 = vld [vmem:[%s12914_s3 + $0xec] ss:$52 sps:$4 sm:$0xff]  }
  0x6b   :  { %1693 = vmatpush1.bf16.msra.mxu1 %v8865_v44  ;;  %8193 = vmatprep.subr.bf16.mxu0 %v9379_v42  ;;  %v8950_v44 = vld [vmem:[%s12914_s3 + $0x88] ss:$52 sps:$4 sm:$0xff]  }
  0x6c   :  { %1694 = vmatprep.subr.bf16.mxu1 %v8871_v46  ;;  %v8958_v46 = vld [vmem:[%s12914_s3 + $0xf4] ss:$52 sps:$4 sm:$0xff]  }
  0x6e   :  { %8194 = vmatpush3.bf16.msra.mxu0 %v8872_v48  ;;  %v8956_v48 = vld [vmem:[%s12914_s3 + $0xf0] ss:$52 sps:$4 sm:$0xff]  }
  0x6f   :  { %1695 = vmatpush1.bf16.msra.mxu1 %v8869_v47  ;;  %8195 = vmatprep.subr.bf16.mxu0 %v9379_v42  ;;  %v8953_v47 = vld [vmem:[%s12914_s3 + $0xe8] ss:$52 sps:$4 sm:$0xff]  }
  0x70   :  { %1696 = vmatprep.subr.bf16.mxu1 %v8875_v49  ;;  %v8961_v49 = vld [vmem:[%s12914_s3 + $0x154] ss:$52 sps:$4 sm:$0xff]  }
  0x72   :  { %8196 = vmatpush3.bf16.msra.mxu0 %v8876_v51  ;;  %v8959_v51 = vld [vmem:[%s12914_s3 + $0x150] ss:$52 sps:$4 sm:$0xff]  }
  0x73   :  { %1697 = vmatpush1.bf16.msra.mxu1 %v8873_v50  ;;  %8197 = vmatprep.subr.bf16.mxu0 %v9379_v42  ;;  %v8964_v50 = vld [vmem:[%s12914_s3 + $0x15c] ss:$52 sps:$4 sm:$0xff]  }
  0x74   :  { %1698 = vmatprep.subr.bf16.mxu1 %v8879_v52  ;;  %v8962_v52 = vld [vmem:[%s12914_s3 + $0x158] ss:$52 sps:$4 sm:$0xff]  }
  0x76   :  { %8198 = vmatpush3.bf16.msra.mxu0 %v8880_v54  ;;  %v8970_v54 = vld [vmem:[%s12914_s3 + $0x1c4] ss:$52 sps:$4 sm:$0xff]  }
  0x77   :  { %1699 = vmatpush1.bf16.msra.mxu1 %v8877_v53  ;;  %8199 = vmatprep.subr.bf16.mxu0 %v9379_v42  ;;  %v8967_v53 = vld [vmem:[%s12914_s3 + $0x1bc] ss:$52 sps:$4 sm:$0xff]  }
  0x78   :  { %1700 = vmatprep.subr.bf16.mxu1 %v8883_v55  ;;  %v8965_v55 = vld [vmem:[%s12914_s3 + $0x1b8] ss:$52 sps:$4 sm:$0xff]  }
  0x7a   :  { %8200 = vmatpush3.bf16.msra.mxu0 %v8884_v57  ;;  %v8973_v57 = vld [vmem:[%s12914_s3 + $0x224] ss:$52 sps:$4 sm:$0xff]  }
  0x7b   :  { %1701 = vmatpush1.bf16.msra.mxu1 %v8881_v56  ;;  %8201 = vmatprep.subr.bf16.mxu0 %v9379_v42  ;;  %v8968_v56 = vld [vmem:[%s12914_s3 + $0x1c0] ss:$52 sps:$4 sm:$0xff]  }
  0x7c   :  { %1702 = vmatprep.subr.bf16.mxu1 %v8887_v58  ;;  %v8976_v58 = vld [vmem:[%s12914_s3 + $0x22c] ss:$52 sps:$4 sm:$0xff]  }
  0x7e   :  { %8202 = vmatpush3.bf16.msra.mxu0 %v8888_v60  ;;  %v8974_v60 = vld [vmem:[%s12914_s3 + $0x228] ss:$52 sps:$4 sm:$0xff]  }
  0x7f   :  { %1703 = vmatpush1.bf16.msra.mxu1 %v8885_v59  ;;  %8203 = vmatprep.subr.bf16.mxu0 %v9379_v42  ;;  %v8971_v59 = vld [vmem:[%s12914_s3 + $0x220] ss:$52 sps:$4 sm:$0xff]  }
  0x80   :  { %1704 = vmatprep.subr.bf16.mxu1 %v8891_v61  ;;  %v8979_v61 = vld [vmem:[%s12914_s3 + $0x28c] ss:$52 sps:$4 sm:$0xff]  }
  0x82   :  { %8204 = vmatpush3.bf16.msra.mxu0 %v8892_v63  ;;  %v8977_v63 = vld [vmem:[%s12914_s3 + $0x288] ss:$52 sps:$4 sm:$0xff]  }
  0x83   :  { %1705 = vmatpush1.bf16.msra.mxu1 %v8889_v62  ;;  %1733 = vmatprep.subr.bf16.mxu0 %v8895_v2  ;;  %v8982_v62 = vld [vmem:[%s12914_s3 + $0x294] ss:$52 sps:$4 sm:$0xff]   ;;  %v8988_v2 = vld [vmem:[%s12914_s3 + $0x2fc] ss:$52 sps:$4 sm:$0xff]  }
  0x84   :  { %1776 = vmatprep.subr.bf16.mxu1 %v8898_v4  ;;  %v8983_v4 = vld [vmem:[%s12914_s3 + $0x2f0] ss:$52 sps:$4 sm:$0xff]  }
  0x85   :  { %8206 = vmatmul.mubr.bf16.vlgmr.msra.gmra.mrb[12].mxu0 %v9549_v38  ;;  %v8910_v38 = vld [vmem:[%s12914_s3 + $0xe4] ss:$52 sps:$4 sm:$0xff]  }
  0x86   :  { %1723 = vmatmul.mubr.bf16.vlgmr.msra.gmra.mrb[12].mxu1 %v9842_v5  ;;  %1734 = vmatpush1.bf16.msra.mxu0 %v8893_v6  ;;  %v8986_v6 = vld [vmem:[%s12914_s3 + $0x2f8] ss:$52 sps:$4 sm:$0xff]  }
  0x87   :  { %1777 = vmatpush1.bf16.msra.mxu1 %v8896_v7  ;;  %1735 = vmatprep.subr.bf16.mxu0 %v8901_v8  ;;  %v8991_v7 = vld [vmem:[%s12914_s3 + $0x2c] ss:$52 sps:$4 sm:$0xff]   ;;  %v8989_v8 = vld [vmem:[%s12914_s3 + $0x28] ss:$52 sps:$4 sm:$0xff]  }
  0x88   :  { %1778 = vmatprep.subr.bf16.mxu1 %v8904_v9  ;;  %1765 = vmatprep.mubr.bf16.mxu0 %v12922_v3  ;;  %v8992_v9 = vld [vmem:[%s12914_s3 + $0x30] ss:$52 sps:$4 sm:$0xff]  }
  0x89   :  { %1808 = vmatprep.mubr.bf16.mxu1 %v12922_v3 }
  0x8a   :  { %1736 = vmatpush1.bf16.msra.mxu0 %v8899_v10  ;;  %v8995_v10 = vld [vmem:[%s12914_s3 + $0x94] ss:$52 sps:$4 sm:$0xff]  }
  0x8b   :  { %1779 = vmatpush1.bf16.msra.mxu1 %v8902_v11  ;;  %1737 = vmatprep.subr.bf16.mxu0 %v8907_v12  ;;  %v8993_v11 = vld [vmem:[%s12914_s3 + $0x90] ss:$52 sps:$4 sm:$0xff]   ;;  %v8996_v12 = vld [vmem:[%s12914_s3 + $0x98] ss:$52 sps:$4 sm:$0xff]  }
  0x8c   :  { %1780 = vmatprep.subr.bf16.mxu1 %v8910_v38  ;;  %v8999_v38 = vld [vmem:[%s12914_s3 + $0xfc] ss:$52 sps:$4 sm:$0xff]  }
  0x8e   :  { %1738 = vmatpush1.bf16.msra.mxu0 %v8905_v13  ;;  %v8997_v13 = vld [vmem:[%s12914_s3 + $0xf8] ss:$52 sps:$4 sm:$0xff]  }
  0x8f   :  { %1781 = vmatpush1.bf16.msra.mxu1 %v8908_v14  ;;  %1739 = vmatprep.subr.bf16.mxu0 %v8913_v15  ;;  %v9000_v14 = vld [vmem:[%s12914_s3 + $0x100] ss:$52 sps:$4 sm:$0xff]   ;;  %v9003_v15 = vld [vmem:[%s12914_s3 + $0x164] ss:$52 sps:$4 sm:$0xff]  }
  0x90   :  { %1782 = vmatprep.subr.bf16.mxu1 %v8916_v16  ;;  %v9001_v16 = vld [vmem:[%s12914_s3 + $0x160] ss:$52 sps:$4 sm:$0xff]  }
  0x92   :  { %1740 = vmatpush1.bf16.msra.mxu0 %v8911_v17  ;;  %v9004_v17 = vld [vmem:[%s12914_s3 + $0x168] ss:$52 sps:$4 sm:$0xff]  }
  0x93   :  { %1783 = vmatpush1.bf16.msra.mxu1 %v8914_v18  ;;  %1741 = vmatprep.subr.bf16.mxu0 %v8919_v19  ;;  %v9007_v18 = vld [vmem:[%s12914_s3 + $0x1cc] ss:$52 sps:$4 sm:$0xff]   ;;  %v9005_v19 = vld [vmem:[%s12914_s3 + $0x1c8] ss:$52 sps:$4 sm:$0xff]  }
  0x94   :  { %1784 = vmatprep.subr.bf16.mxu1 %v8922_v20  ;;  %v9008_v20 = vld [vmem:[%s12914_s3 + $0x1d0] ss:$52 sps:$4 sm:$0xff]  }
  0x96   :  { %1742 = vmatpush1.bf16.msra.mxu0 %v8917_v21  ;;  %v9011_v21 = vld [vmem:[%s12914_s3 + $0x234] ss:$52 sps:$4 sm:$0xff]  }
  0x97   :  { %1785 = vmatpush1.bf16.msra.mxu1 %v8920_v22  ;;  %1743 = vmatprep.subr.bf16.mxu0 %v8925_v23  ;;  %v9009_v22 = vld [vmem:[%s12914_s3 + $0x230] ss:$52 sps:$4 sm:$0xff]   ;;  %v9012_v23 = vld [vmem:[%s12914_s3 + $0x238] ss:$52 sps:$4 sm:$0xff]  }
  0x98   :  { %1786 = vmatprep.subr.bf16.mxu1 %v8928_v24  ;;  %v9015_v24 = vld [vmem:[%s12914_s3 + $0x29c] ss:$52 sps:$4 sm:$0xff]  }
  0x9a   :  { %1744 = vmatpush1.bf16.msra.mxu0 %v8923_v25  ;;  %v9013_v25 = vld [vmem:[%s12914_s3 + $0x298] ss:$52 sps:$4 sm:$0xff]  }
  0x9b   :  { %1787 = vmatpush1.bf16.msra.mxu1 %v8926_v26  ;;  %1745 = vmatprep.subr.bf16.mxu0 %v8931_v27  ;;  %v9016_v26 = vld [vmem:[%s12914_s3 + $0x2a0] ss:$52 sps:$4 sm:$0xff]   ;;  %v9019_v27 = vld [vmem:[%s12914_s3 + $0x304] ss:$52 sps:$4 sm:$0xff]  }
  0x9c   :  { %1788 = vmatprep.subr.bf16.mxu1 %v8934_v28  ;;  %v9017_v28 = vld [vmem:[%s12914_s3 + $0x300] ss:$52 sps:$4 sm:$0xff]  }
  0x9e   :  { %1746 = vmatpush1.bf16.msra.mxu0 %v8929_v29  ;;  %v9020_v29 = vld [vmem:[%s12914_s3 + $0x308] ss:$52 sps:$4 sm:$0xff]  }
  0x9f   :  { %1789 = vmatpush1.bf16.msra.mxu1 %v8932_v30  ;;  %1747 = vmatprep.subr.bf16.mxu0 %v8937_v31  ;;  %v9023_v30 = vld [vmem:[%s12916_s5 + $0x4] ss:$8 sps:$4 sm:$0xff]  }
  0xa0   :  { %1790 = vmatprep.subr.bf16.mxu1 %v8940_v32 }
  0xa2   :  { %1748 = vmatpush1.bf16.msra.mxu0 %v8935_v33 }
  0xa3   :  { %1791 = vmatpush1.bf16.msra.mxu1 %v8938_v34  ;;  %1819 = vmatprep.subr.bf16.mxu0 %v8943_v35 }
  0xa4   :  { %1862 = vmatprep.subr.bf16.mxu1 %v8946_v36 }
  0xa5   :  { %1766 = vmatmul.mubr.bf16.vlgmr.msra.gmra.mrb[16].mxu0 %v9842_v5 }
  0xa6   :  { %1809 = vmatmul.mubr.bf16.vlgmr.msra.gmra.mrb[16].mxu1 %v9842_v5  ;;  %1820 = vmatpush1.bf16.msra.mxu0 %v8941_v37 }
  0xa7   :  { %1863 = vmatpush1.bf16.msra.mxu1 %v8944_v39  ;;  %1821 = vmatprep.subr.bf16.mxu0 %v8949_v40 }
  0xa8   :  { %1864 = vmatprep.subr.bf16.mxu1 %v8952_v41  ;;  %1851 = vmatprep.mubr.bf16.mxu0 %v12922_v3 }
  0xa9   :  { %1894 = vmatprep.mubr.bf16.mxu1 %v12922_v3 }
  0xaa   :  { %1822 = vmatpush1.bf16.msra.mxu0 %v8947_v43 }
  0xab   :  { %1865 = vmatpush1.bf16.msra.mxu1 %v8950_v44  ;;  %1823 = vmatprep.subr.bf16.mxu0 %v8955_v45 }
  0xac   :  { %1866 = vmatprep.subr.bf16.mxu1 %v8958_v46 }
  0xae   :  { %1824 = vmatpush1.bf16.msra.mxu0 %v8953_v47 }
  0xaf   :  { %1867 = vmatpush1.bf16.msra.mxu1 %v8956_v48  ;;  %1825 = vmatprep.subr.bf16.mxu0 %v8961_v49 }
  0xb0   :  { %1868 = vmatprep.subr.bf16.mxu1 %v8964_v50 }
  0xb2   :  { %1826 = vmatpush1.bf16.msra.mxu0 %v8959_v51 }
  0xb3   :  { %1869 = vmatpush1.bf16.msra.mxu1 %v8962_v52  ;;  %1827 = vmatprep.subr.bf16.mxu0 %v8967_v53 }
  0xb4   :  { %1870 = vmatprep.subr.bf16.mxu1 %v8970_v54 }
  0xb6   :  { %1828 = vmatpush1.bf16.msra.mxu0 %v8965_v55 }
  0xb7   :  { %1871 = vmatpush1.bf16.msra.mxu1 %v8968_v56  ;;  %1829 = vmatprep.subr.bf16.mxu0 %v8973_v57 }
  0xb8   :  { %1872 = vmatprep.subr.bf16.mxu1 %v8976_v58 }
  0xba   :  { %1830 = vmatpush1.bf16.msra.mxu0 %v8971_v59 }
  0xbb   :  { %1873 = vmatpush1.bf16.msra.mxu1 %v8974_v60  ;;  %1831 = vmatprep.subr.bf16.mxu0 %v8979_v61 }
  0xbc   :  { %1874 = vmatprep.subr.bf16.mxu1 %v8982_v62 }
  0xbe   :  { %1832 = vmatpush1.bf16.msra.mxu0 %v8977_v63 }
  0xbf   :  { %1875 = vmatpush1.bf16.msra.mxu1 %v8980_v0  ;;  %1833 = vmatprep.subr.bf16.mxu0 %v8985_v1 }
  0xc0   :  { %1876 = vmatprep.subr.bf16.mxu1 %v8988_v2 }
  0xc2   :  { %1834 = vmatpush1.bf16.msra.mxu0 %v8983_v4 }
  0xc3   :  { %1877 = vmatpush1.bf16.msra.mxu1 %v8986_v6  ;;  %1905 = vmatprep.subr.bf16.mxu0 %v8991_v7 }
  0xc4   :  { %8209 = vmatprep.subr.bf16.mxu1 %v9379_v42 }
  0xc5   :  { %1852 = vmatmul.mubr.bf16.vlgmr.msra.gmra.mrb[20].mxu0 %v9842_v5 }
  0xc6   :  { %1895 = vmatmul.mubr.bf16.vlgmr.msra.gmra.mrb[20].mxu1 %v9842_v5  ;;  %1906 = vmatpush1.bf16.msra.mxu0 %v8989_v8 }
  0xc7   :  { %8210 = vmatpush3.bf16.msra.mxu1 %v8992_v9  ;;  %1907 = vmatprep.subr.bf16.mxu0 %v8995_v10 }
  0xc8   :  { %8211 = vmatprep.subr.bf16.mxu1 %v9379_v42  ;;  %1937 = vmatprep.mubr.bf16.mxu0 %v12922_v3 }
  0xc9   :  { %8225 = vmatprep.mubr.msk.bf16.mxu1 %vm9380_vm0, %v9379_v42 }
  0xca   :  { %1908 = vmatpush1.bf16.msra.mxu0 %v8993_v11 }
  0xcb   :  { %8212 = vmatpush3.bf16.msra.mxu1 %v8996_v12  ;;  %1909 = vmatprep.subr.bf16.mxu0 %v8999_v38 }
  0xcc   :  { %8213 = vmatprep.subr.bf16.mxu1 %v9379_v42 }
  0xce   :  { %1910 = vmatpush1.bf16.msra.mxu0 %v8997_v13 }
  0xcf   :  { %8214 = vmatpush3.bf16.msra.mxu1 %v9000_v14  ;;  %1911 = vmatprep.subr.bf16.mxu0 %v9003_v15 }
  0xd0   :  { %8215 = vmatprep.subr.bf16.mxu1 %v9379_v42 }
  0xd2   :  { %1912 = vmatpush1.bf16.msra.mxu0 %v9001_v16 }
  0xd3   :  { %8216 = vmatpush3.bf16.msra.mxu1 %v9004_v17  ;;  %1913 = vmatprep.subr.bf16.mxu0 %v9007_v18 }
  0xd4   :  { %8217 = vmatprep.subr.bf16.mxu1 %v9379_v42 }
  0xd6   :  { %1914 = vmatpush1.bf16.msra.mxu0 %v9005_v19 }
  0xd7   :  { %8218 = vmatpush3.bf16.msra.mxu1 %v9008_v20  ;;  %1915 = vmatprep.subr.bf16.mxu0 %v9011_v21 }
  0xd8   :  { %8219 = vmatprep.subr.bf16.mxu1 %v9379_v42 }
  0xda   :  { %1916 = vmatpush1.bf16.msra.mxu0 %v9009_v22 }
  0xdb   :  { %8220 = vmatpush3.bf16.msra.mxu1 %v9012_v23  ;;  %1917 = vmatprep.subr.bf16.mxu0 %v9015_v24 }
  0xdc   :  { %8221 = vmatprep.subr.bf16.mxu1 %v9379_v42 }
  0xde   :  { %1918 = vmatpush1.bf16.msra.mxu0 %v9013_v25 }
  0xdf   :  { %8222 = vmatpush3.bf16.msra.mxu1 %v9016_v26  ;;  %1919 = vmatprep.subr.bf16.mxu0 %v9019_v27 }
  0xe0   :  { %8223 = vmatprep.subr.bf16.mxu1 %v9379_v42 }
  0xe1   :  { %16 = vsyncpa [#allocation4], 0  ;;  %v9021_v31 = vld [vmem:[%s12916_s5] ss:$8 sps:$4 sm:$0xff]   ;;  %v9026_v32 = vld [vmem:[%s12916_s5 + $0x14] ss:$8 sps:$4 sm:$0xff]   ;;  %v12921_v45 = vlaneseq }
  0xe2   :  { %1920 = vmatpush1.bf16.msra.mxu0 %v9017_v28  ;;  %v9024_v42 = vld [vmem:[%s12916_s5 + $0x10] ss:$8 sps:$4 sm:$0xff]   ;;  %v9029_v33 = vld [vmem:[%s12916_s5 + $0x24] ss:$8 sps:$4 sm:$0xff]   ;;  %v9069_v35 = vld [vmem:[%s12916_s5 + $0x300] ss:$8 sps:$4 sm:$0xff]  }
  0xe3   :  { %8224 = vmatpush3.bf16.msra.mxu1 %v9020_v29  ;;  %v9071_v34 = vld [vmem:[%s12916_s5 + $0x304] ss:$8 sps:$4 sm:$0xff]   ;;  %v9032_v36 = vld [vmem:[%s12916_s5 + $0x34] ss:$8 sps:$4 sm:$0xff]   ;;  %v9072_v37 = vld [vmem:[%s12916_s5 + $0x310] ss:$8 sps:$4 sm:$0xff]  }
  0xe4   :  { %5862 = vmatprep.subr.bf16.mxu1 %v9023_v30  ;;  %6441 = vmatprep.subr.bf16.mxu0 %v9071_v34  ;;  %v9074_v39 = vld [vmem:[%s12916_s5 + $0x314] ss:$8 sps:$4 sm:$0xff]   ;;  %v9077_v40 = vld [vmem:[%s12916_s5 + $0x324] ss:$8 sps:$4 sm:$0xff]   ;;  %v9030_v41 = vld [vmem:[%s12916_s5 + $0x30] ss:$8 sps:$4 sm:$0xff]  }
  0xe5   :  { %1938 = vmatmul.mubr.bf16.vlgmr.msra.gmra.mrb[24].mxu0 %v9842_v5  ;;  %v9035_v43 = vld [vmem:[%s12916_s5 + $0x44] ss:$8 sps:$4 sm:$0xff]   ;;  %v9075_v44 = vld [vmem:[%s12916_s5 + $0x320] ss:$8 sps:$4 sm:$0xff]   ;;  %v9381_v46 = vmov 1966171168  }
  0xe6   :  { %8226 = vmatmul.mubr.bf16.vlgmr.msra.gmra.mrb[24].mxu1 %v9842_v5  ;;  %v9027_v5 = vld [vmem:[%s12916_s5 + $0x20] ss:$8 sps:$4 sm:$0xff]   ;;  %6442 = vmatpush1.bf16.msra.mxu0 %v9069_v35  ;;  %v2024_v47 = vunpack.c.l.s4 %v9381_v46  ;;  %v9038_v49 = vld [vmem:[%s12916_s5 + $0x54] ss:$8 sps:$4 sm:$0xff]   ;;  %v9078_v50 = vld [vmem:[%s12916_s5 + $0x330] ss:$8 sps:$4 sm:$0xff]  }
  0xe7   :  { %5863 = vmatpush1.bf16.msra.mxu1 %v9021_v31  ;;  %6443 = vmatprep.subr.bf16.mxu0 %v9074_v39  ;;  %v9033_v48 = vld [vmem:[%s12916_s5 + $0x40] ss:$8 sps:$4 sm:$0xff]   ;;  %v9080_v51 = vld [vmem:[%s12916_s5 + $0x334] ss:$8 sps:$4 sm:$0xff]   ;;  %v10183_v52 = vshrl.u32 %v12921_v45, 7  ;;  %vm5813_vm1 = vcmask 523264  }
  0xe8   :  { %5864 = vmatprep.subr.bf16.mxu1 %v9026_v32  ;;  %v2025_v53 = vunpack.c.0.s8 %v2024_v47  ;;  %v9083_v54 = vld [vmem:[%s12916_s5 + $0x344] ss:$8 sps:$4 sm:$0xff]   ;;  %v9036_v55 = vld [vmem:[%s12916_s5 + $0x50] ss:$8 sps:$4 sm:$0xff]   ;;  %v9081_v57 = vld [vmem:[%s12916_s5 + $0x340] ss:$8 sps:$4 sm:$0xff]  }
  0xe9   :  { %13014 = vst [vmem:[#allocation6_spill] sm:$0xff] %v10183_v52  ;;  %v9041_v56 = vld [vmem:[%s12916_s5 + $0x64] ss:$8 sps:$4 sm:$0xff]   ;;  %v9039_v7 = vld [vmem:[%s12916_s5 + $0x60] ss:$8 sps:$4 sm:$0xff]   ;;  %vm7353_vm2 = vcmask 588800  }
  0xea   :  { %6444 = vmatpush1.bf16.msra.mxu0 %v9072_v37  ;;  %v10198_v60 = vsub.s32 %v2025_v53, %v10183_v52  ;;  %v9044_v10 = vld [vmem:[%s12916_s5 + $0x74] ss:$8 sps:$4 sm:$0xff]   ;;  %v9084_v15 = vld [vmem:[%s12916_s5 + $0x350] ss:$8 sps:$4 sm:$0xff]   ;;  %v9089_v20 = vld [vmem:[%s12916_s5 + $0x364] ss:$8 sps:$4 sm:$0xff]  }
  0xeb   :  { %5865 = vmatpush1.bf16.msra.mxu1 %v9024_v42  ;;  %6445 = vmatprep.subr.bf16.mxu0 %v9077_v40  ;;  %v9086_v11 = vld [vmem:[%s12916_s5 + $0x354] ss:$8 sps:$4 sm:$0xff]   ;;  %v9042_v25 = vld [vmem:[%s12916_s5 + $0x70] ss:$8 sps:$4 sm:$0xff]   ;;  %v9047_v30 = vld [vmem:[%s12916_s5 + $0x84] ss:$8 sps:$4 sm:$0xff]  }
  0xec   :  { %5866 = vmatprep.subr.bf16.mxu1 %v9029_v33  ;;  %v9087_v31 = vld [vmem:[%s12916_s5 + $0x360] ss:$8 sps:$4 sm:$0xff]   ;;  %v9090_v37 = vld [vmem:[%s12916_s5 + $0x370] ss:$8 sps:$4 sm:$0xff]   ;;  %v9095_v39 = vld [vmem:[%s12916_s5 + $0x384] ss:$8 sps:$4 sm:$0xff]  }
  0xed   :  { %v9045_v35 = vld [vmem:[%s12916_s5 + $0x80] ss:$8 sps:$4 sm:$0xff]   ;;  %v9048_v40 = vld [vmem:[%s12916_s5 + $0x90] ss:$8 sps:$4 sm:$0xff]   ;;  %v9056_v46 = vld [vmem:[%s12916_s5 + $0xb4] ss:$8 sps:$4 sm:$0xff]  }
  0xee   :  { %6446 = vmatpush1.bf16.msra.mxu0 %v9075_v44  ;;  %v9051_v44 = vld [vmem:[%s12916_s5 + $0xa0] ss:$8 sps:$4 sm:$0xff]   ;;  %v9098_v47 = vld [vmem:[%s12916_s5 + $0x394] ss:$8 sps:$4 sm:$0xff]   ;;  %vm7567_vm3 = vcmask 130112   ;;  %vm7704_vm4 = vcmask 1041409  }
  0xef   :  { %5867 = vmatpush1.bf16.msra.mxu1 %v9027_v5  ;;  %6447 = vmatprep.subr.bf16.mxu0 %v9080_v51  ;;  %v9050_v5 = vld [vmem:[%s12916_s5 + $0x94] ss:$8 sps:$4 sm:$0xff]   ;;  %v9059_v51 = vld [vmem:[%s12916_s5 + $0xc4] ss:$8 sps:$4 sm:$0xff]   ;;  %v9099_v53 = vld [vmem:[%s12916_s5 + $0x3a0] ss:$8 sps:$4 sm:$0xff]  }
  0xf0   :  { %5868 = vmatprep.subr.bf16.mxu1 %v9032_v36  ;;  %v9092_v36 = vld [vmem:[%s12916_s5 + $0x374] ss:$8 sps:$4 sm:$0xff]   ;;  %vm7706_vm5 = vcmask 1042434   ;;  %vm7708_vm6 = vcmask 1043459   ;;  %vm7710_vm7 = vcmask 1044484   ;;  %vm7712_vm8 = vcmask 1045509  }
  0xf1   :  { %vm7714_vm9 = vcmask 1046534   ;;  %vm7716_vm10 = vcmask 1047559   ;;  %vm7727_vm11 = vcmask 130048  }
  0xf2   :  { %6448 = vmatpush1.bf16.msra.mxu0 %v9078_v50  ;;  %v9054_v50 = vld [vmem:[%s12916_s5 + $0xb0] ss:$8 sps:$4 sm:$0xff]  }
  0xf3   :  { %5869 = vmatpush1.bf16.msra.mxu1 %v9030_v41  ;;  %6449 = vmatprep.subr.bf16.mxu0 %v9083_v54  ;;  %v9053_v41 = vld [vmem:[%s12916_s5 + $0xa4] ss:$8 sps:$4 sm:$0xff]   ;;  %v9057_v54 = vld [vmem:[%s12916_s5 + $0xc0] ss:$8 sps:$4 sm:$0xff]  }
  0xf4   :  { %5870 = vmatprep.subr.bf16.mxu1 %v9035_v43  ;;  %v9093_v43 = vld [vmem:[%s12916_s5 + $0x380] ss:$8 sps:$4 sm:$0xff]  }
  0xf6   :  { %6450 = vmatpush1.bf16.msra.mxu0 %v9081_v57  ;;  %v9102_v57 = vld [vmem:[%s12916_s5 + $0x3b0] ss:$8 sps:$4 sm:$0xff]  }
  0xf7   :  { %5871 = vmatpush1.bf16.msra.mxu1 %v9033_v48  ;;  %6451 = vmatprep.subr.bf16.mxu0 %v9086_v11  ;;  %v9096_v48 = vld [vmem:[%s12916_s5 + $0x390] ss:$8 sps:$4 sm:$0xff]  }
  0xf8   :  { %5872 = vmatprep.subr.bf16.mxu1 %v9038_v49  ;;  %v713_v58 = vpop.f32.mrb[0].mxu0  ;;  %v9101_v49 = vld [vmem:[%s12916_s5 + $0x3a4] ss:$8 sps:$4 sm:$0xff]  }
  0xf9   :  { %v756_v59 = vpop.f32.mrb[0].mxu1  ;;  %v715_v61 = vpop.f32.mrb[1].mxu0 }
  0xfa   :  { %v758_v62 = vpop.f32.mrb[1].mxu1  ;;  %v2015_v63 = vcombine.low %v713_v58, %v715_v61  ;;  %v2016_v0 = vcombine.high %v713_v58, %v715_v61  ;;  %v717_v4 = vpop.f32.mrb[2].mxu0  ;;  %6452 = vmatpush1.bf16.msra.mxu0 %v9084_v15  ;;  %v9107_v58 = vld [vmem:[%s12916_s5 + $0x3c4] ss:$8 sps:$4 sm:$0xff]  }
  0xfb   :  { %v2017_v1 = vcombine.low %v756_v59, %v758_v62  ;;  %v2018_v2 = vcombine.high %v756_v59, %v758_v62  ;;  %v760_v6 = vpop.f32.mrb[2].mxu1  ;;  %5873 = vmatpush1.bf16.msra.mxu1 %v9036_v55  ;;  %v719_v8 = vpop.f32.mrb[3].mxu0  ;;  %6453 = vmatprep.subr.bf16.mxu0 %v9089_v20  ;;  %v9062_v55 = vld [vmem:[%s12916_s5 + $0xd4] ss:$8 sps:$4 sm:$0xff]   ;;  %v9060_v59 = vld [vmem:[%s12916_s5 + $0xd0] ss:$8 sps:$4 sm:$0xff]  }
  0xfc   :  { %v762_v9 = vpop.f32.mrb[3].mxu1  ;;  %5874 = vmatprep.subr.bf16.mxu1 %v9041_v56  ;;  %v10210_v12 = vrot.slane %v2015_v63, %v10198_v60  ;;  %v10213_v38 = vrot.slane %v2016_v0, %v10198_v60  ;;  %v2268_v16 = vcombine.low %v717_v4, %v719_v8  ;;  %v2269_v17 = vcombine.high %v717_v4, %v719_v8  ;;  %v9104_v56 = vld [vmem:[%s12916_s5 + $0x3b4] ss:$8 sps:$4 sm:$0xff]   ;;  %v9065_v61 = vld [vmem:[%s12916_s5 + $0xe4] ss:$8 sps:$4 sm:$0xff]  }
  0xfd   :  { %v10216_v13 = vrot.slane %v2017_v1, %v10198_v60  ;;  %v10219_v14 = vrot.slane %v2018_v2, %v10198_v60  ;;  %v2270_v18 = vcombine.low %v760_v6, %v762_v9  ;;  %v2271_v19 = vcombine.high %v760_v6, %v762_v9  ;;  %v9105_v0 = vld [vmem:[%s12916_s5 + $0x3c0] ss:$8 sps:$4 sm:$0xff]  }
  0xfe   :  { %v10239_v26 = vrot.slane %v2268_v16, %v10198_v60  ;;  %v10242_v27 = vrot.slane %v2269_v17, %v10198_v60  ;;  %6454 = vmatpush1.bf16.msra.mxu0 %v9087_v31  ;;  %v9063_v16 = vld [vmem:[%s12916_s5 + $0xe0] ss:$8 sps:$4 sm:$0xff]  }
  0xff   :  { %v2079_v21 = vcombine.low %v10210_v12, %v10216_v13  ;;  %v2080_v22 = vcombine.high %v10210_v12, %v10216_v13  ;;  %v2081_v23 = vcombine.low %v10213_v38, %v10219_v14  ;;  %v2082_v24 = vcombine.high %v10213_v38, %v10219_v14  ;;  %5875 = vmatpush1.bf16.msra.mxu1 %v9039_v7  ;;  %v9068_v12 = vld [vmem:[%s12916_s5 + $0xf4] ss:$8 sps:$4 sm:$0xff]  }
 0x100   :  { %v10245_v28 = vrot.slane %v2270_v18, %v10198_v60  ;;  %v10248_v29 = vrot.slane %v2271_v19, %v10198_v60  ;;  %5876 = vmatprep.subr.bf16.mxu1 %v9044_v10  ;;  %6455 = vmatprep.subr.bf16.mxu0 %v9092_v36 }
 0x101   :  { %v2093_v1 = vrot.slane %v2079_v21, %v10198_v60  ;;  %v2100_v2 = vrot.slane %v2081_v23, %v10198_v60  ;;  %v2107_v17 = vrot.slane %v2080_v22, %v10198_v60  ;;  %v2114_v18 = vrot.slane %v2082_v24, %v10198_v60  ;;  %v9110_v24 = vld [vmem:[%s12916_s5 + $0x3d4] ss:$8 sps:$4 sm:$0xff]  }
 0x102   :  { %v2332_v32 = vcombine.low %v10239_v26, %v10245_v28  ;;  %v2333_v42 = vcombine.high %v10239_v26, %v10245_v28  ;;  %v2334_v33 = vcombine.low %v10242_v27, %v10248_v29  ;;  %v2335_v34 = vcombine.high %v10242_v27, %v10248_v29  ;;  %6456 = vmatpush1.bf16.msra.mxu0 %v9090_v37  ;;  %v9122_v26 = vld [vmem:[%s12916_s5 + $0x404] ss:$8 sps:$4 sm:$0xff]  }
 0x103   :  { %5877 = vmatpush1.bf16.msra.mxu1 %v9042_v25  ;;  %6457 = vmatprep.subr.bf16.mxu0 %v9095_v39  ;;  %v9066_v39 = vld [vmem:[%s12916_s5 + $0xf0] ss:$8 sps:$4 sm:$0xff]  }
 0x104   :  { %5878 = vmatprep.subr.bf16.mxu1 %v9047_v30  ;;  %v2346_v19 = vrot.slane %v2332_v32, %v10198_v60  ;;  %v2353_v20 = vrot.slane %v2334_v33, %v10198_v60  ;;  %v9108_v33 = vld [vmem:[%s12916_s5 + $0x3d0] ss:$8 sps:$4 sm:$0xff]  }
 0x106   :  { %6458 = vmatpush1.bf16.msra.mxu0 %v9093_v43 }
 0x107   :  { %5879 = vmatpush1.bf16.msra.mxu1 %v9045_v35  ;;  %6459 = vmatprep.subr.bf16.mxu0 %v9098_v47 }
 0x108   :  { %5880 = vmatprep.subr.bf16.mxu1 %v9050_v5 }
 0x10a   :  { %6460 = vmatpush1.bf16.msra.mxu0 %v9096_v48 }
 0x10b   :  { %5881 = vmatpush1.bf16.msra.mxu1 %v9048_v40  ;;  %6461 = vmatprep.subr.bf16.mxu0 %v9101_v49 }
 0x10c   :  { %5882 = vmatprep.subr.bf16.mxu1 %v9053_v41 }
 0x10e   :  { %6462 = vmatpush1.bf16.msra.mxu0 %v9099_v53 }
 0x10f   :  { %5883 = vmatpush1.bf16.msra.mxu1 %v9051_v44  ;;  %6463 = vmatprep.subr.bf16.mxu0 %v9104_v56  ;;  %v9111_v56 = vld [vmem:[%s12916_s5 + $0x3e0] ss:$8 sps:$4 sm:$0xff]  }
 0x110   :  { %5884 = vmatprep.subr.bf16.mxu1 %v9056_v46  ;;  %v9113_v46 = vld [vmem:[%s12916_s5 + $0x3e4] ss:$8 sps:$4 sm:$0xff]  }
 0x112   :  { %6464 = vmatpush1.bf16.msra.mxu0 %v9102_v57 }
 0x113   :  { %5885 = vmatpush1.bf16.msra.mxu1 %v9054_v50  ;;  %6465 = vmatprep.subr.bf16.mxu0 %v9107_v58 }
 0x114   :  { %5886 = vmatprep.subr.bf16.mxu1 %v9059_v51 }
 0x116   :  { %6466 = vmatpush1.bf16.msra.mxu0 %v9105_v0 }
 0x117   :  { %5887 = vmatpush1.bf16.msra.mxu1 %v9057_v54  ;;  %6467 = vmatprep.subr.bf16.mxu0 %v9110_v24 }
 0x118   :  { %5888 = vmatprep.subr.bf16.mxu1 %v9062_v55  ;;  %v799_v62 = vpop.f32.mrb[4].mxu0 }
 0x119   :  { %v842_v63 = vpop.f32.mrb[4].mxu1  ;;  %v801_v4 = vpop.f32.mrb[5].mxu0 }
 0x11a   :  { %v844_v6 = vpop.f32.mrb[5].mxu1  ;;  %v2019_v7 = vcombine.low %v799_v62, %v801_v4  ;;  %v2020_v8 = vcombine.high %v799_v62, %v801_v4  ;;  %v803_v11 = vpop.f32.mrb[6].mxu0  ;;  %6468 = vmatpush1.bf16.msra.mxu0 %v9108_v33 }
 0x11b   :  { %v2021_v9 = vcombine.low %v842_v63, %v844_v6  ;;  %v2022_v10 = vcombine.high %v842_v63, %v844_v6  ;;  %v846_v15 = vpop.f32.mrb[6].mxu1  ;;  %5889 = vmatpush1.bf16.msra.mxu1 %v9060_v59  ;;  %v805_v21 = vpop.f32.mrb[7].mxu0  ;;  %6469 = vmatprep.subr.bf16.mxu0 %v9113_v46  ;;  %v9116_v6 = vld [vmem:[%s12916_s5 + $0x3f4] ss:$8 sps:$4 sm:$0xff]  }
 0x11c   :  { %v848_v23 = vpop.f32.mrb[7].mxu1  ;;  %5890 = vmatprep.subr.bf16.mxu1 %v9065_v61  ;;  %v2057_v38 = vrot.slane %v2019_v7, %v10198_v60  ;;  %v2064_v13 = vrot.slane %v2020_v8, %v10198_v60  ;;  %v2272_v25 = vcombine.low %v803_v11, %v805_v21  ;;  %v2273_v30 = vcombine.high %v803_v11, %v805_v21 }
 0x11d   :  { %v2071_v14 = vrot.slane %v2021_v9, %v10198_v60  ;;  %v2078_v22 = vrot.slane %v2022_v10, %v10198_v60  ;;  %v2274_v31 = vcombine.low %v846_v15, %v848_v23  ;;  %v2275_v32 = vcombine.high %v846_v15, %v848_v23  ;;  %v9119_v9 = vld [vmem:[%s12916_s5 + $0x104] ss:$8 sps:$4 sm:$0xff]   ;;  %v9114_v15 = vld [vmem:[%s12916_s5 + $0x3f0] ss:$8 sps:$4 sm:$0xff]  }
 0x11e   :  { %v2310_v40 = vrot.slane %v2272_v25, %v10198_v60  ;;  %v2317_v41 = vrot.slane %v2273_v30, %v10198_v60  ;;  %v2360_v10 = vrot.slane %v2333_v42, %v10198_v60  ;;  %v2367_v11 = vrot.slane %v2335_v34, %v10198_v60  ;;  %6470 = vmatpush1.bf16.msra.mxu0 %v9111_v56 }
 0x11f   :  { %v2083_v35 = vcombine.low %v2057_v38, %v2071_v14  ;;  %v2084_v5 = vcombine.high %v2057_v38, %v2071_v14  ;;  %v2085_v36 = vcombine.low %v2064_v13, %v2078_v22  ;;  %v2086_v37 = vcombine.high %v2064_v13, %v2078_v22  ;;  %5891 = vmatpush1.bf16.msra.mxu1 %v9063_v16 }
 0x120   :  { %v2324_v43 = vrot.slane %v2274_v31, %v10198_v60  ;;  %v2331_v44 = vrot.slane %v2275_v32, %v10198_v60  ;;  %5892 = vmatprep.subr.bf16.mxu1 %v9068_v12  ;;  %6471 = vmatprep.subr.bf16.mxu0 %v9116_v6  ;;  %v10463_v56 = vsub.s32 0, %v10183_v52  ;;  %v10466_v6 = vsub.s32 1, %v10183_v52 }
 0x121   :  { %v2121_v47 = vrot.slane %v2083_v35, %v10198_v60  ;;  %v2128_v48 = vrot.slane %v2085_v36, %v10198_v60  ;;  %v2135_v49 = vrot.slane %v2084_v5, %v10198_v60  ;;  %v2142_v50 = vrot.slane %v2086_v37, %v10198_v60 }
 0x122   :  { %v2336_v51 = vcombine.low %v2310_v40, %v2324_v43  ;;  %v2337_v53 = vcombine.high %v2310_v40, %v2324_v43  ;;  %v2338_v54 = vcombine.low %v2317_v41, %v2331_v44  ;;  %v2339_v55 = vcombine.high %v2317_v41, %v2331_v44  ;;  %6472 = vmatpush1.bf16.msra.mxu0 %v9114_v15 }
 0x123   :  { %v10393_v57 = vcombine.low %v2093_v1, %v2121_v47  ;;  %v10395_v58 = vcombine.high %v2093_v1, %v2121_v47  ;;  %v10397_v59 = vcombine.low %v2100_v2, %v2128_v48  ;;  %v10399_v61 = vcombine.high %v2100_v2, %v2128_v48  ;;  %5893 = vmatpush1.bf16.msra.mxu1 %v9066_v39 }
 0x124   :  { %v10401_v62 = vcombine.low %v2107_v17, %v2135_v49  ;;  %v10403_v63 = vcombine.high %v2107_v17, %v2135_v49  ;;  %v10405_v0 = vcombine.low %v2114_v18, %v2142_v50  ;;  %v10407_v4 = vcombine.high %v2114_v18, %v2142_v50  ;;  %6055 = vmatprep.subr.bf16.mxu1 %v9119_v9 }
 0x125   :  { %13015 = vst [vmem:[#allocation7_spill] sm:$0xff] %v10393_v57  ;;  %13016 = vst [vmem:[#allocation8_spill] sm:$0xff] %v10395_v58  ;;  %v2374_v1 = vrot.slane %v2336_v51, %v10198_v60  ;;  %v2381_v7 = vrot.slane %v2338_v54, %v10198_v60  ;;  %v2388_v2 = vrot.slane %v2337_v53, %v10198_v60  ;;  %6634 = vmatprep.subr.bf16.mxu0 %v9122_v26 }
 0x126   :  { %13017 = vst [vmem:[#allocation9_spill] sm:$0xff] %v10397_v59  ;;  %13018 = vst [vmem:[#allocation10_spill] sm:$0xff] %v10399_v61  ;;  %v2395_v8 = vrot.slane %v2339_v55, %v10198_v60  ;;  %v10460_v55 = vld [vmem:[%s12915_s4] sm:$0xff]  ;;  %v10484_v9 = vrot.slane %v10401_v62, %v10466_v6  ;;  %v10496_v15 = vrot.slane %v10395_v58, %v10463_v56 }
 0x127   :  { %13019 = vst [vmem:[#allocation11_spill] sm:$0xff] %v10401_v62  ;;  %13020 = vst [vmem:[#allocation12_spill] sm:$0xff] %v10403_v63  ;;  %v10430_v16 = vcombine.low %v2346_v19, %v2374_v1  ;;  %v10432_v17 = vcombine.high %v2346_v19, %v2374_v1  ;;  %v10434_v18 = vcombine.low %v2353_v20, %v2381_v7 }
 0x128   :  { %13021 = vst [vmem:[#allocation13_spill] sm:$0xff] %v10405_v0  ;;  %13022 = vst [vmem:[#allocation14_spill] sm:$0xff] %v10407_v4  ;;  %v10436_v21 = vcombine.high %v2353_v20, %v2381_v7  ;;  %v10441_v27 = vcombine.low %v2360_v10, %v2388_v2  ;;  %v10443_v28 = vcombine.high %v2360_v10, %v2388_v2 }
 0x129   :  { %13023 = vst [vmem:[#allocation15_spill] sm:$0xff] %v10430_v16  ;;  %13024 = vst [vmem:[#allocation16_spill] sm:$0xff] %v10432_v17  ;;  %v10445_v29 = vcombine.low %v2367_v11, %v2395_v8  ;;  %v10447_v42 = vcombine.high %v2367_v11, %v2395_v8  ;;  %v10470_v1 = vrot.slane %v10460_v55, %v10463_v56 }
 0x12a   :  { %13025 = vst [vmem:[#allocation17_spill] sm:$0xff] %v10434_v18  ;;  %13026 = vst [vmem:[#allocation18_spill] sm:$0xff] %v10436_v21  ;;  %v1104_v7 = vrot.slane %v10460_v55, %v10466_v6  ;;  %v10476_v2 = vrot.slane %v10393_v57, %v10466_v6  ;;  %v10480_v8 = vrot.slane %v10393_v57, %v10463_v56 }
 0x12b   :  { %13027 = vst [vmem:[#allocation19_spill] sm:$0xff] %v10441_v27  ;;  %13028 = vst [vmem:[#allocation20_spill] sm:$0xff] %v10443_v28  ;;  %v10488_v10 = vrot.slane %v10401_v62, %v10463_v56  ;;  %v10492_v11 = vrot.slane %v10395_v58, %v10466_v6  ;;  %v10500_v26 = vrot.slane %v10403_v63, %v10466_v6 }
 0x12c   :  { %13029 = vst [vmem:[#allocation21_spill] sm:$0xff] %v10445_v29  ;;  %13030 = vst [vmem:[#allocation22_spill] sm:$0xff] %v10447_v42 }
 0x12d   :  { %13031 = vst [vmem:[#allocation23_spill] sm:$0xff] %v10463_v56  ;;  %13032 = vst [vmem:[#allocation24_spill] sm:$0xff] %v10466_v6 }
 0x138   :  { %v885_v34 = vpop.f32.mrb[8].mxu0 }
 0x139   :  { %v928_v19 = vpop.f32.mrb[8].mxu1  ;;  %v887_v20 = vpop.f32.mrb[9].mxu0 }
 0x13a   :  { %v930_v23 = vpop.f32.mrb[9].mxu1  ;;  %v2151_v12 = vcombine.low %v885_v34, %v887_v20  ;;  %v2152_v38 = vcombine.high %v885_v34, %v887_v20  ;;  %v889_v22 = vpop.f32.mrb[10].mxu0  ;;  %v10504_v34 = vrot.slane %v10403_v63, %v10463_v56  ;;  %v10512_v20 = vrot.slane %v10397_v59, %v10463_v56 }
 0x13b   :  { %v2153_v13 = vcombine.low %v928_v19, %v930_v23  ;;  %v2154_v14 = vcombine.high %v928_v19, %v930_v23  ;;  %v932_v24 = vpop.f32.mrb[10].mxu1  ;;  %v891_v25 = vpop.f32.mrb[11].mxu0  ;;  %v10508_v19 = vrot.slane %v10397_v59, %v10466_v6  ;;  %v10516_v23 = vrot.slane %v10405_v0, %v10466_v6 }
 0x13c   :  { %v934_v30 = vpop.f32.mrb[11].mxu1  ;;  %v2162_v31 = vrot.slane %v2151_v12, %v10198_v60  ;;  %v2169_v32 = vrot.slane %v2152_v38, %v10198_v60  ;;  %v2404_v5 = vcombine.low %v889_v22, %v891_v25  ;;  %v2405_v36 = vcombine.high %v889_v22, %v891_v25 }
 0x13d   :  { %v2176_v33 = vrot.slane %v2153_v13, %v10198_v60  ;;  %v2183_v35 = vrot.slane %v2154_v14, %v10198_v60  ;;  %v2406_v37 = vcombine.low %v932_v24, %v934_v30  ;;  %v2407_v39 = vcombine.high %v932_v24, %v934_v30 }
 0x13e   :  { %v2415_v46 = vrot.slane %v2404_v5, %v10198_v60  ;;  %v2422_v47 = vrot.slane %v2405_v36, %v10198_v60  ;;  %v10520_v12 = vrot.slane %v10405_v0, %v10463_v56  ;;  %v10524_v38 = vrot.slane %v10399_v61, %v10466_v6 }
 0x13f   :  { %v2198_v40 = vcombine.low %v2162_v31, %v2176_v33  ;;  %v2199_v41 = vcombine.high %v2162_v31, %v2176_v33  ;;  %v2200_v43 = vcombine.low %v2169_v32, %v2183_v35  ;;  %v2201_v44 = vcombine.high %v2169_v32, %v2183_v35 }
 0x140   :  { %v2429_v48 = vrot.slane %v2406_v37, %v10198_v60  ;;  %v2436_v49 = vrot.slane %v2407_v39, %v10198_v60  ;;  %v10528_v13 = vrot.slane %v10399_v61, %v10463_v56  ;;  %v10532_v14 = vrot.slane %v10407_v4, %v10466_v6 }
 0x141   :  { %v10536_v22 = vrot.slane %v10407_v4, %v10463_v56  ;;  %v10540_v24 = vrot.slane %v10430_v16, %v10466_v6  ;;  %v10544_v25 = vrot.slane %v10430_v16, %v10463_v56  ;;  %v10548_v30 = vrot.slane %v10441_v27, %v10466_v6 }
 0x142   :  { %v2451_v50 = vcombine.low %v2415_v46, %v2429_v48  ;;  %v2452_v51 = vcombine.high %v2415_v46, %v2429_v48  ;;  %v2453_v53 = vcombine.low %v2422_v47, %v2436_v49  ;;  %v2454_v54 = vcombine.high %v2422_v47, %v2436_v49 }
 0x143   :  { %v10552_v31 = vrot.slane %v10441_v27, %v10463_v56  ;;  %v10556_v32 = vrot.slane %v10432_v17, %v10466_v6  ;;  %v10560_v33 = vrot.slane %v10432_v17, %v10463_v56  ;;  %v10564_v35 = vrot.slane %v10443_v28, %v10466_v6 }
 0x144   :  { %v2217_v5 = vrot.slane %v2200_v43, %v10198_v60  ;;  %v2224_v36 = vrot.slane %v2199_v41, %v10198_v60  ;;  %v2231_v37 = vrot.slane %v2201_v44, %v10198_v60  ;;  %v10571_v47 = vrot.slane %v10443_v28, %v10463_v56 }
 0x145   :  { %v2470_v48 = vrot.slane %v2453_v53, %v10198_v60  ;;  %v2210_v3 = vrot.slane %v2198_v40, %v10198_v60  ;;  %v2477_v43 = vrot.slane %v2452_v51, %v10198_v60  ;;  %v2484_v41 = vrot.slane %v2454_v54, %v10198_v60 }
 0x146   :  { %v2463_v4 = vrot.slane %v2451_v50, %v10198_v60 }
 0x158   :  { %v971_v39 = vpop.f32.mrb[12].mxu0 }
 0x159   :  { %v1724_v46 = vpop.f32.mrb[12].mxu1  ;;  %v2155_v49 = vcombine.high %v971_v39, %v971_v39  ;;  %v2190_v45 = vrot.slane %v971_v39, %v10198_v60  ;;  %v8207_v17 = vpop.f32.mrb[13].mxu0 }
 0x15a   :  { %v1726_v27 = vpop.f32.mrb[13].mxu1  ;;  %v974_v16 = vpop.f32.mrb[14].mxu0  ;;  %v10584_v17 = vadd.f32 %v1724_v46, %v10470_v1 }
 0x15b   :  { %v10578_v44 = vadd.f32 %v1726_v27, %v1104_v7  ;;  %v1728_v28 = vpop.f32.mrb[14].mxu1  ;;  %v2197_v61 = vrot.slane %v2155_v49, %v10198_v60  ;;  %v2202_v53 = vcombine.high %v2190_v45, %v2190_v45  ;;  %v2238_v0 = vrot.slane %v2190_v45, %v10198_v60  ;;  %v8208_v59 = vpop.f32.mrb[15].mxu0 }
 0x15c   :  { %v2408_v39 = vcombine.high %v974_v16, %v974_v16  ;;  %v1730_v40 = vpop.f32.mrb[15].mxu1  ;;  %v2443_v51 = vrot.slane %v974_v16, %v10198_v60 }
 0x15d   :  { %v10587_v54 = vadd.f32 %v1730_v40, %v1104_v7  ;;  %v3562_v27 = vadd.f32 %v10476_v2, %v10578_v44  ;;  %v2203_v50 = vcombine.high %v2197_v61, %v2197_v61  ;;  %v2245_v63 = vrot.slane %v2197_v61, %v10198_v60 }
 0x15e   :  { %v2252_v49 = vrot.slane %v2202_v53, %v10198_v60  ;;  %v10593_v58 = vcombine.low %v2210_v3, %v2238_v0  ;;  %v10595_v45 = vcombine.high %v2210_v3, %v2238_v0  ;;  %v2450_v59 = vrot.slane %v2408_v39, %v10198_v60 }
 0x15f   :  { %v2455_v46 = vcombine.high %v2443_v51, %v2443_v51  ;;  %v2491_v62 = vrot.slane %v2443_v51, %v10198_v60  ;;  %v2259_v16 = vrot.slane %v2203_v50, %v10198_v60  ;;  %v10600_v7 = vcombine.low %v2217_v5, %v2245_v63 }
 0x160   :  { %13033 = vst [vmem:[#allocation25_spill] sm:$0xff] %v10593_v58  ;;  %v10602_v40 = vcombine.high %v2217_v5, %v2245_v63  ;;  %v10604_v57 = vcombine.low %v2224_v36, %v2252_v49  ;;  %v10606_v61 = vcombine.high %v2224_v36, %v2252_v49  ;;  %v2456_v53 = vcombine.high %v2450_v59, %v2450_v59 }
 0x161   :  { %v2498_v58 = vrot.slane %v2450_v59, %v10198_v60  ;;  %v10610_v3 = vadd.f32 %v1728_v28, %v10470_v1  ;;  %v10612_v0 = vcombine.low %v2231_v37, %v2259_v16  ;;  %v10614_v39 = vcombine.high %v2231_v37, %v2259_v16 }
 0x162   :  { %13034 = vst [vmem:[#allocation26_spill] sm:$0xff] %v10602_v40  ;;  %v2505_v51 = vrot.slane %v2455_v46, %v10198_v60  ;;  %v10617_v50 = vcombine.low %v2463_v4, %v2491_v62  ;;  %v2512_v63 = vrot.slane %v2456_v53, %v10198_v60  ;;  %v10620_v5 = vcombine.high %v2463_v4, %v2491_v62 }
 0x163   :  { %13035 = vst [vmem:[#allocation27_spill] sm:$0xff] %v10612_v0  ;;  %13036 = vst [vmem:[#allocation28_spill] sm:$0xff] %v10614_v39  ;;  %v10622_v36 = vcombine.low %v2470_v48, %v2498_v58  ;;  %v10624_v49 = vcombine.high %v2470_v48, %v2498_v58  ;;  %v3575_v1 = vadd.f32 %v10476_v2, %v10587_v54  ;;  %v3978_v37 = vmax.f32 %v3562_v27, 0.0 }
 0x164   :  { %13037 = vst [vmem:[#allocation29_spill] sm:$0xff] %v10617_v50  ;;  %13038 = vst [vmem:[#allocation30_spill] sm:$0xff] %v10620_v5  ;;  %v10626_v59 = vcombine.low %v2477_v43, %v2505_v51  ;;  %v10628_v28 = vcombine.high %v2477_v43, %v2505_v51  ;;  %v10632_v16 = vcombine.low %v2484_v41, %v2512_v63 }
 0x165   :  { %13039 = vst [vmem:[#allocation31_spill] sm:$0xff] %v10622_v36  ;;  %13040 = vst [vmem:[#allocation32_spill] sm:$0xff] %v10624_v49  ;;  %v10634_v46 = vcombine.high %v2484_v41, %v2512_v63  ;;  %v3561_v60 = vadd.f32 %v10480_v8, %v10584_v17  ;;  %v3574_v62 = vadd.f32 %v10480_v8, %v10610_v3  ;;  %v3991_v58 = vmax.f32 %v3575_v1, 0.0 }
 0x166   :  { %13041 = vst [vmem:[#allocation33_spill] sm:$0xff] %v10626_v59  ;;  %13042 = vst [vmem:[#allocation34_spill] sm:$0xff] %v10628_v28  ;;  %v3588_v4 = vadd.f32 %v10484_v9, %v10578_v44  ;;  %v3601_v48 = vadd.f32 %v10484_v9, %v10587_v54  ;;  %v3587_v2 = vadd.f32 %v10488_v10, %v10584_v17 }
 0x167   :  { %13043 = vst [vmem:[#allocation35_spill] sm:$0xff] %v10632_v16  ;;  %13044 = vst [vmem:[#allocation36_spill] sm:$0xff] %v10634_v46  ;;  %v3977_v43 = vmax.f32 %v3561_v60, 0.0  ;;  %v3990_v27 = vmax.f32 %v3574_v62, 0.0  ;;  %v3600_v41 = vadd.f32 %v10488_v10, %v10610_v3  ;;  %v3614_v53 = vadd.f32 %v10492_v11, %v10578_v44  ;;  %v9117_v46 = vld [vmem:[%s12916_s5 + $0x100] ss:$8 sps:$4 sm:$0xff]  }
 0x168   :  { %v4394_v51 = vpack.c.bf16 %v3991_v58, %v3978_v37  ;;  %v4004_v8 = vmax.f32 %v3588_v4, 0.0  ;;  %v4017_v63 = vmax.f32 %v3601_v48, 0.0  ;;  %v4003_v1 = vmax.f32 %v3587_v2, 0.0  ;;  %v9128_v10 = vld [vmem:[%s12916_s5 + $0x114] ss:$8 sps:$4 sm:$0xff]  }
 0x169   :  { %v4393_v9 = vpack.c.bf16 %v3990_v27, %v3977_v43  ;;  %v4016_v49 = vmax.f32 %v3600_v41, 0.0  ;;  %v3627_v60 = vadd.f32 %v10492_v11, %v10587_v54  ;;  %v4030_v62 = vmax.f32 %v3614_v53, 0.0 }
 0x16a   :  { %5894 = vmatprep.mubr.bf16.mxu1 %v4394_v51  ;;  %v4407_v16 = vpack.c.bf16 %v4017_v63, %v4004_v8  ;;  %v3613_v37 = vadd.f32 %v10496_v15, %v10584_v17  ;;  %v3626_v58 = vadd.f32 %v10496_v15, %v10610_v3  ;;  %v3640_v4 = vadd.f32 %v10500_v26, %v10578_v44  ;;  %v9126_v15 = vld [vmem:[%s12916_s5 + $0x110] ss:$8 sps:$4 sm:$0xff]  }
 0x16b   :  { %5895 = vmatmul.mubr.bf16.vlgmr.msra.gmra.mrb[28].mxu1 %v4393_v9  ;;  %v4406_v48 = vpack.c.bf16 %v4016_v49, %v4003_v1  ;;  %v4043_v2 = vmax.f32 %v3627_v60, 0.0  ;;  %v3653_v11 = vadd.f32 %v10500_v26, %v10587_v54  ;;  %v3639_v43 = vadd.f32 %v10504_v34, %v10584_v17 }
 0x16c   :  { %5904 = vmatprep.mubr.bf16.mxu1 %v4407_v16  ;;  %v4029_v27 = vmax.f32 %v3613_v37, 0.0  ;;  %v4042_v41 = vmax.f32 %v3626_v58, 0.0  ;;  %v4056_v53 = vmax.f32 %v3640_v4, 0.0  ;;  %v3652_v51 = vadd.f32 %v10504_v34, %v10610_v3  ;;  %6056 = vmatpush1.bf16.msra.mxu1 %v9117_v46  ;;  %v9134_v16 = vld [vmem:[%s12916_s5 + $0x124] ss:$8 sps:$4 sm:$0xff]  }
 0x16d   :  { %v4420_v49 = vpack.c.bf16 %v4043_v2, %v4030_v62  ;;  %v4069_v8 = vmax.f32 %v3653_v11, 0.0  ;;  %v4055_v63 = vmax.f32 %v3639_v43, 0.0  ;;  %v3666_v26 = vadd.f32 %v10508_v19, %v10578_v44  ;;  %6057 = vmatprep.subr.bf16.mxu1 %v9128_v10 }
 0x16e   :  { %v10678_v1 = vpack.c.bf16 %v4042_v41, %v4029_v27  ;;  %v4068_v9 = vmax.f32 %v3652_v51, 0.0  ;;  %v3679_v34 = vadd.f32 %v10508_v19, %v10587_v54  ;;  %v3665_v46 = vadd.f32 %v10512_v20, %v10584_v17  ;;  %v9132_v19 = vld [vmem:[%s12916_s5 + $0x120] ss:$8 sps:$4 sm:$0xff]  }
 0x16f   :  { %v10684_v60 = vpack.c.bf16 %v4069_v8, %v4056_v53  ;;  %v4082_v62 = vmax.f32 %v3666_v26, 0.0  ;;  %v3678_v37 = vadd.f32 %v10512_v20, %v10610_v3  ;;  %v3692_v10 = vadd.f32 %v10516_v23, %v10578_v44  ;;  %v9140_v53 = vld [vmem:[%s12916_s5 + $0x134] ss:$8 sps:$4 sm:$0xff]  }
 0x170   :  { %v10690_v58 = vpack.c.bf16 %v4068_v9, %v4055_v63  ;;  %v4095_v4 = vmax.f32 %v3679_v34, 0.0  ;;  %v4081_v2 = vmax.f32 %v3665_v46, 0.0  ;;  %v3705_v11 = vadd.f32 %v10516_v23, %v10587_v54  ;;  %6058 = vmatpush1.bf16.msra.mxu1 %v9126_v15 }
 0x171   :  { %v4094_v43 = vmax.f32 %v3678_v37, 0.0  ;;  %v4108_v27 = vmax.f32 %v3692_v10, 0.0  ;;  %v3691_v20 = vadd.f32 %v10520_v12, %v10584_v17  ;;  %v3704_v41 = vadd.f32 %v10520_v12, %v10610_v3  ;;  %6059 = vmatprep.subr.bf16.mxu1 %v9134_v16 }
 0x172   :  { %v10704_v51 = vpack.c.bf16 %v4095_v4, %v4082_v62  ;;  %v4121_v23 = vmax.f32 %v3705_v11, 0.0  ;;  %v3718_v15 = vadd.f32 %v10524_v38, %v10578_v44  ;;  %v3731_v8 = vadd.f32 %v10524_v38, %v10587_v54  ;;  %v9138_v38 = vld [vmem:[%s12916_s5 + $0x130] ss:$8 sps:$4 sm:$0xff]   ;;  %v9146_v4 = vld [vmem:[%s12916_s5 + $0x144] ss:$8 sps:$4 sm:$0xff]  }
 0x173   :  { %5905 = vmatmul.mubr.bf16.gmra.mrb[32].mxu1 %v4406_v48  ;;  %v10710_v63 = vpack.c.bf16 %v4094_v43, %v4081_v2  ;;  %v4107_v26 = vmax.f32 %v3691_v20, 0.0  ;;  %v4120_v9 = vmax.f32 %v3704_v41, 0.0  ;;  %v3717_v12 = vadd.f32 %v10528_v13, %v10584_v17 }
 0x174   :  { %5914 = vmatprep.mubr.bf16.mxu1 %v4420_v49  ;;  %v10714_v16 = vpack.c.bf16 %v4121_v23, %v4108_v27  ;;  %v4134_v34 = vmax.f32 %v3718_v15, 0.0  ;;  %v4147_v46 = vmax.f32 %v3731_v8, 0.0  ;;  %v3730_v62 = vadd.f32 %v10528_v13, %v10610_v3  ;;  %6060 = vmatpush1.bf16.msra.mxu1 %v9132_v19 }
 0x175   :  { %v10721_v48 = vpack.c.bf16 %v4120_v9, %v4107_v26  ;;  %v4133_v37 = vmax.f32 %v3717_v12, 0.0  ;;  %v3744_v10 = vadd.f32 %v10532_v14, %v10578_v44  ;;  %v3757_v49 = vadd.f32 %v10532_v14, %v10587_v54  ;;  %6061 = vmatprep.subr.bf16.mxu1 %v9140_v53 }
 0x176   :  { %v10730_v13 = vpack.c.bf16 %v4147_v46, %v4134_v34  ;;  %v4146_v2 = vmax.f32 %v3730_v62, 0.0  ;;  %v3743_v11 = vadd.f32 %v10536_v22, %v10584_v17  ;;  %v3756_v19 = vadd.f32 %v10536_v22, %v10610_v3 }
 0x177   :  { %v4160_v43 = vmax.f32 %v3744_v10, 0.0  ;;  %v4173_v27 = vmax.f32 %v3757_v49, 0.0  ;;  %v3770_v20 = vadd.f32 %v10540_v24, %v10578_v44  ;;  %v3783_v14 = vadd.f32 %v10540_v24, %v10587_v54  ;;  %v9144_v24 = vld [vmem:[%s12916_s5 + $0x140] ss:$8 sps:$4 sm:$0xff]  }
 0x178   :  { %v10740_v41 = vpack.c.bf16 %v4146_v2, %v4133_v37  ;;  %v4159_v53 = vmax.f32 %v3743_v11, 0.0  ;;  %v4172_v23 = vmax.f32 %v3756_v19, 0.0  ;;  %v3769_v15 = vadd.f32 %v10544_v25, %v10584_v17  ;;  %6062 = vmatpush1.bf16.msra.mxu1 %v9138_v38  ;;  %v10744_v8 = vpop.f32.mrb[16].mxu0  ;;  %v9152_v37 = vld [vmem:[%s12916_s5 + $0x154] ss:$8 sps:$4 sm:$0xff]  }
 0x179   :  { %v10746_v26 = vpop.f32.mrb[16].mxu1  ;;  %v10748_v22 = vpack.c.bf16 %v4173_v27, %v4160_v43  ;;  %v4186_v9 = vmax.f32 %v3770_v20, 0.0  ;;  %v4199_v12 = vmax.f32 %v3783_v14, 0.0  ;;  %v3782_v34 = vadd.f32 %v10544_v25, %v10610_v3  ;;  %6063 = vmatprep.subr.bf16.mxu1 %v9146_v4  ;;  %v10755_v46 = vpop.f32.mrb[17].mxu0 }
 0x17a   :  { %13045 = vst [vmem:[#allocation37_spill] sm:$0xff] %v10746_v26  ;;  %v10757_v62 = vpop.f32.mrb[17].mxu1  ;;  %v10759_v38 = vpack.c.bf16 %v4172_v23, %v4159_v53  ;;  %v3152_v10 = vrot.slane %v10434_v18, %v10466_v6  ;;  %v3148_v25 = vrot.slane %v10434_v18, %v10463_v56  ;;  %v10770_v49 = vrot.slane %v10445_v29, %v10466_v6  ;;  %v10773_v4 = vpop.f32.mrb[18].mxu0 }
 0x17b   :  { %13046 = vst [vmem:[#allocation38_spill] sm:$0xff] %v10757_v62  ;;  %5915 = vmatmul.mubr.bf16.gmra.mrb[36].mxu1 %v10678_v1  ;;  %v10775_v2 = vpop.f32.mrb[18].mxu1  ;;  %v10777_v11 = vpack.c.bf16 %v4199_v12, %v4186_v9  ;;  %v4185_v19 = vmax.f32 %v3769_v15, 0.0  ;;  %v4198_v43 = vmax.f32 %v3782_v34, 0.0  ;;  %v10781_v27 = vrot.slane %v10445_v29, %v10463_v56  ;;  %v10784_v20 = vpop.f32.mrb[19].mxu0 }
 0x17c   :  { %13047 = vst [vmem:[#allocation39_spill] sm:$0xff] %v10775_v2  ;;  %5924 = vmatprep.mubr.bf16.mxu1 %v10684_v60  ;;  %v10786_v14 = vpop.f32.mrb[19].mxu1  ;;  %v3796_v1 = vadd.f32 %v10548_v30, %v10578_v44  ;;  %v3809_v53 = vadd.f32 %v10548_v30, %v10587_v54  ;;  %v10794_v23 = vrot.slane %v10436_v21, %v10466_v6  ;;  %v9150_v12 = vld [vmem:[%s12916_s5 + $0x150] ss:$8 sps:$4 sm:$0xff]  }
 0x17d   :  { %13048 = vst [vmem:[#allocation40_spill] sm:$0xff] %v10786_v14  ;;  %v10798_v15 = vrot.slane %v10436_v21, %v10463_v56  ;;  %v10800_v9 = vpack.c.bf16 %v4198_v43, %v4185_v19  ;;  %v3795_v60 = vadd.f32 %v10552_v31, %v10584_v17  ;;  %6064 = vmatpush1.bf16.msra.mxu1 %v9144_v24  ;;  %v9158_v43 = vld [vmem:[%s12916_s5 + $0x164] ss:$8 sps:$4 sm:$0xff]  }
 0x17e   :  { %v10809_v30 = vrot.slane %v10447_v42, %v10466_v6  ;;  %v10813_v34 = vrot.slane %v10447_v42, %v10463_v56  ;;  %v4212_v14 = vmax.f32 %v3796_v1, 0.0  ;;  %v4225_v2 = vmax.f32 %v3809_v53, 0.0  ;;  %6065 = vmatprep.subr.bf16.mxu1 %v9152_v37 }
 0x17f   :  { %v3808_v19 = vadd.f32 %v10552_v31, %v10610_v3  ;;  %v3822_v24 = vadd.f32 %v10556_v32, %v10578_v44  ;;  %v4211_v62 = vmax.f32 %v3795_v60, 0.0  ;;  %v3835_v26 = vadd.f32 %v10556_v32, %v10587_v54  ;;  %v9156_v32 = vld [vmem:[%s12916_s5 + $0x160] ss:$8 sps:$4 sm:$0xff]  }
 0x180   :  { %v3821_v42 = vadd.f32 %v10560_v33, %v10584_v17  ;;  %v3834_v1 = vadd.f32 %v10560_v33, %v10610_v3  ;;  %v10828_v53 = vpack.c.bf16 %v4225_v2, %v4212_v14  ;;  %v3848_v37 = vadd.f32 %v10564_v35, %v10578_v44 }
 0x181   :  { %v4224_v31 = vmax.f32 %v3808_v19, 0.0  ;;  %v4238_v21 = vmax.f32 %v3822_v24, 0.0  ;;  %v4251_v29 = vmax.f32 %v3835_v26, 0.0  ;;  %v3861_v60 = vadd.f32 %v10564_v35, %v10587_v54  ;;  %6066 = vmatpush1.bf16.msra.mxu1 %v9150_v12 }
 0x182   :  { %v4237_v18 = vmax.f32 %v3821_v42, 0.0  ;;  %v4250_v36 = vmax.f32 %v3834_v1, 0.0  ;;  %v4264_v33 = vmax.f32 %v3848_v37, 0.0  ;;  %v3847_v2 = vadd.f32 %v10571_v47, %v10584_v17  ;;  %6067 = vmatprep.subr.bf16.mxu1 %v9158_v43  ;;  %v9164_v42 = vld [vmem:[%s12916_s5 + $0x174] ss:$8 sps:$4 sm:$0xff]  }
 0x183   :  { %v10837_v28 = vpack.c.bf16 %v4224_v31, %v4211_v62  ;;  %v3860_v14 = vadd.f32 %v10571_v47, %v10610_v3  ;;  %5925 = vmatmul.mubr.bf16.gmra.mrb[40].mxu1 %v10690_v58  ;;  %v10847_v35 = vpack.c.bf16 %v4251_v29, %v4238_v21  ;;  %v4277_v62 = vmax.f32 %v3861_v60, 0.0 }
 0x184   :  { %v10849_v26 = vpack.c.bf16 %v4250_v36, %v4237_v18  ;;  %v3874_v12 = vadd.f32 %v3152_v10, %v10578_v44  ;;  %5934 = vmatprep.mubr.bf16.mxu1 %v10704_v51  ;;  %v4263_v19 = vmax.f32 %v3847_v2, 0.0  ;;  %v3887_v47 = vadd.f32 %v3152_v10, %v10587_v54  ;;  %v9162_v18 = vld [vmem:[%s12916_s5 + $0x170] ss:$8 sps:$4 sm:$0xff]   ;;  %v9170_v10 = vld [vmem:[%s12916_s5 + $0x184] ss:$8 sps:$4 sm:$0xff]  }
 0x185   :  { %v4276_v24 = vmax.f32 %v3860_v14, 0.0  ;;  %v3873_v43 = vadd.f32 %v3148_v25, %v10584_v17  ;;  %v10855_v1 = vpack.c.bf16 %v4277_v62, %v4264_v33  ;;  %6068 = vmatpush1.bf16.msra.mxu1 %v9156_v32  ;;  %v3886_v21 = vadd.f32 %v3148_v25, %v10610_v3 }
 0x186   :  { %v4290_v31 = vmax.f32 %v3874_v12, 0.0  ;;  %v3900_v29 = vadd.f32 %v10770_v49, %v10578_v44  ;;  %v4303_v58 = vmax.f32 %v3887_v47, 0.0  ;;  %6069 = vmatprep.subr.bf16.mxu1 %v9164_v42  ;;  %v3913_v37 = vadd.f32 %v10770_v49, %v10587_v54  ;;  %v9168_v49 = vld [vmem:[%s12916_s5 + $0x180] ss:$8 sps:$4 sm:$0xff]  }
 0x187   :  { %v10863_v36 = vpack.c.bf16 %v4276_v24, %v4263_v19  ;;  %v4289_v51 = vmax.f32 %v3873_v43, 0.0  ;;  %v4302_v60 = vmax.f32 %v3886_v21, 0.0  ;;  %v3899_v25 = vadd.f32 %v10781_v27, %v10584_v17  ;;  %v9176_v43 = vld [vmem:[%s12916_s5 + $0x194] ss:$8 sps:$4 sm:$0xff]  }
 0x188   :  { %v4316_v32 = vmax.f32 %v3900_v29, 0.0  ;;  %v3912_v33 = vadd.f32 %v10781_v27, %v10610_v3  ;;  %v10874_v2 = vpack.c.bf16 %v4303_v58, %v4290_v31  ;;  %v4329_v14 = vmax.f32 %v3913_v37, 0.0 }
 0x189   :  { %v3926_v42 = vadd.f32 %v10794_v23, %v10578_v44  ;;  %v3939_v62 = vadd.f32 %v10794_v23, %v10587_v54  ;;  %6070 = vmatpush1.bf16.msra.mxu1 %v9162_v18  ;;  %v10880_v12 = vpack.c.bf16 %v4302_v60, %v4289_v51  ;;  %v4315_v19 = vmax.f32 %v3899_v25, 0.0 }
 0x18a   :  { %v4328_v24 = vmax.f32 %v3912_v33, 0.0  ;;  %v3925_v27 = vadd.f32 %v10798_v15, %v10584_v17  ;;  %6071 = vmatprep.subr.bf16.mxu1 %v9170_v10  ;;  %v10887_v47 = vpack.c.bf16 %v4329_v14, %v4316_v32  ;;  %v3938_v18 = vadd.f32 %v10798_v15, %v10610_v3  ;;  %v9174_v15 = vld [vmem:[%s12916_s5 + $0x190] ss:$8 sps:$4 sm:$0xff]  }
 0x18b   :  { %v4342_v23 = vmax.f32 %v3926_v42, 0.0  ;;  %v4355_v31 = vmax.f32 %v3939_v62, 0.0  ;;  %5935 = vmatmul.mubr.bf16.gmra.mrb[44].mxu1 %v10710_v63  ;;  %v3952_v58 = vadd.f32 %v10809_v30, %v10578_v44  ;;  %v3965_v51 = vadd.f32 %v10809_v30, %v10587_v54  ;;  %v9182_v54 = vld [vmem:[%s12916_s5 + $0x1a4] ss:$8 sps:$4 sm:$0xff]   ;;  %v9186_v62 = vld [vmem:[%s12916_s5 + $0x1b0] ss:$8 sps:$4 sm:$0xff]  }
 0x18c   :  { %v10895_v21 = vpack.c.bf16 %v4328_v24, %v4315_v19  ;;  %v4341_v29 = vmax.f32 %v3925_v27, 0.0  ;;  %5944 = vmatprep.mubr.bf16.mxu1 %v10714_v16  ;;  %v4354_v37 = vmax.f32 %v3938_v18, 0.0  ;;  %v3951_v60 = vadd.f32 %v10813_v34, %v10584_v17  ;;  %v9192_v27 = vld [vmem:[%s12916_s5 + $0x1c0] ss:$8 sps:$4 sm:$0xff]   ;;  %v9200_v18 = vld [vmem:[%s12916_s5 + $0x1d4] ss:$8 sps:$4 sm:$0xff]  }
 0x18d   :  { %v10902_v10 = vpack.c.bf16 %v4355_v31, %v4342_v23  ;;  %v3964_v63 = vadd.f32 %v10813_v34, %v10610_v3  ;;  %6072 = vmatpush1.bf16.msra.mxu1 %v9168_v49  ;;  %v4368_v44 = vmax.f32 %v3952_v58, 0.0  ;;  %v4381_v32 = vmax.f32 %v3965_v51, 0.0  ;;  %v9180_v3 = vld [vmem:[%s12916_s5 + $0x1a0] ss:$8 sps:$4 sm:$0xff]   ;;  %v9188_v34 = vld [vmem:[%s12916_s5 + $0x1b4] ss:$8 sps:$4 sm:$0xff]  }
 0x18e   :  { %6073 = vmatprep.subr.bf16.mxu1 %v9176_v43  ;;  %v10914_v16 = vpack.c.bf16 %v4354_v37, %v4341_v29  ;;  %v4367_v30 = vmax.f32 %v3951_v60, 0.0  ;;  %v10929_v14 = vsub.s32 6, %v10183_v52  ;;  %v10932_v42 = vsub.s32 7, %v10183_v52  ;;  %v13053_v51 = vld [vmem:[#allocation7_spill] sm:$0xff] }
 0x18f   :  { %v4380_v25 = vmax.f32 %v3964_v63, 0.0  ;;  %v10916_v17 = vpack.c.bf16 %v4381_v32, %v4368_v44 }
 0x190   :  { %13049 = vst [vmem:[#allocation41_spill] sm:$0xff] %v10929_v14  ;;  %13050 = vst [vmem:[#allocation42_spill] sm:$0xff] %v10932_v42  ;;  %v1124_v49 = vrot.slane %v10460_v55, %v10929_v14  ;;  %v2552_v37 = vrot.slane %v13053_v51, %v10932_v42  ;;  %v2548_v44 = vrot.slane %v13053_v51, %v10929_v14 }
 0x191   :  { %v10918_v33 = vpack.c.bf16 %v4380_v25, %v4367_v30  ;;  %6074 = vmatpush1.bf16.msra.mxu1 %v9174_v15 }
 0x192   :  { %6075 = vmatprep.subr.bf16.mxu1 %v9182_v54  ;;  %v13056_v54 = vld [vmem:[#allocation11_spill] sm:$0xff] }
 0x193   :  { %5945 = vmatmul.mubr.bf16.gmra.mrb[48].mxu1 %v10721_v48  ;;  %v9194_v48 = vld [vmem:[%s12916_s5 + $0x1c4] ss:$8 sps:$4 sm:$0xff]   ;;  %v2604_v30 = vrot.slane %v13056_v54, %v10932_v42 }
 0x194   :  { %5954 = vmatprep.mubr.bf16.mxu1 %v10730_v13  ;;  %v1128_v13 = vrot.slane %v10460_v55, %v10932_v42 }
 0x195   :  { %6076 = vmatpush1.bf16.msra.mxu1 %v9180_v3 }
 0x196   :  { %6077 = vmatprep.subr.bf16.mxu1 %v9188_v34  ;;  %v9206_v34 = vld [vmem:[%s12916_s5 + $0x1e4] ss:$8 sps:$4 sm:$0xff]  }
 0x198   :  { %v1853_v19 = vpop.f32.mrb[20].mxu0 }
 0x199   :  { %v10944_v24 = vpop.f32.mrb[20].mxu1  ;;  %6078 = vmatpush1.bf16.msra.mxu1 %v9186_v62  ;;  %v10949_v43 = vadd.f32 %v1853_v19, %v1124_v49  ;;  %v1855_v23 = vpop.f32.mrb[21].mxu0 }
 0x19a   :  { %v10951_v31 = vpop.f32.mrb[21].mxu1  ;;  %6079 = vmatprep.subr.bf16.mxu1 %v9194_v48  ;;  %v10957_v55 = vadd.f32 %v1855_v23, %v1128_v13  ;;  %v1857_v29 = vpop.f32.mrb[22].mxu0 }
 0x19b   :  { %13051 = vst [vmem:[#allocation43_spill] sm:$0xff] %v10949_v43  ;;  %5955 = vmatmul.mubr.bf16.gmra.mrb[52].mxu1 %v10740_v41  ;;  %v10959_v58 = vpop.f32.mrb[22].mxu1  ;;  %v10964_v60 = vadd.f32 %v1857_v29, %v1124_v49  ;;  %v1859_v63 = vpop.f32.mrb[23].mxu0  ;;  %v3567_v25 = vadd.f32 %v2548_v44, %v10949_v43 }
 0x19c   :  { %13052 = vst [vmem:[#allocation44_spill] sm:$0xff] %v10957_v55  ;;  %5964 = vmatprep.mubr.bf16.mxu1 %v10748_v22  ;;  %v10966_v15 = vpop.f32.mrb[23].mxu1  ;;  %v10970_v32 = vadd.f32 %v1859_v63, %v1128_v13  ;;  %v3568_v41 = vadd.f32 %v2552_v37, %v10957_v55  ;;  %v9198_v22 = vld [vmem:[%s12916_s5 + $0x1d0] ss:$8 sps:$4 sm:$0xff]   ;;  %v3594_v49 = vadd.f32 %v2604_v30, %v10957_v55 }
 0x19d   :  { %13054 = vst [vmem:[#allocation7_spill] sm:$0xff] %v10964_v60  ;;  %6080 = vmatpush1.bf16.msra.mxu1 %v9192_v27  ;;  %v3580_v3 = vadd.f32 %v2548_v44, %v10964_v60  ;;  %v3983_v29 = vmax.f32 %v3567_v25, 0.0  ;;  %v2600_v63 = vrot.slane %v13056_v54, %v10929_v14  ;;  %v9120_v44 = vld [vmem:[%s12916_s5 + $0x400] ss:$8 sps:$4 sm:$0xff]  }
 0x19e   :  { %13055 = vst [vmem:[#allocation45_spill] sm:$0xff] %v10970_v32  ;;  %6081 = vmatprep.subr.bf16.mxu1 %v9200_v18  ;;  %v3581_v62 = vadd.f32 %v2552_v37, %v10970_v32  ;;  %v3607_v48 = vadd.f32 %v2604_v30, %v10970_v32  ;;  %v3984_v19 = vmax.f32 %v3568_v41, 0.0  ;;  %v9204_v18 = vld [vmem:[%s12916_s5 + $0x1e0] ss:$8 sps:$4 sm:$0xff]   ;;  %v4010_v41 = vmax.f32 %v3594_v49, 0.0 }
 0x19f   :  { %v3996_v13 = vmax.f32 %v3580_v3, 0.0  ;;  %v13057_v30 = vld [vmem:[#allocation8_spill] sm:$0xff]  ;;  %v9125_v3 = vld [vmem:[%s12916_s5 + $0x414] ss:$8 sps:$4 sm:$0xff]  }
 0x1a0   :  { %v3997_v27 = vmax.f32 %v3581_v62, 0.0  ;;  %v4023_v23 = vmax.f32 %v3607_v48, 0.0  ;;  %v3593_v48 = vadd.f32 %v2600_v63, %v10949_v43 }
 0x1a1   :  { %6082 = vmatpush1.bf16.msra.mxu1 %v9198_v22  ;;  %v2656_v22 = vrot.slane %v13057_v30, %v10932_v42  ;;  %v4399_v25 = vpack.c.bf16 %v3996_v13, %v3983_v29  ;;  %v9123_v13 = vld [vmem:[%s12916_s5 + $0x410] ss:$8 sps:$4 sm:$0xff]  }
 0x1a2   :  { %6083 = vmatprep.subr.bf16.mxu1 %v9206_v34  ;;  %v4400_v37 = vpack.c.bf16 %v3997_v27, %v3984_v19  ;;  %v3606_v34 = vadd.f32 %v2600_v63, %v10964_v60  ;;  %v4413_v62 = vpack.c.bf16 %v4023_v23, %v4010_v41  ;;  %v9131_v27 = vld [vmem:[%s12916_s5 + $0x424] ss:$8 sps:$4 sm:$0xff]  }
 0x1a3   :  { %5965 = vmatmul.mubr.bf16.gmra.mrb[56].mxu1 %v10759_v38  ;;  %v9212_v38 = vld [vmem:[%s12916_s5 + $0x1f4] ss:$8 sps:$4 sm:$0xff]   ;;  %v3633_v49 = vadd.f32 %v2656_v22, %v10970_v32  ;;  %v3620_v19 = vadd.f32 %v2656_v22, %v10957_v55  ;;  %v9239_v63 = vld [vmem:[%s12916_s5 + $0x204] ss:$8 sps:$4 sm:$0xff]  }
 0x1a4   :  { %5974 = vmatprep.mubr.bf16.mxu1 %v10777_v11  ;;  %6473 = vmatprep.mubr.bf16.mxu0 %v4400_v37  ;;  %v9210_v11 = vld [vmem:[%s12916_s5 + $0x1f0] ss:$8 sps:$4 sm:$0xff]   ;;  %v4022_v23 = vmax.f32 %v3606_v34, 0.0  ;;  %v2652_v37 = vrot.slane %v13057_v30, %v10929_v14  ;;  %v13058_v22 = vld [vmem:[#allocation12_spill] sm:$0xff]  ;;  %v9137_v34 = vld [vmem:[%s12916_s5 + $0x434] ss:$8 sps:$4 sm:$0xff]  }
 0x1a5   :  { %6474 = vmatmul.mubr.bf16.vlgmr.msra.gmra.mrb[28].mxu0 %v4399_v25  ;;  %6084 = vmatpush1.bf16.msra.mxu1 %v9204_v18  ;;  %v4049_v29 = vmax.f32 %v3633_v49, 0.0  ;;  %v4009_v18 = vmax.f32 %v3593_v48, 0.0  ;;  %v4036_v41 = vmax.f32 %v3620_v19, 0.0  ;;  %v2708_v25 = vrot.slane %v13058_v22, %v10932_v42 }
 0x1a6   :  { %6635 = vmatpush1.bf16.msra.mxu0 %v9120_v44  ;;  %6483 = vmatprep.mubr.bf16.mxu0 %v4413_v62  ;;  %v9129_v44 = vld [vmem:[%s12916_s5 + $0x420] ss:$8 sps:$4 sm:$0xff]   ;;  %v3619_v49 = vadd.f32 %v2652_v37, %v10949_v43 }
 0x1a7   :  { %6636 = vmatprep.subr.bf16.mxu0 %v9125_v3  ;;  %6085 = vmatprep.subr.bf16.mxu1 %v9212_v38  ;;  %v4412_v3 = vpack.c.bf16 %v4022_v23, %v4009_v18  ;;  %v3632_v38 = vadd.f32 %v2652_v37, %v10964_v60  ;;  %v3659_v62 = vadd.f32 %v2708_v25, %v10970_v32  ;;  %v13059_v18 = vld [vmem:[#allocation9_spill] sm:$0xff] }
 0x1a8   :  { %v3646_v48 = vadd.f32 %v2708_v25, %v10957_v55  ;;  %v2704_v23 = vrot.slane %v13058_v22, %v10929_v14  ;;  %v2760_v37 = vrot.slane %v13059_v18, %v10932_v42 }
 0x1a9   :  { %6086 = vmatpush1.bf16.msra.mxu1 %v9210_v11  ;;  %v9143_v11 = vld [vmem:[%s12916_s5 + $0x444] ss:$8 sps:$4 sm:$0xff]   ;;  %v4075_v19 = vmax.f32 %v3659_v62, 0.0 }
 0x1aa   :  { %6637 = vmatpush1.bf16.msra.mxu0 %v9123_v13  ;;  %6248 = vmatprep.subr.bf16.mxu1 %v9239_v63  ;;  %v4048_v13 = vmax.f32 %v3632_v38, 0.0  ;;  %v4062_v63 = vmax.f32 %v3646_v48, 0.0  ;;  %v11067_v38 = vld [vmem:[%s12915_s4 + $0x8] sm:$0x1f]  ;;  %v3685_v62 = vadd.f32 %v2760_v37, %v10970_v32  ;;  %v9147_v48 = vld [vmem:[%s12916_s5 + $0x450] ss:$8 sps:$4 sm:$0xff]  }
 0x1ab   :  { %5975 = vmatmul.mubr.bf16.gmra.mrb[60].mxu1 %v10800_v9  ;;  %6638 = vmatprep.subr.bf16.mxu0 %v9131_v27  ;;  %v4426_v9 = vpack.c.bf16 %v4049_v29, %v4036_v41  ;;  %v4035_v27 = vmax.f32 %v3619_v49, 0.0  ;;  %v9141_v29 = vld [vmem:[%s12916_s5 + $0x440] ss:$8 sps:$4 sm:$0xff]   ;;  %v11054_v41 = vsub.s32 2, %v10183_v52 }
 0x1ac   :  { %5984 = vmatprep.mubr.bf16.mxu1 %v10828_v53  ;;  %v9135_v53 = vld [vmem:[%s12916_s5 + $0x430] ss:$8 sps:$4 sm:$0xff]  }
 0x1ad   :  { %6484 = vmatmul.mubr.bf16.gmra.mrb[32].mxu0 %v4412_v3  ;;  %v4425_v25 = vpack.c.bf16 %v4048_v13, %v4035_v27  ;;  %v3658_v3 = vadd.f32 %v2704_v23, %v10964_v60  ;;  %v3672_v13 = vadd.f32 %v2760_v37, %v10957_v55 }
 0x1ae   :  { %6639 = vmatpush1.bf16.msra.mxu0 %v9129_v44  ;;  %6493 = vmatprep.mubr.bf16.mxu0 %v4426_v9  ;;  %v11051_v44 = vsub.s32 4, %v10183_v52  ;;  %v4439_v9 = vpack.c.bf16 %v4075_v19, %v4062_v63  ;;  %v9155_v19 = vld [vmem:[%s12916_s5 + $0x464] ss:$8 sps:$4 sm:$0xff]  }
 0x1af   :  { %6640 = vmatprep.subr.bf16.mxu0 %v9137_v34  ;;  %v11062_v34 = vsub.s32 3, %v10183_v52  ;;  %v4074_v27 = vmax.f32 %v3658_v3, 0.0  ;;  %v4088_v50 = vmax.f32 %v3672_v13, 0.0 }
 0x1b0   :  { %13060 = vst [vmem:[#allocation11_spill] sm:$0xff] %v11051_v44  ;;  %v1148_v49 = vrot.slane %v11067_v38, %v11051_v44 }
 0x1b2   :  { %6641 = vmatpush1.bf16.msra.mxu0 %v9135_v53  ;;  %v3645_v53 = vadd.f32 %v2704_v23, %v10949_v43  ;;  %v4101_v23 = vmax.f32 %v3685_v62, 0.0  ;;  %v9153_v62 = vld [vmem:[%s12916_s5 + $0x460] ss:$8 sps:$4 sm:$0xff]  }
 0x1b3   :  { %5985 = vmatmul.mubr.bf16.gmra.mrb[64].mxu1 %v10837_v28  ;;  %6642 = vmatprep.subr.bf16.mxu0 %v9143_v11  ;;  %v9149_v28 = vld [vmem:[%s12916_s5 + $0x454] ss:$8 sps:$4 sm:$0xff]   ;;  %v1144_v11 = vrot.slane %v11067_v38, %v11062_v34 }
 0x1b4   :  { %5994 = vmatprep.mubr.bf16.mxu1 %v10847_v35  ;;  %v1140_v35 = vrot.slane %v11067_v38, %v11054_v41  ;;  %v4061_v59 = vmax.f32 %v3645_v53, 0.0 }
 0x1b5   :  { %6494 = vmatmul.mubr.bf16.gmra.mrb[36].mxu0 %v4425_v25 }
 0x1b6   :  { %6643 = vmatpush1.bf16.msra.mxu0 %v9141_v29  ;;  %6503 = vmatprep.mubr.bf16.mxu0 %v4439_v9  ;;  %v2756_v29 = vrot.slane %v13059_v18, %v10929_v14  ;;  %v4438_v53 = vpack.c.bf16 %v4074_v27, %v4061_v59 }
 0x1b7   :  { %6644 = vmatprep.subr.bf16.mxu0 %v9149_v28 }
 0x1b8   :  { %v1939_v63 = vpop.f32.mrb[24].mxu0 }
 0x1b9   :  { %v1982_v25 = vpop.f32.mrb[24].mxu1  ;;  %v11086_v9 = vadd.f32 %v1939_v63, %v1140_v35  ;;  %v1941_v52 = vpop.f32.mrb[25].mxu0  ;;  %v3684_v63 = vadd.f32 %v2756_v29, %v10964_v60 }
 0x1ba   :  { %v11088_v44 = vadd.f32 %v1982_v25, %v1148_v49  ;;  %v8227_v5 = vpop.f32.mrb[25].mxu1  ;;  %v11091_v37 = vadd.f32 %v1941_v52, %v1144_v11  ;;  %6645 = vmatpush1.bf16.msra.mxu0 %v9147_v48  ;;  %v1943_v28 = vpop.f32.mrb[26].mxu0  ;;  %v13064_v25 = vld [vmem:[#allocation13_spill] sm:$0xff]  ;;  %v9161_v48 = vld [vmem:[%s12916_s5 + $0x474] ss:$8 sps:$4 sm:$0xff]  }
 0x1bb   :  { %13061 = vst [vmem:[#allocation8_spill] sm:$0xff] %v11086_v9  ;;  %5995 = vmatmul.mubr.bf16.gmra.mrb[68].mxu1 %v10849_v26  ;;  %v1985_v3 = vpop.f32.mrb[26].mxu1  ;;  %v11100_v5 = vadd.f32 %v1943_v28, %v1140_v35  ;;  %v1945_v52 = vpop.f32.mrb[27].mxu0  ;;  %6646 = vmatprep.subr.bf16.mxu0 %v9155_v19  ;;  %v9159_v35 = vld [vmem:[%s12916_s5 + $0x470] ss:$8 sps:$4 sm:$0xff]   ;;  %v2808_v27 = vrot.slane %v13064_v25, %v10929_v14 }
 0x1bc   :  { %13062 = vst [vmem:[#allocation12_spill] sm:$0xff] %v11088_v44  ;;  %13063 = vst [vmem:[#allocation9_spill] sm:$0xff] %v11091_v37  ;;  %v2812_v44 = vrot.slane %v13064_v25, %v10932_v42  ;;  %6004 = vmatprep.mubr.bf16.mxu1 %v10855_v1  ;;  %v11102_v26 = vadd.f32 %v1985_v3, %v1148_v49  ;;  %v8228_v9 = vpop.f32.mrb[27].mxu1  ;;  %v11107_v13 = vadd.f32 %v1945_v52, %v1144_v11  ;;  %v9167_v49 = vld [vmem:[%s12916_s5 + $0x484] ss:$8 sps:$4 sm:$0xff]  }
 0x1bd   :  { %v4452_v37 = vpack.c.bf16 %v4101_v23, %v4088_v50  ;;  %6504 = vmatmul.mubr.bf16.gmra.mrb[40].mxu0 %v4438_v53  ;;  %v3671_v1 = vadd.f32 %v2756_v29, %v10949_v43  ;;  %v4100_v11 = vmax.f32 %v3684_v63, 0.0  ;;  %v9165_v23 = vld [vmem:[%s12916_s5 + $0x480] ss:$8 sps:$4 sm:$0xff]   ;;  %v3710_v28 = vadd.f32 %v2808_v27, %v10964_v60  ;;  %v9179_v52 = vld [vmem:[%s12916_s5 + $0x4a4] ss:$8 sps:$4 sm:$0xff]  }
 0x1be   :  { %v3711_v39 = vadd.f32 %v2812_v44, %v10970_v32  ;;  %6647 = vmatpush1.bf16.msra.mxu0 %v9153_v62  ;;  %v3698_v59 = vadd.f32 %v2812_v44, %v10957_v55  ;;  %v13065_v44 = vld [vmem:[#allocation10_spill] sm:$0xff]  ;;  %v3697_v62 = vadd.f32 %v2808_v27, %v10949_v43 }
 0x1bf   :  { %6513 = vmatprep.mubr.bf16.mxu0 %v4452_v37  ;;  %6648 = vmatprep.subr.bf16.mxu0 %v9161_v48  ;;  %v4087_v19 = vmax.f32 %v3671_v1, 0.0  ;;  %v2864_v9 = vrot.slane %v13065_v44, %v10932_v42  ;;  %v4126_v53 = vmax.f32 %v3710_v28, 0.0  ;;  %v9185_v27 = vld [vmem:[%s12916_s5 + $0x4b4] ss:$8 sps:$4 sm:$0xff]   ;;  %v9191_v28 = vld [vmem:[%s12916_s5 + $0x4c4] ss:$8 sps:$4 sm:$0xff]  }
 0x1c0   :  { %v4127_v50 = vmax.f32 %v3711_v39, 0.0  ;;  %v4114_v29 = vmax.f32 %v3698_v59, 0.0  ;;  %v9173_v39 = vld [vmem:[%s12916_s5 + $0x494] ss:$8 sps:$4 sm:$0xff]   ;;  %v4113_v1 = vmax.f32 %v3697_v62, 0.0 }
 0x1c1   :  { %v4451_v37 = vpack.c.bf16 %v4100_v11, %v4087_v19  ;;  %v3737_v3 = vadd.f32 %v2864_v9, %v10970_v32  ;;  %v3724_v63 = vadd.f32 %v2864_v9, %v10957_v55  ;;  %v9177_v59 = vld [vmem:[%s12916_s5 + $0x4a0] ss:$8 sps:$4 sm:$0xff]   ;;  %v13066_v11 = vld [vmem:[#allocation14_spill] sm:$0xff] }
 0x1c2   :  { %6649 = vmatpush1.bf16.msra.mxu0 %v9159_v35  ;;  %v2860_v35 = vrot.slane %v13065_v44, %v10929_v14  ;;  %v4464_v19 = vpack.c.bf16 %v4126_v53, %v4113_v1  ;;  %v9189_v53 = vld [vmem:[%s12916_s5 + $0x4c0] ss:$8 sps:$4 sm:$0xff]  }
 0x1c3   :  { %6005 = vmatmul.mubr.bf16.gmra.mrb[72].mxu1 %v10863_v36  ;;  %6650 = vmatprep.subr.bf16.mxu0 %v9167_v49  ;;  %v4465_v36 = vpack.c.bf16 %v4127_v50, %v4114_v29  ;;  %v4153_v48 = vmax.f32 %v3737_v3, 0.0  ;;  %v4140_v49 = vmax.f32 %v3724_v63, 0.0  ;;  %v2916_v50 = vrot.slane %v13066_v11, %v10932_v42  ;;  %v13067_v1 = vld [vmem:[#allocation25_spill] sm:$0xff] }
 0x1c4   :  { %6014 = vmatprep.mubr.bf16.mxu1 %v10874_v2  ;;  %v9171_v2 = vld [vmem:[%s12916_s5 + $0x490] ss:$8 sps:$4 sm:$0xff]   ;;  %v3723_v9 = vadd.f32 %v2860_v35, %v10949_v43  ;;  %v2912_v63 = vrot.slane %v13066_v11, %v10929_v14 }
 0x1c5   :  { %6514 = vmatmul.mubr.bf16.gmra.mrb[44].mxu0 %v4451_v37  ;;  %v3763_v29 = vadd.f32 %v2916_v50, %v10970_v32  ;;  %v1136_v37 = vrot.slane %v11067_v38, %v10466_v6 }
 0x1c6   :  { %6651 = vmatpush1.bf16.msra.mxu0 %v9165_v23  ;;  %6523 = vmatprep.mubr.bf16.mxu0 %v4465_v36  ;;  %v3736_v23 = vadd.f32 %v2860_v35, %v10964_v60  ;;  %v11181_v35 = vld [vmem:[%s12915_s4] sm:$0xff] }
 0x1c7   :  { %6652 = vmatprep.subr.bf16.mxu0 %v9173_v39  ;;  %v3750_v39 = vadd.f32 %v2916_v50, %v10957_v55  ;;  %v11165_v3 = vadd.f32 %v10966_v15, %v1136_v37  ;;  %v4179_v62 = vmax.f32 %v3763_v29, 0.0  ;;  %v2560_v15 = vrot.slane %v13067_v1, %v10466_v6 }
 0x1c8   :  { %v4152_v36 = vmax.f32 %v3736_v23, 0.0  ;;  %v1132_v23 = vrot.slane %v11067_v38, %v10463_v56  ;;  %v9203_v38 = vld [vmem:[%s12916_s5 + $0x4e4] ss:$8 sps:$4 sm:$0xff]  }
 0x1ca   :  { %6653 = vmatpush1.bf16.msra.mxu0 %v9171_v2  ;;  %v4139_v2 = vmax.f32 %v3723_v9, 0.0 }
 0x1cb   :  { %6015 = vmatmul.mubr.bf16.gmra.mrb[76].mxu1 %v10880_v12  ;;  %6654 = vmatprep.subr.bf16.mxu0 %v9179_v52  ;;  %v4478_v12 = vpack.c.bf16 %v4153_v48, %v4140_v49  ;;  %v11170_v52 = vadd.f32 %v10951_v31, %v1136_v37  ;;  %v4166_v48 = vmax.f32 %v3750_v39, 0.0  ;;  %v1112_v31 = vrot.slane %v11181_v35, %v11062_v34 }
 0x1cc   :  { %6024 = vmatprep.mubr.bf16.mxu1 %v10887_v47  ;;  %v9183_v47 = vld [vmem:[%s12916_s5 + $0x4b0] ss:$8 sps:$4 sm:$0xff]   ;;  %v3762_v49 = vadd.f32 %v2912_v63, %v10964_v60 }
 0x1cd   :  { %6524 = vmatmul.mubr.bf16.gmra.mrb[48].mxu0 %v4464_v19  ;;  %v4491_v50 = vpack.c.bf16 %v4179_v62, %v4166_v48  ;;  %v3583_v19 = vadd.f32 %v2560_v15, %v11165_v3  ;;  %v3570_v29 = vadd.f32 %v2560_v15, %v11170_v52  ;;  %v11202_v9 = vadd.f32 %v10755_v46, %v1112_v31  ;;  %v9209_v15 = vld [vmem:[%s12916_s5 + $0x4f4] ss:$8 sps:$4 sm:$0xff]  }
 0x1ce   :  { %6655 = vmatpush1.bf16.msra.mxu0 %v9177_v59  ;;  %6533 = vmatprep.mubr.bf16.mxu0 %v4478_v12  ;;  %v9197_v59 = vld [vmem:[%s12916_s5 + $0x4d4] ss:$8 sps:$4 sm:$0xff]   ;;  %v9195_v12 = vld [vmem:[%s12916_s5 + $0x4d0] ss:$8 sps:$4 sm:$0xff]   ;;  %v4178_v37 = vmax.f32 %v3762_v49, 0.0  ;;  %v1108_v62 = vrot.slane %v11181_v35, %v11054_v41 }
 0x1cf   :  { %6656 = vmatprep.subr.bf16.mxu0 %v9185_v27  ;;  %v11192_v27 = vadd.f32 %v10784_v20, %v1112_v31  ;;  %v11205_v20 = vadd.f32 %v10959_v58, %v1132_v23  ;;  %v3999_v39 = vmax.f32 %v3583_v19, 0.0  ;;  %v2556_v58 = vrot.slane %v13067_v1, %v10463_v56  ;;  %v9207_v19 = vld [vmem:[%s12916_s5 + $0x4f0] ss:$8 sps:$4 sm:$0xff]  }
 0x1d0   :  { %v11233_v31 = vadd.f32 %v10773_v4, %v1108_v62  ;;  %v2532_v4 = vrot.slane %v13053_v51, %v11054_v41 }
 0x1d2   :  { %6657 = vmatpush1.bf16.msra.mxu0 %v9183_v47  ;;  %v2536_v47 = vrot.slane %v13053_v51, %v11062_v34 }
 0x1d3   :  { %6025 = vmatmul.mubr.bf16.gmra.mrb[80].mxu1 %v10895_v21  ;;  %6658 = vmatprep.subr.bf16.mxu0 %v9191_v28  ;;  %v4477_v21 = vpack.c.bf16 %v4152_v36, %v4139_v2  ;;  %v11213_v28 = vadd.f32 %v10944_v24, %v1132_v23  ;;  %v9201_v2 = vld [vmem:[%s12916_s5 + $0x4e0] ss:$8 sps:$4 sm:$0xff]   ;;  %v2612_v24 = vrot.slane %v10604_v57, %v10466_v6 }
 0x1d4   :  { %6034 = vmatprep.mubr.bf16.mxu1 %v10902_v10  ;;  %v3749_v10 = vadd.f32 %v2912_v63, %v10949_v43  ;;  %v3577_v46 = vadd.f32 %v2536_v47, %v11192_v27  ;;  %v3986_v63 = vmax.f32 %v3570_v29, 0.0  ;;  %v3564_v48 = vadd.f32 %v2536_v47, %v11202_v9 }
 0x1d5   :  { %6534 = vmatmul.mubr.bf16.gmra.mrb[52].mxu0 %v4477_v21  ;;  %v3596_v23 = vadd.f32 %v2612_v24, %v11170_v52 }
 0x1d6   :  { %6659 = vmatpush1.bf16.msra.mxu0 %v9189_v53  ;;  %6543 = vmatprep.mubr.bf16.mxu0 %v4491_v50  ;;  %v4165_v36 = vmax.f32 %v3749_v10, 0.0  ;;  %v4402_v21 = vpack.c.bf16 %v3999_v39, %v3986_v63  ;;  %v3993_v49 = vmax.f32 %v3577_v46, 0.0  ;;  %v11238_v50 = vadd.f32 %v10744_v8, %v1108_v62 }
 0x1d7   :  { %6660 = vmatprep.subr.bf16.mxu0 %v9197_v59  ;;  %v3609_v59 = vadd.f32 %v2612_v24, %v11165_v3  ;;  %v3980_v10 = vmax.f32 %v3564_v48, 0.0  ;;  %v2588_v8 = vrot.slane %v13056_v54, %v11062_v34  ;;  %v2608_v46 = vrot.slane %v10604_v57, %v10463_v56 }
 0x1d8   :  { %v4490_v53 = vpack.c.bf16 %v4178_v37, %v4165_v36  ;;  %v3563_v62 = vadd.f32 %v2532_v4, %v11238_v50  ;;  %v2664_v63 = vrot.slane %v10595_v45, %v10466_v6 }
 0x1d9   :  { %v4025_v37 = vmax.f32 %v3609_v59, 0.0  ;;  %v4396_v47 = vpack.c.bf16 %v3993_v49, %v3980_v10  ;;  %v3603_v36 = vadd.f32 %v2588_v8, %v11192_v27  ;;  %v3608_v48 = vadd.f32 %v2608_v46, %v11205_v20 }
 0x1da   :  { %6661 = vmatpush1.bf16.msra.mxu0 %v9195_v12  ;;  %v9215_v12 = vld [vmem:[%s12916_s5 + $0x504] ss:$8 sps:$4 sm:$0xff]   ;;  %v3595_v49 = vadd.f32 %v2608_v46, %v11213_v28 }
 0x1db   :  { %6035 = vmatmul.mubr.bf16.gmra.mrb[84].mxu1 %v10914_v16  ;;  %6662 = vmatprep.subr.bf16.mxu0 %v9203_v38  ;;  %v3582_v16 = vadd.f32 %v2556_v58, %v11205_v20  ;;  %v3576_v38 = vadd.f32 %v2532_v4, %v11233_v31  ;;  %v4019_v59 = vmax.f32 %v3603_v36, 0.0  ;;  %v2584_v4 = vrot.slane %v13056_v54, %v11054_v41 }
 0x1dc   :  { %6044 = vmatprep.mubr.bf16.mxu1 %v10916_v17  ;;  %v3569_v17 = vadd.f32 %v2556_v58, %v11213_v28  ;;  %v9213_v58 = vld [vmem:[%s12916_s5 + $0x500] ss:$8 sps:$4 sm:$0xff]   ;;  %v4011_v46 = vmax.f32 %v3595_v49, 0.0 }
 0x1dd   :  { %6544 = vmatmul.mubr.bf16.gmra.mrb[56].mxu0 %v4490_v53  ;;  %v3998_v29 = vmax.f32 %v3582_v16, 0.0  ;;  %v3590_v53 = vadd.f32 %v2588_v8, %v11202_v9  ;;  %v9221_v8 = vld [vmem:[%s12916_s5 + $0x524] ss:$8 sps:$4 sm:$0xff]  }
 0x1de   :  { %6663 = vmatpush1.bf16.msra.mxu0 %v9201_v2  ;;  %6666 = vmatprep.mubr.bf16.mxu0 %v4402_v21  ;;  %v3985_v39 = vmax.f32 %v3569_v17, 0.0  ;;  %v4012_v2 = vmax.f32 %v3596_v23, 0.0  ;;  %v3635_v21 = vadd.f32 %v2664_v63, %v11165_v3  ;;  %v3979_v17 = vmax.f32 %v3563_v62, 0.0 }
 0x1df   :  { %6664 = vmatprep.subr.bf16.mxu0 %v9209_v15  ;;  %v3992_v15 = vmax.f32 %v3576_v38, 0.0  ;;  %v3622_v23 = vadd.f32 %v2664_v63, %v11170_v52  ;;  %v4006_v10 = vmax.f32 %v3590_v53, 0.0  ;;  %v2660_v62 = vrot.slane %v10595_v45, %v10463_v56  ;;  %v9219_v53 = vld [vmem:[%s12916_s5 + $0x520] ss:$8 sps:$4 sm:$0xff]  }
 0x1e0   :  { %v4401_v24 = vpack.c.bf16 %v3998_v29, %v3985_v39  ;;  %v4415_v16 = vpack.c.bf16 %v4025_v37, %v4012_v2  ;;  %v2640_v29 = vrot.slane %v13057_v30, %v11062_v34  ;;  %v3602_v37 = vadd.f32 %v2584_v4, %v11233_v31  ;;  %v9237_v39 = vld [vmem:[%s12916_s5 + $0x200] ss:$8 sps:$4 sm:$0xff]   ;;  %v9245_v2 = vld [vmem:[%s12916_s5 + $0x214] ss:$8 sps:$4 sm:$0xff]  }
 0x1e1   :  { %v4395_v38 = vpack.c.bf16 %v3992_v15, %v3979_v17  ;;  %v4409_v36 = vpack.c.bf16 %v4019_v59, %v4006_v10  ;;  %v3589_v63 = vadd.f32 %v2584_v4, %v11238_v50  ;;  %v9251_v10 = vld [vmem:[%s12916_s5 + $0x224] ss:$8 sps:$4 sm:$0xff]  }
 0x1e2   :  { %6665 = vmatpush1.bf16.msra.mxu0 %v9207_v19  ;;  %v9216_v19 = vld [vmem:[%s12916_s5 + $0x510] ss:$8 sps:$4 sm:$0xff]   ;;  %v3616_v15 = vadd.f32 %v2640_v29, %v11202_v9  ;;  %v4018_v59 = vmax.f32 %v3602_v37, 0.0 }
 0x1e3   :  { %6045 = vmatmul.mubr.bf16.gmra.mrb[88].mxu1 %v10918_v33  ;;  %6827 = vmatprep.subr.bf16.mxu0 %v9215_v12  ;;  %v9218_v33 = vld [vmem:[%s12916_s5 + $0x514] ss:$8 sps:$4 sm:$0xff]   ;;  %v4024_v12 = vmax.f32 %v3608_v48, 0.0 }
 0x1e4   :  { %6087 = vmatprep.mubr.bf16.mxu1 %v4396_v47  ;;  %v4051_v47 = vmax.f32 %v3635_v21, 0.0  ;;  %v9224_v21 = vld [vmem:[%s12916_s5 + $0x534] ss:$8 sps:$4 sm:$0xff]   ;;  %v4032_v37 = vmax.f32 %v3616_v15, 0.0 }
 0x1e5   :  { %6667 = vmatmul.mubr.bf16.vlgmr.msra.gmra.mrb[28].mxu0 %v4401_v24  ;;  %v4038_v24 = vmax.f32 %v3622_v23, 0.0  ;;  %v4414_v48 = vpack.c.bf16 %v4024_v12, %v4011_v46  ;;  %v3621_v23 = vadd.f32 %v2660_v62, %v11213_v28  ;;  %v4005_v12 = vmax.f32 %v3589_v63, 0.0 }
 0x1e6   :  { %6828 = vmatpush1.bf16.msra.mxu0 %v9213_v58  ;;  %6676 = vmatprep.mubr.bf16.mxu0 %v4415_v16  ;;  %v3629_v58 = vadd.f32 %v2640_v29, %v11192_v27  ;;  %v3634_v16 = vadd.f32 %v2660_v62, %v11205_v20  ;;  %v2636_v29 = vrot.slane %v13057_v30, %v11054_v41 }
 0x1e7   :  { %6829 = vmatprep.subr.bf16.mxu0 %v9218_v33  ;;  %v2716_v33 = vrot.slane %v10606_v61, %v10466_v6  ;;  %v4428_v49 = vpack.c.bf16 %v4051_v47, %v4038_v24  ;;  %v4408_v46 = vpack.c.bf16 %v4018_v59, %v4005_v12  ;;  %v4037_v24 = vmax.f32 %v3621_v23, 0.0  ;;  %v9225_v59 = vld [vmem:[%s12916_s5 + $0x540] ss:$8 sps:$4 sm:$0xff]  }
 0x1e8   :  { %v4045_v4 = vmax.f32 %v3629_v58, 0.0  ;;  %v4050_v47 = vmax.f32 %v3634_v16, 0.0  ;;  %v3628_v58 = vadd.f32 %v2636_v29, %v11233_v31  ;;  %v3615_v15 = vadd.f32 %v2636_v29, %v11238_v50  ;;  %v9252_v29 = vld [vmem:[%s12916_s5 + $0x230] ss:$8 sps:$4 sm:$0xff]  }
 0x1e9   :  { %v3661_v17 = vadd.f32 %v2716_v33, %v11165_v3 }
 0x1ea   :  { %6830 = vmatpush1.bf16.msra.mxu0 %v9216_v19  ;;  %v9243_v19 = vld [vmem:[%s12916_s5 + $0x210] ss:$8 sps:$4 sm:$0xff]   ;;  %v4422_v63 = vpack.c.bf16 %v4045_v4, %v4032_v37  ;;  %v9230_v4 = vld [vmem:[%s12916_s5 + $0x554] ss:$8 sps:$4 sm:$0xff]   ;;  %v4044_v23 = vmax.f32 %v3628_v58, 0.0 }
 0x1eb   :  { %6088 = vmatmul.mubr.bf16.vlgmr.msra.gmra.mrb[28].mxu1 %v4395_v38  ;;  %6831 = vmatprep.subr.bf16.mxu0 %v9221_v8  ;;  %v3648_v8 = vadd.f32 %v2716_v33, %v11170_v52  ;;  %v9222_v38 = vld [vmem:[%s12916_s5 + $0x530] ss:$8 sps:$4 sm:$0xff]   ;;  %v4077_v62 = vmax.f32 %v3661_v17, 0.0  ;;  %v2712_v33 = vrot.slane %v10606_v61, %v10463_v56  ;;  %v9260_v37 = vld [vmem:[%s12916_s5 + $0x244] ss:$8 sps:$4 sm:$0xff]  }
 0x1ec   :  { %6097 = vmatprep.mubr.bf16.mxu1 %v4409_v36  ;;  %6249 = vmatpush1.bf16.msra.mxu1 %v9237_v39  ;;  %v2692_v39 = vrot.slane %v13058_v22, %v11062_v34  ;;  %v9227_v36 = vld [vmem:[%s12916_s5 + $0x544] ss:$8 sps:$4 sm:$0xff]  }
 0x1ed   :  { %6677 = vmatmul.mubr.bf16.gmra.mrb[32].mxu0 %v4414_v48  ;;  %6250 = vmatprep.subr.bf16.mxu1 %v9245_v2  ;;  %v9249_v2 = vld [vmem:[%s12916_s5 + $0x220] ss:$8 sps:$4 sm:$0xff]   ;;  %v9254_v48 = vld [vmem:[%s12916_s5 + $0x234] ss:$8 sps:$4 sm:$0xff]   ;;  %v4064_v16 = vmax.f32 %v3648_v8, 0.0 }
 0x1ee   :  { %6686 = vmatprep.mubr.bf16.mxu0 %v4428_v49  ;;  %6832 = vmatpush1.bf16.msra.mxu0 %v9219_v53  ;;  %v3655_v53 = vadd.f32 %v2692_v39, %v11192_v27  ;;  %v4427_v49 = vpack.c.bf16 %v4050_v47, %v4037_v24  ;;  %v3642_v17 = vadd.f32 %v2692_v39, %v11202_v9  ;;  %v4031_v47 = vmax.f32 %v3615_v15, 0.0 }
 0x1ef   :  { %6833 = vmatprep.subr.bf16.mxu0 %v9224_v21  ;;  %v2768_v21 = vrot.slane %v10600_v7, %v10466_v6  ;;  %v2688_v39 = vrot.slane %v13058_v22, %v11054_v41 }
 0x1f0   :  { %6251 = vmatpush1.bf16.msra.mxu1 %v9243_v19  ;;  %v3660_v19 = vadd.f32 %v2712_v33, %v11205_v20  ;;  %v4071_v8 = vmax.f32 %v3655_v53, 0.0  ;;  %v4058_v58 = vmax.f32 %v3642_v17, 0.0  ;;  %v4421_v24 = vpack.c.bf16 %v4044_v23, %v4031_v47  ;;  %v9231_v23 = vld [vmem:[%s12916_s5 + $0x560] ss:$8 sps:$4 sm:$0xff]  }
 0x1f1   :  { %6252 = vmatprep.subr.bf16.mxu1 %v9251_v10  ;;  %v4441_v10 = vpack.c.bf16 %v4077_v62, %v4064_v16  ;;  %v3687_v12 = vadd.f32 %v2768_v21, %v11165_v3  ;;  %v3654_v53 = vadd.f32 %v2688_v39, %v11233_v31  ;;  %v3641_v17 = vadd.f32 %v2688_v39, %v11238_v50  ;;  %v9261_v39 = vld [vmem:[%s12916_s5 + $0x250] ss:$8 sps:$4 sm:$0xff]  }
 0x1f2   :  { %6834 = vmatpush1.bf16.msra.mxu0 %v9222_v38  ;;  %v3647_v38 = vadd.f32 %v2712_v33, %v11213_v28  ;;  %v4076_v62 = vmax.f32 %v3660_v19, 0.0  ;;  %v4435_v15 = vpack.c.bf16 %v4071_v8, %v4058_v58  ;;  %v9236_v8 = vld [vmem:[%s12916_s5 + $0x574] ss:$8 sps:$4 sm:$0xff]   ;;  %v9269_v58 = vld [vmem:[%s12916_s5 + $0x264] ss:$8 sps:$4 sm:$0xff]  }
 0x1f3   :  { %6098 = vmatmul.mubr.bf16.gmra.mrb[32].mxu1 %v4408_v46  ;;  %6835 = vmatprep.subr.bf16.mxu0 %v9227_v36  ;;  %v3674_v36 = vadd.f32 %v2768_v21, %v11170_v52  ;;  %v9228_v46 = vld [vmem:[%s12916_s5 + $0x550] ss:$8 sps:$4 sm:$0xff]   ;;  %v4103_v33 = vmax.f32 %v3687_v12, 0.0 }
 0x1f4   :  { %6107 = vmatprep.mubr.bf16.mxu1 %v4422_v63  ;;  %6253 = vmatpush1.bf16.msra.mxu1 %v9249_v2  ;;  %v2744_v2 = vrot.slane %v13059_v18, %v11062_v34  ;;  %v9233_v63 = vld [vmem:[%s12916_s5 + $0x564] ss:$8 sps:$4 sm:$0xff]   ;;  %v4063_v16 = vmax.f32 %v3647_v38, 0.0  ;;  %v4070_v38 = vmax.f32 %v3654_v53, 0.0 }
 0x1f5   :  { %6687 = vmatmul.mubr.bf16.gmra.mrb[36].mxu0 %v4427_v49  ;;  %6254 = vmatprep.subr.bf16.mxu1 %v9254_v48  ;;  %v9258_v48 = vld [vmem:[%s12916_s5 + $0x240] ss:$8 sps:$4 sm:$0xff]   ;;  %v9263_v49 = vld [vmem:[%s12916_s5 + $0x254] ss:$8 sps:$4 sm:$0xff]   ;;  %v4090_v19 = vmax.f32 %v3674_v36, 0.0 }
 0x1f6   :  { %6696 = vmatprep.mubr.bf16.mxu0 %v4441_v10  ;;  %6836 = vmatpush1.bf16.msra.mxu0 %v9225_v59  ;;  %v3681_v21 = vadd.f32 %v2744_v2, %v11192_v27  ;;  %v2764_v59 = vrot.slane %v10600_v7, %v10463_v56  ;;  %v4440_v10 = vpack.c.bf16 %v4076_v62, %v4063_v16  ;;  %v4057_v62 = vmax.f32 %v3641_v17, 0.0 }
 0x1f7   :  { %6837 = vmatprep.subr.bf16.mxu0 %v9230_v4  ;;  %v2820_v4 = vrot.slane %v10612_v0, %v10466_v6  ;;  %v3668_v12 = vadd.f32 %v2744_v2, %v11202_v9  ;;  %v2740_v2 = vrot.slane %v13059_v18, %v11054_v41 }
 0x1f8   :  { %6255 = vmatpush1.bf16.msra.mxu1 %v9252_v29  ;;  %v3686_v29 = vadd.f32 %v2764_v59, %v11205_v20  ;;  %v4097_v36 = vmax.f32 %v3681_v21, 0.0  ;;  %v4434_v16 = vpack.c.bf16 %v4070_v38, %v4057_v62  ;;  %v9240_v38 = vld [vmem:[%s12916_s5 + $0x580] ss:$8 sps:$4 sm:$0xff]  }
 0x1f9   :  { %6256 = vmatprep.subr.bf16.mxu1 %v9260_v37  ;;  %v4454_v37 = vpack.c.bf16 %v4103_v33, %v4090_v19  ;;  %v3713_v47 = vadd.f32 %v2820_v4, %v11165_v3  ;;  %v4084_v53 = vmax.f32 %v3668_v12, 0.0  ;;  %v3680_v21 = vadd.f32 %v2740_v2, %v11233_v31 }
 0x1fa   :  { %6838 = vmatpush1.bf16.msra.mxu0 %v9228_v46  ;;  %v3673_v46 = vadd.f32 %v2764_v59, %v11213_v28  ;;  %v4102_v33 = vmax.f32 %v3686_v29, 0.0  ;;  %v3667_v12 = vadd.f32 %v2740_v2, %v11238_v50  ;;  %v9270_v2 = vld [vmem:[%s12916_s5 + $0x270] ss:$8 sps:$4 sm:$0xff]  }
 0x1fb   :  { %6108 = vmatmul.mubr.bf16.gmra.mrb[36].mxu1 %v4421_v24  ;;  %6839 = vmatprep.subr.bf16.mxu0 %v9233_v63  ;;  %v3700_v63 = vadd.f32 %v2820_v4, %v11170_v52  ;;  %v9234_v24 = vld [vmem:[%s12916_s5 + $0x570] ss:$8 sps:$4 sm:$0xff]   ;;  %v4129_v59 = vmax.f32 %v3713_v47, 0.0  ;;  %v4448_v17 = vpack.c.bf16 %v4097_v36, %v4084_v53  ;;  %v9248_v36 = vld [vmem:[%s12916_s5 + $0x594] ss:$8 sps:$4 sm:$0xff]  }
 0x1fc   :  { %6117 = vmatprep.mubr.bf16.mxu1 %v4435_v15  ;;  %6257 = vmatpush1.bf16.msra.mxu1 %v9258_v48  ;;  %v2796_v48 = vrot.slane %v13064_v25, %v11062_v34  ;;  %v9242_v15 = vld [vmem:[%s12916_s5 + $0x584] ss:$8 sps:$4 sm:$0xff]   ;;  %v4089_v19 = vmax.f32 %v3673_v46, 0.0  ;;  %v4096_v46 = vmax.f32 %v3680_v21, 0.0 }
 0x1fd   :  { %6697 = vmatmul.mubr.bf16.gmra.mrb[40].mxu0 %v4440_v10  ;;  %6258 = vmatprep.subr.bf16.mxu1 %v9263_v49  ;;  %v9267_v49 = vld [vmem:[%s12916_s5 + $0x260] ss:$8 sps:$4 sm:$0xff]   ;;  %v9272_v10 = vld [vmem:[%s12916_s5 + $0x274] ss:$8 sps:$4 sm:$0xff]   ;;  %v4116_v29 = vmax.f32 %v3700_v63, 0.0 }
 0x1fe   :  { %6706 = vmatprep.mubr.bf16.mxu0 %v4454_v37  ;;  %6840 = vmatpush1.bf16.msra.mxu0 %v9231_v23  ;;  %v3707_v4 = vadd.f32 %v2796_v48, %v11192_v27  ;;  %v2816_v23 = vrot.slane %v10612_v0, %v10463_v56  ;;  %v4453_v37 = vpack.c.bf16 %v4102_v33, %v4089_v19  ;;  %v9278_v53 = vld [vmem:[%s12916_s5 + $0x284] ss:$8 sps:$4 sm:$0xff]   ;;  %v4083_v33 = vmax.f32 %v3667_v12, 0.0 }
 0x1ff   :  { %6841 = vmatprep.subr.bf16.mxu0 %v9236_v8  ;;  %v2872_v8 = vrot.slane %v10602_v40, %v10466_v6  ;;  %v3694_v47 = vadd.f32 %v2796_v48, %v11202_v9  ;;  %v2792_v48 = vrot.slane %v13064_v25, %v11054_v41 }
 0x200   :  { %6259 = vmatpush1.bf16.msra.mxu1 %v9261_v39  ;;  %v3712_v39 = vadd.f32 %v2816_v23, %v11205_v20  ;;  %v4123_v63 = vmax.f32 %v3707_v4, 0.0  ;;  %v4447_v19 = vpack.c.bf16 %v4096_v46, %v4083_v33 }
 0x201   :  { %6260 = vmatprep.subr.bf16.mxu1 %v9269_v58  ;;  %v4467_v58 = vpack.c.bf16 %v4129_v59, %v4116_v29  ;;  %v3739_v62 = vadd.f32 %v2872_v8, %v11165_v3  ;;  %v4110_v21 = vmax.f32 %v3694_v47, 0.0  ;;  %v3706_v4 = vadd.f32 %v2792_v48, %v11233_v31 }
 0x202   :  { %6842 = vmatpush1.bf16.msra.mxu0 %v9234_v24  ;;  %v3699_v24 = vadd.f32 %v2816_v23, %v11213_v28  ;;  %v4128_v59 = vmax.f32 %v3712_v39, 0.0  ;;  %v3693_v47 = vadd.f32 %v2792_v48, %v11238_v50 }
 0x203   :  { %6118 = vmatmul.mubr.bf16.gmra.mrb[40].mxu1 %v4434_v16  ;;  %6843 = vmatprep.subr.bf16.mxu0 %v9242_v15  ;;  %v3726_v15 = vadd.f32 %v2872_v8, %v11170_v52  ;;  %v9246_v16 = vld [vmem:[%s12916_s5 + $0x590] ss:$8 sps:$4 sm:$0xff]   ;;  %v4155_v23 = vmax.f32 %v3739_v62, 0.0  ;;  %v4461_v12 = vpack.c.bf16 %v4123_v63, %v4110_v21 }
 0x204   :  { %6127 = vmatprep.mubr.bf16.mxu1 %v4448_v17  ;;  %6261 = vmatpush1.bf16.msra.mxu1 %v9267_v49  ;;  %v2848_v49 = vrot.slane %v13065_v44, %v11062_v34  ;;  %v9257_v17 = vld [vmem:[%s12916_s5 + $0x5a4] ss:$8 sps:$4 sm:$0xff]   ;;  %v4115_v29 = vmax.f32 %v3699_v24, 0.0  ;;  %v9266_v24 = vld [vmem:[%s12916_s5 + $0x5b4] ss:$8 sps:$4 sm:$0xff]  }
 0x205   :  { %6707 = vmatmul.mubr.bf16.gmra.mrb[44].mxu0 %v4453_v37  ;;  %6262 = vmatprep.subr.bf16.mxu1 %v9272_v10  ;;  %v9276_v10 = vld [vmem:[%s12916_s5 + $0x280] ss:$8 sps:$4 sm:$0xff]   ;;  %v9281_v37 = vld [vmem:[%s12916_s5 + $0x294] ss:$8 sps:$4 sm:$0xff]   ;;  %v4142_v39 = vmax.f32 %v3726_v15, 0.0 }
 0x206   :  { %6716 = vmatprep.mubr.bf16.mxu0 %v4467_v58  ;;  %6844 = vmatpush1.bf16.msra.mxu0 %v9240_v38  ;;  %v3733_v8 = vadd.f32 %v2848_v49, %v11192_v27  ;;  %v2868_v38 = vrot.slane %v10602_v40, %v10463_v56  ;;  %v9255_v58 = vld [vmem:[%s12916_s5 + $0x5a0] ss:$8 sps:$4 sm:$0xff]   ;;  %v4466_v62 = vpack.c.bf16 %v4128_v59, %v4115_v29  ;;  %v9279_v15 = vld [vmem:[%s12916_s5 + $0x290] ss:$8 sps:$4 sm:$0xff]   ;;  %v9287_v59 = vld [vmem:[%s12916_s5 + $0x2a4] ss:$8 sps:$4 sm:$0xff]  }
 0x207   :  { %6845 = vmatprep.subr.bf16.mxu0 %v9248_v36  ;;  %v13068_v36 = vld [vmem:[#allocation28_spill] sm:$0xff]  ;;  %v4480_v33 = vpack.c.bf16 %v4155_v23, %v4142_v39  ;;  %v13089_v40 = vld [vmem:[#allocation38_spill] sm:$0xff] }
 0x208   :  { %6263 = vmatpush1.bf16.msra.mxu1 %v9270_v2  ;;  %v2924_v46 = vrot.slane %v13068_v36, %v10466_v6  ;;  %v3720_v2 = vadd.f32 %v2848_v49, %v11202_v9  ;;  %v3738_v63 = vadd.f32 %v2868_v38, %v11205_v20  ;;  %v3725_v21 = vadd.f32 %v2868_v38, %v11213_v28  ;;  %v9275_v29 = vld [vmem:[%s12916_s5 + $0x5c4] ss:$8 sps:$4 sm:$0xff]  }
 0x209   :  { %6264 = vmatprep.subr.bf16.mxu1 %v9278_v53  ;;  %v4122_v53 = vmax.f32 %v3706_v4, 0.0  ;;  %v4109_v49 = vmax.f32 %v3693_v47, 0.0  ;;  %v9264_v4 = vld [vmem:[%s12916_s5 + $0x5b0] ss:$8 sps:$4 sm:$0xff]   ;;  %v9285_v47 = vld [vmem:[%s12916_s5 + $0x2a0] ss:$8 sps:$4 sm:$0xff]  }
 0x20a   :  { %6846 = vmatpush1.bf16.msra.mxu0 %v9246_v16  ;;  %v3765_v48 = vadd.f32 %v2924_v46, %v11165_v3  ;;  %v4149_v16 = vmax.f32 %v3733_v8, 0.0  ;;  %v4136_v23 = vmax.f32 %v3720_v2, 0.0  ;;  %v9290_v2 = vld [vmem:[%s12916_s5 + $0x2b4] ss:$8 sps:$4 sm:$0xff]  }
 0x20b   :  { %6128 = vmatmul.mubr.bf16.gmra.mrb[44].mxu1 %v4447_v19  ;;  %6847 = vmatprep.subr.bf16.mxu0 %v9257_v17  ;;  %v2844_v17 = vrot.slane %v13065_v44, %v11054_v41  ;;  %v3752_v19 = vadd.f32 %v2924_v46, %v11170_v52  ;;  %v4460_v8 = vpack.c.bf16 %v4122_v53, %v4109_v49  ;;  %v4141_v46 = vmax.f32 %v3725_v21, 0.0  ;;  %v13069_v53 = vld [vmem:[#allocation29_spill] sm:$0xff] }
 0x20c   :  { %6137 = vmatprep.mubr.bf16.mxu1 %v4461_v12  ;;  %6265 = vmatpush1.bf16.msra.mxu1 %v9276_v10  ;;  %v4154_v10 = vmax.f32 %v3738_v63, 0.0  ;;  %v2900_v12 = vrot.slane %v13066_v11, %v11062_v34  ;;  %v4474_v39 = vpack.c.bf16 %v4149_v16, %v4136_v23 }
 0x20d   :  { %6717 = vmatmul.mubr.bf16.gmra.mrb[48].mxu0 %v4466_v62  ;;  %6266 = vmatprep.subr.bf16.mxu1 %v9281_v37  ;;  %v3732_v38 = vadd.f32 %v2844_v17, %v11233_v31  ;;  %v4181_v37 = vmax.f32 %v3765_v48, 0.0  ;;  %v2920_v62 = vrot.slane %v13068_v36, %v10463_v56  ;;  %v3719_v63 = vadd.f32 %v2844_v17, %v11238_v50  ;;  %v9273_v48 = vld [vmem:[%s12916_s5 + $0x5c0] ss:$8 sps:$4 sm:$0xff]  }
 0x20e   :  { %6726 = vmatprep.mubr.bf16.mxu0 %v4480_v33  ;;  %6848 = vmatpush1.bf16.msra.mxu0 %v9255_v58  ;;  %v3759_v58 = vadd.f32 %v2900_v12, %v11192_v27  ;;  %v2976_v33 = vrot.slane %v13069_v53, %v10466_v6  ;;  %v3746_v16 = vadd.f32 %v2900_v12, %v11202_v9  ;;  %v9296_v12 = vld [vmem:[%s12916_s5 + $0x2c4] ss:$8 sps:$4 sm:$0xff]  }
 0x20f   :  { %6849 = vmatprep.subr.bf16.mxu0 %v9266_v24  ;;  %v4168_v24 = vmax.f32 %v3752_v19, 0.0  ;;  %v3764_v21 = vadd.f32 %v2920_v62, %v11205_v20  ;;  %v4148_v49 = vmax.f32 %v3732_v38, 0.0 }
 0x210   :  { %6267 = vmatpush1.bf16.msra.mxu1 %v9279_v15  ;;  %v4479_v15 = vpack.c.bf16 %v4154_v10, %v4141_v46  ;;  %v3791_v19 = vadd.f32 %v2976_v33, %v11165_v3  ;;  %v4175_v23 = vmax.f32 %v3759_v58, 0.0  ;;  %v3751_v10 = vadd.f32 %v2920_v62, %v11213_v28  ;;  %v13070_v46 = vld [vmem:[#allocation15_spill] sm:$0xff]  ;;  %v9293_v62 = vld [vmem:[%s12916_s5 + $0x5e4] ss:$8 sps:$4 sm:$0xff]  }
 0x211   :  { %6268 = vmatprep.subr.bf16.mxu1 %v9287_v59  ;;  %v9284_v59 = vld [vmem:[%s12916_s5 + $0x5d4] ss:$8 sps:$4 sm:$0xff]   ;;  %v4493_v17 = vpack.c.bf16 %v4181_v37, %v4168_v24  ;;  %v3778_v38 = vadd.f32 %v2976_v33, %v11170_v52  ;;  %v9282_v37 = vld [vmem:[%s12916_s5 + $0x5d0] ss:$8 sps:$4 sm:$0xff]   ;;  %v2952_v58 = vrot.slane %v13070_v46, %v11062_v34  ;;  %v9294_v33 = vld [vmem:[%s12916_s5 + $0x2c0] ss:$8 sps:$4 sm:$0xff]  }
 0x212   :  { %6850 = vmatpush1.bf16.msra.mxu0 %v9264_v4  ;;  %v9288_v4 = vld [vmem:[%s12916_s5 + $0x2b0] ss:$8 sps:$4 sm:$0xff]   ;;  %v4207_v24 = vmax.f32 %v3791_v19, 0.0 }
 0x213   :  { %6138 = vmatmul.mubr.bf16.gmra.mrb[48].mxu1 %v4460_v8  ;;  %6851 = vmatprep.subr.bf16.mxu0 %v9275_v29  ;;  %v4135_v29 = vmax.f32 %v3719_v63, 0.0  ;;  %v2896_v8 = vrot.slane %v13066_v11, %v11054_v41  ;;  %v13071_v19 = vld [vmem:[#allocation33_spill] sm:$0xff] }
 0x214   :  { %6147 = vmatprep.mubr.bf16.mxu1 %v4474_v39  ;;  %6269 = vmatpush1.bf16.msra.mxu1 %v9285_v47  ;;  %v4162_v47 = vmax.f32 %v3746_v16, 0.0  ;;  %v4180_v39 = vmax.f32 %v3764_v21, 0.0  ;;  %v3785_v16 = vadd.f32 %v2952_v58, %v11192_v27  ;;  %v2972_v21 = vrot.slane %v13069_v53, %v10463_v56 }
 0x215   :  { %6727 = vmatmul.mubr.bf16.gmra.mrb[52].mxu0 %v4479_v15  ;;  %6270 = vmatprep.subr.bf16.mxu1 %v9290_v2  ;;  %v4473_v2 = vpack.c.bf16 %v4148_v49, %v4135_v29  ;;  %v3758_v63 = vadd.f32 %v2896_v8, %v11233_v31  ;;  %v4167_v15 = vmax.f32 %v3751_v10, 0.0  ;;  %v3745_v49 = vadd.f32 %v2896_v8, %v11238_v50  ;;  %v9302_v8 = vld [vmem:[%s12916_s5 + $0x5f4] ss:$8 sps:$4 sm:$0xff]  }
 0x216   :  { %6736 = vmatprep.mubr.bf16.mxu0 %v4493_v17  ;;  %6852 = vmatpush1.bf16.msra.mxu0 %v9273_v48  ;;  %v4487_v48 = vpack.c.bf16 %v4175_v23, %v4162_v47  ;;  %v4194_v17 = vmax.f32 %v3778_v38, 0.0  ;;  %v9291_v23 = vld [vmem:[%s12916_s5 + $0x5e0] ss:$8 sps:$4 sm:$0xff]   ;;  %v3790_v29 = vadd.f32 %v2972_v21, %v11205_v20 }
 0x217   :  { %6853 = vmatprep.subr.bf16.mxu0 %v9284_v59  ;;  %v9299_v59 = vld [vmem:[%s12916_s5 + $0x2d4] ss:$8 sps:$4 sm:$0xff]   ;;  %v4492_v10 = vpack.c.bf16 %v4180_v39, %v4167_v15  ;;  %v4174_v38 = vmax.f32 %v3758_v63, 0.0  ;;  %v4201_v39 = vmax.f32 %v3785_v16, 0.0  ;;  %v2948_v63 = vrot.slane %v13070_v46, %v11054_v41 }
 0x218   :  { %6271 = vmatpush1.bf16.msra.mxu1 %v9288_v4  ;;  %v3028_v4 = vrot.slane %v13071_v19, %v10466_v6  ;;  %v4506_v47 = vpack.c.bf16 %v4207_v24, %v4194_v17  ;;  %v4206_v16 = vmax.f32 %v3790_v29, 0.0 }
 0x219   :  { %6272 = vmatprep.subr.bf16.mxu1 %v9296_v12  ;;  %v3772_v12 = vadd.f32 %v2952_v58, %v11202_v9  ;;  %v3777_v58 = vadd.f32 %v2972_v21, %v11213_v28  ;;  %v13072_v21 = vld [vmem:[#allocation19_spill] sm:$0xff] }
 0x21a   :  { %6854 = vmatpush1.bf16.msra.mxu0 %v9282_v37  ;;  %v9297_v37 = vld [vmem:[%s12916_s5 + $0x2d0] ss:$8 sps:$4 sm:$0xff]   ;;  %v3804_v24 = vadd.f32 %v3028_v4, %v11170_v52 }
 0x21b   :  { %6148 = vmatmul.mubr.bf16.gmra.mrb[52].mxu1 %v4473_v2  ;;  %6855 = vmatprep.subr.bf16.mxu0 %v9293_v62  ;;  %v3817_v2 = vadd.f32 %v3028_v4, %v11165_v3  ;;  %v9305_v62 = vld [vmem:[%s12916_s5 + $0x2e4] ss:$8 sps:$4 sm:$0xff]   ;;  %v4188_v15 = vmax.f32 %v3772_v12, 0.0  ;;  %v9303_v4 = vld [vmem:[%s12916_s5 + $0x2e0] ss:$8 sps:$4 sm:$0xff]   ;;  %v4193_v12 = vmax.f32 %v3777_v58, 0.0 }
 0x21c   :  { %6157 = vmatprep.mubr.bf16.mxu1 %v4487_v48  ;;  %6273 = vmatpush1.bf16.msra.mxu1 %v9294_v33  ;;  %v4161_v48 = vmax.f32 %v3745_v49, 0.0  ;;  %v9300_v33 = vld [vmem:[%s12916_s5 + $0x5f0] ss:$8 sps:$4 sm:$0xff]   ;;  %v9311_v49 = vld [vmem:[%s12916_s5 + $0x604] ss:$8 sps:$4 sm:$0xff]  }
 0x21d   :  { %6737 = vmatmul.mubr.bf16.gmra.mrb[56].mxu0 %v4492_v10  ;;  %6274 = vmatprep.subr.bf16.mxu1 %v9299_v59  ;;  %v3004_v59 = vrot.slane %v13072_v21, %v11062_v34  ;;  %v3784_v10 = vadd.f32 %v2948_v63, %v11233_v31 }
 0x21e   :  { %6746 = vmatprep.mubr.bf16.mxu0 %v4506_v47  ;;  %6856 = vmatpush1.bf16.msra.mxu0 %v9291_v23  ;;  %v4486_v17 = vpack.c.bf16 %v4174_v38, %v4161_v48  ;;  %v4233_v47 = vmax.f32 %v3817_v2, 0.0  ;;  %v4500_v23 = vpack.c.bf16 %v4201_v39, %v4188_v15  ;;  %v9308_v38 = vld [vmem:[%s12916_s5 + $0x2f4] ss:$8 sps:$4 sm:$0xff]   ;;  %v3771_v2 = vadd.f32 %v2948_v63, %v11238_v50  ;;  %v9306_v63 = vld [vmem:[%s12916_s5 + $0x2f0] ss:$8 sps:$4 sm:$0xff]  }
 0x21f   :  { %6857 = vmatprep.subr.bf16.mxu0 %v9302_v8  ;;  %v3811_v29 = vadd.f32 %v3004_v59, %v11192_v27  ;;  %v3024_v8 = vrot.slane %v13071_v19, %v10463_v56  ;;  %v13073_v48 = vld [vmem:[#allocation30_spill] sm:$0xff]  ;;  %v4505_v39 = vpack.c.bf16 %v4206_v16, %v4193_v12  ;;  %v3798_v58 = vadd.f32 %v3004_v59, %v11202_v9 }
 0x220   :  { %6275 = vmatpush1.bf16.msra.mxu1 %v9297_v37  ;;  %v4220_v37 = vmax.f32 %v3804_v24, 0.0  ;;  %v3080_v43 = vrot.slane %v13073_v48, %v10466_v6  ;;  %v4187_v16 = vmax.f32 %v3771_v2, 0.0  ;;  %v3000_v59 = vrot.slane %v13072_v21, %v11054_v41 }
 0x221   :  { %6276 = vmatprep.subr.bf16.mxu1 %v9305_v62  ;;  %v3816_v15 = vadd.f32 %v3024_v8, %v11205_v20  ;;  %v4200_v62 = vmax.f32 %v3784_v10, 0.0  ;;  %v4227_v24 = vmax.f32 %v3811_v29, 0.0 }
 0x222   :  { %6858 = vmatpush1.bf16.msra.mxu0 %v9300_v33  ;;  %v4519_v60 = vpack.c.bf16 %v4233_v47, %v4220_v37  ;;  %v3843_v14 = vadd.f32 %v3080_v43, %v11165_v3  ;;  %v3803_v33 = vadd.f32 %v3024_v8, %v11213_v28  ;;  %v13074_v47 = vld [vmem:[#allocation16_spill] sm:$0xff]  ;;  %v3810_v12 = vadd.f32 %v3000_v59, %v11233_v31 }
 0x223   :  { %6158 = vmatmul.mubr.bf16.gmra.mrb[56].mxu1 %v4486_v17  ;;  %7020 = vmatprep.subr.bf16.mxu0 %v9311_v49  ;;  %v3830_v49 = vadd.f32 %v3080_v43, %v11170_v52  ;;  %v4214_v17 = vmax.f32 %v3798_v58, 0.0  ;;  %v4232_v10 = vmax.f32 %v3816_v15, 0.0  ;;  %v9322_v43 = vld [vmem:[%s12916_s5 + $0x304] ss:$8 sps:$4 sm:$0xff]   ;;  %v3797_v2 = vadd.f32 %v3000_v59, %v11238_v50  ;;  %v13075_v58 = vld [vmem:[#allocation34_spill] sm:$0xff] }
 0x224   :  { %6167 = vmatprep.mubr.bf16.mxu1 %v4500_v23  ;;  %6277 = vmatpush1.bf16.msra.mxu1 %v9303_v4  ;;  %v3056_v4 = vrot.slane %v13074_v47, %v11062_v34  ;;  %v4499_v23 = vpack.c.bf16 %v4200_v62, %v4187_v16  ;;  %v4259_v37 = vmax.f32 %v3843_v14, 0.0  ;;  %v4219_v8 = vmax.f32 %v3803_v33, 0.0 }
 0x225   :  { %6747 = vmatmul.mubr.bf16.gmra.mrb[60].mxu0 %v4505_v39  ;;  %6278 = vmatprep.subr.bf16.mxu1 %v9308_v38  ;;  %v4513_v29 = vpack.c.bf16 %v4227_v24, %v4214_v17  ;;  %v4246_v39 = vmax.f32 %v3830_v49, 0.0  ;;  %v3132_v14 = vrot.slane %v13075_v58, %v10466_v6  ;;  %v4226_v24 = vmax.f32 %v3810_v12, 0.0 }
 0x226   :  { %6756 = vmatprep.mubr.bf16.mxu0 %v4519_v60  ;;  %v3837_v38 = vadd.f32 %v3056_v4, %v11192_v27  ;;  %v3076_v60 = vrot.slane %v13073_v48, %v10463_v56  ;;  %v4518_v15 = vpack.c.bf16 %v4232_v10, %v4219_v8  ;;  %v3824_v62 = vadd.f32 %v3056_v4, %v11202_v9  ;;  %v13076_v4 = vld [vmem:[#allocation20_spill] sm:$0xff] }
 0x227   :  { %v4532_v33 = vpack.c.bf16 %v4259_v37, %v4246_v39  ;;  %v3869_v16 = vadd.f32 %v3132_v14, %v11165_v3  ;;  %v3052_v59 = vrot.slane %v13074_v47, %v11054_v41  ;;  %v3856_v49 = vadd.f32 %v3132_v14, %v11170_v52 }
 0x228   :  { %6279 = vmatpush1.bf16.msra.mxu1 %v9306_v63  ;;  %v3842_v63 = vadd.f32 %v3076_v60, %v11205_v20  ;;  %v4253_v17 = vmax.f32 %v3837_v38, 0.0  ;;  %v4240_v10 = vmax.f32 %v3824_v62, 0.0  ;;  %v3108_v8 = vrot.slane %v13076_v4, %v11062_v34 }
 0x229   :  { %8229 = vmatprep.subr.bf16.mxu1 %v9322_v43  ;;  %v4213_v43 = vmax.f32 %v3797_v2, 0.0  ;;  %v3836_v37 = vadd.f32 %v3052_v59, %v11233_v31  ;;  %v4285_v39 = vmax.f32 %v3869_v16, 0.0  ;;  %v3128_v2 = vrot.slane %v13075_v58, %v10463_v56 }
 0x22a   :  { %v3823_v14 = vadd.f32 %v3052_v59, %v11238_v50  ;;  %v4272_v62 = vmax.f32 %v3856_v49, 0.0  ;;  %v3104_v42 = vrot.slane %v13076_v4, %v11054_v41 }
 0x22b   :  { %6168 = vmatmul.mubr.bf16.gmra.mrb[60].mxu1 %v4499_v23  ;;  %v3829_v23 = vadd.f32 %v3076_v60, %v11213_v28  ;;  %v4512_v12 = vpack.c.bf16 %v4226_v24, %v4213_v43  ;;  %v3863_v60 = vadd.f32 %v3108_v8, %v11192_v27  ;;  %v13080_v43 = vld [vmem:[#allocation11_spill] sm:$0xff] }
 0x22c   :  { %6177 = vmatprep.mubr.bf16.mxu1 %v4513_v29  ;;  %v4258_v29 = vmax.f32 %v3842_v63, 0.0  ;;  %v13079_v63 = vld [vmem:[#allocation31_spill] sm:$0xff]  ;;  %v11616_v16 = vrot.slane %v11181_v35, %v13080_v43  ;;  %v4545_v59 = vpack.c.bf16 %v4285_v39, %v4272_v62 }
 0x22d   :  { %6757 = vmatmul.mubr.bf16.gmra.mrb[64].mxu0 %v4518_v15  ;;  %v4526_v15 = vpack.c.bf16 %v4253_v17, %v4240_v10  ;;  %v4245_v38 = vmax.f32 %v3829_v23, 0.0  ;;  %v3184_v24 = vrot.slane %v13079_v63, %v10466_v6  ;;  %v3850_v23 = vadd.f32 %v3108_v8, %v11202_v9 }
 0x22e   :  { %6766 = vmatprep.mubr.bf16.mxu0 %v4532_v33  ;;  %v13077_v33 = vld [vmem:[#allocation6_spill] sm:$0xff]  ;;  %v3868_v10 = vadd.f32 %v3128_v2, %v11205_v20  ;;  %v4279_v32 = vmax.f32 %v3863_v60, 0.0 }
 0x22f   :  { %v11609_v55 = vsub.s32 5, %v13077_v33  ;;  %v4531_v17 = vpack.c.bf16 %v4258_v29, %v4245_v38  ;;  %v3895_v49 = vadd.f32 %v3184_v24, %v11165_v3  ;;  %v13081_v29 = vld [vmem:[#allocation17_spill] sm:$0xff]  ;;  %v4239_v38 = vmax.f32 %v3823_v14, 0.0 }
 0x230   :  { %v3160_v8 = vrot.slane %v13081_v29, %v11062_v34  ;;  %v3882_v47 = vadd.f32 %v3184_v24, %v11170_v52  ;;  %v4266_v62 = vmax.f32 %v3850_v23, 0.0  ;;  %v4284_v60 = vmax.f32 %v3868_v10, 0.0 }
 0x231   :  { %13078 = vst [vmem:[#allocation13_spill] sm:$0xff] %v11609_v55  ;;  %v11622_v33 = vrot.slane %v11181_v35, %v11609_v55  ;;  %v3156_v35 = vrot.slane %v13081_v29, %v11054_v41  ;;  %v4311_v24 = vmax.f32 %v3895_v49, 0.0  ;;  %v3180_v10 = vrot.slane %v13079_v63, %v10463_v56  ;;  %v13085_v49 = vld [vmem:[#allocation22_spill] sm:$0xff] }
 0x232   :  { %v4539_v21 = vpack.c.bf16 %v4279_v32, %v4266_v62  ;;  %v3889_v23 = vadd.f32 %v3160_v8, %v11192_v27  ;;  %v4298_v58 = vmax.f32 %v3882_v47, 0.0  ;;  %v11656_v48 = vrot.slane %v13085_v49, %v11062_v34 }
 0x233   :  { %6178 = vmatmul.mubr.bf16.gmra.mrb[64].mxu1 %v4512_v12  ;;  %v4252_v12 = vmax.f32 %v3836_v37, 0.0  ;;  %v13082_v37 = vld [vmem:[#allocation21_spill] sm:$0xff]  ;;  %v3876_v32 = vadd.f32 %v3160_v8, %v11202_v9  ;;  %v11662_v62 = vrot.slane %v13085_v49, %v11054_v41  ;;  %v11667_v63 = vrot.slane %v13053_v51, %v11609_v55 }
 0x234   :  { %6187 = vmatprep.mubr.bf16.mxu1 %v4526_v15  ;;  %v3855_v15 = vadd.f32 %v3128_v2, %v11213_v28  ;;  %v3212_v39 = vrot.slane %v13082_v37, %v11062_v34  ;;  %v13083_v2 = vld [vmem:[#allocation18_spill] sm:$0xff]  ;;  %v4305_v19 = vmax.f32 %v3889_v23, 0.0  ;;  %v11676_v8 = vrot.slane %v13056_v54, %v11609_v55 }
 0x235   :  { %6767 = vmatmul.mubr.bf16.gmra.mrb[68].mxu0 %v4531_v17  ;;  %v11637_v17 = vrot.slane %v13082_v37, %v11054_v41  ;;  %v11641_v4 = vrot.slane %v13083_v2, %v11062_v34  ;;  %v4525_v14 = vpack.c.bf16 %v4252_v12, %v4239_v38  ;;  %v11646_v29 = vrot.slane %v13083_v2, %v11054_v41  ;;  %v13084_v12 = vld [vmem:[#allocation35_spill] sm:$0xff] }
 0x236   :  { %6776 = vmatprep.mubr.bf16.mxu0 %v4545_v59  ;;  %v3862_v59 = vadd.f32 %v3104_v42, %v11233_v31  ;;  %v4271_v46 = vmax.f32 %v3855_v15, 0.0  ;;  %v3849_v37 = vadd.f32 %v3104_v42, %v11238_v50  ;;  %v3236_v38 = vrot.slane %v13084_v12, %v10466_v6 }
 0x237   :  { %v3894_v15 = vadd.f32 %v3180_v10, %v11205_v20  ;;  %v4558_v42 = vpack.c.bf16 %v4311_v24, %v4298_v58  ;;  %v4292_v24 = vmax.f32 %v3876_v32, 0.0  ;;  %v3915_v32 = vadd.f32 %v3212_v39, %v11192_v27 }
 0x238   :  { %v4544_v2 = vpack.c.bf16 %v4284_v60, %v4271_v46  ;;  %v3921_v47 = vadd.f32 %v3236_v38, %v11165_v3  ;;  %v3881_v46 = vadd.f32 %v3180_v10, %v11213_v28  ;;  %v4265_v60 = vmax.f32 %v3849_v37, 0.0 }
 0x239   :  { %v3908_v58 = vadd.f32 %v3236_v38, %v11170_v52  ;;  %v4310_v23 = vmax.f32 %v3894_v15, 0.0  ;;  %v11693_v37 = vrot.slane %v13058_v22, %v11609_v55  ;;  %v3888_v38 = vadd.f32 %v3156_v35, %v11233_v31 }
 0x23a   :  { %v4552_v49 = vpack.c.bf16 %v4305_v19, %v4292_v24  ;;  %v4297_v53 = vmax.f32 %v3881_v46, 0.0  ;;  %v3875_v15 = vadd.f32 %v3156_v35, %v11238_v50  ;;  %v3902_v19 = vadd.f32 %v3212_v39, %v11202_v9 }
 0x23b   :  { %6188 = vmatmul.mubr.bf16.gmra.mrb[68].mxu1 %v4525_v14  ;;  %v4278_v14 = vmax.f32 %v3862_v59, 0.0  ;;  %v11681_v59 = vrot.slane %v13056_v54, %v13080_v43  ;;  %v11698_v54 = vrot.slane %v13058_v22, %v13080_v43  ;;  %v4324_v11 = vmax.f32 %v3908_v58, 0.0 }
 0x23c   :  { %6197 = vmatprep.mubr.bf16.mxu1 %v4539_v21  ;;  %v11672_v21 = vrot.slane %v13053_v51, %v13080_v43  ;;  %v11689_v51 = vrot.slane %v13057_v30, %v13080_v43  ;;  %v4557_v22 = vpack.c.bf16 %v4310_v23, %v4297_v53  ;;  %v11714_v24 = vrot.slane %v13059_v18, %v13080_v43 }
 0x23d   :  { %6777 = vmatmul.mubr.bf16.gmra.mrb[72].mxu0 %v4544_v2  ;;  %v11685_v2 = vrot.slane %v13057_v30, %v11609_v55  ;;  %v4538_v10 = vpack.c.bf16 %v4278_v14, %v4265_v60  ;;  %v3232_v30 = vrot.slane %v13084_v12, %v10463_v56  ;;  %v13086_v14 = vld [vmem:[#allocation32_spill] sm:$0xff]  ;;  %v3901_v58 = vadd.f32 %v11637_v17, %v11238_v50 }
 0x23e   :  { %6786 = vmatprep.mubr.bf16.mxu0 %v4558_v42  ;;  %v4337_v42 = vmax.f32 %v3921_v47, 0.0  ;;  %v3288_v60 = vrot.slane %v13086_v14, %v10466_v6  ;;  %v11708_v47 = vrot.slane %v13059_v18, %v11609_v55  ;;  %v4331_v36 = vmax.f32 %v3915_v32, 0.0 }
 0x23f   :  { %v3920_v46 = vadd.f32 %v3232_v30, %v11205_v20  ;;  %v11722_v53 = vrot.slane %v13064_v25, %v11609_v55  ;;  %v11726_v39 = vrot.slane %v13064_v25, %v13080_v43  ;;  %v11730_v18 = vrot.slane %v13067_v1, %v13080_v43 }
 0x240   :  { %v4571_v35 = vpack.c.bf16 %v4337_v42, %v4324_v11  ;;  %v3947_v12 = vadd.f32 %v3288_v60, %v11165_v3  ;;  %v4291_v11 = vmax.f32 %v3875_v15, 0.0  ;;  %v3914_v23 = vadd.f32 %v11637_v17, %v11233_v31  ;;  %v13088_v42 = vld [vmem:[#allocation37_spill] sm:$0xff] }
 0x241   :  { %13087 = vst [vmem:[#allocation25_spill] sm:$0xff] %v11726_v39  ;;  %v11737_v32 = vadd.f32 %v13088_v42, %v11616_v16  ;;  %v3941_v25 = vadd.f32 %v11641_v4, %v11192_v27  ;;  %v11743_v44 = vadd.f32 %v13089_v40, %v11622_v33  ;;  %v3284_v42 = vrot.slane %v13086_v14, %v10463_v56  ;;  %v13090_v40 = vld [vmem:[#allocation36_spill] sm:$0xff] }
 0x242   :  { %v4363_v55 = vmax.f32 %v3947_v12, 0.0  ;;  %v3940_v43 = vadd.f32 %v11646_v29, %v11233_v31  ;;  %v3340_v0 = vrot.slane %v13090_v40, %v10466_v6 }
 0x243   :  { %6198 = vmatmul.mubr.bf16.gmra.mrb[72].mxu1 %v4538_v10  ;;  %v4304_v10 = vmax.f32 %v3888_v38, 0.0  ;;  %v3934_v38 = vadd.f32 %v3288_v60, %v11170_v52  ;;  %v3928_v60 = vadd.f32 %v11641_v4, %v11202_v9  ;;  %v4357_v12 = vmax.f32 %v3941_v25, 0.0 }
 0x244   :  { %6207 = vmatprep.mubr.bf16.mxu1 %v4552_v49  ;;  %v3907_v49 = vadd.f32 %v3232_v30, %v11213_v28  ;;  %v4318_v30 = vmax.f32 %v3902_v19, 0.0  ;;  %v4330_v19 = vmax.f32 %v3914_v23, 0.0  ;;  %v3946_v4 = vadd.f32 %v3284_v42, %v11205_v20 }
 0x245   :  { %6787 = vmatmul.mubr.bf16.gmra.mrb[76].mxu0 %v4557_v22  ;;  %v4336_v22 = vmax.f32 %v3920_v46, 0.0  ;;  %v4551_v15 = vpack.c.bf16 %v4304_v10, %v4291_v11  ;;  %v4350_v46 = vmax.f32 %v3934_v38, 0.0  ;;  %v3954_v11 = vadd.f32 %v11656_v48, %v11202_v9  ;;  %v13091_v38 = vld [vmem:[#allocation39_spill] sm:$0xff] }
 0x246   :  { %6796 = vmatprep.mubr.bf16.mxu0 %v4571_v35  ;;  %v4317_v35 = vmax.f32 %v3901_v58, 0.0  ;;  %v4565_v39 = vpack.c.bf16 %v4331_v36, %v4318_v30  ;;  %v4323_v17 = vmax.f32 %v3907_v49, 0.0  ;;  %v3927_v36 = vadd.f32 %v11646_v29, %v11238_v50 }
 0x247   :  { %v4584_v58 = vpack.c.bf16 %v4363_v55, %v4350_v46  ;;  %v3933_v49 = vadd.f32 %v3284_v42, %v11213_v28  ;;  %v3973_v23 = vadd.f32 %v3340_v0, %v11165_v3  ;;  %v11762_v30 = vadd.f32 %v13091_v38, %v11616_v16 }
 0x248   :  { %v4570_v10 = vpack.c.bf16 %v4336_v22, %v4323_v17  ;;  %v4344_v29 = vmax.f32 %v3928_v60, 0.0  ;;  %v3967_v55 = vadd.f32 %v11656_v48, %v11192_v27  ;;  %v4564_v25 = vpack.c.bf16 %v4330_v19, %v4317_v35 }
 0x249   :  { %v3960_v9 = vadd.f32 %v3340_v0, %v11170_v52  ;;  %v3966_v3 = vadd.f32 %v11662_v62, %v11233_v31  ;;  %v4343_v16 = vmax.f32 %v3927_v36, 0.0  ;;  %v4362_v42 = vmax.f32 %v3946_v4, 0.0 }
 0x24a   :  { %v4578_v17 = vpack.c.bf16 %v4357_v12, %v4344_v29  ;;  %v4349_v46 = vmax.f32 %v3933_v49, 0.0  ;;  %v4389_v60 = vmax.f32 %v3973_v23, 0.0  ;;  %v3953_v27 = vadd.f32 %v11662_v62, %v11238_v50 }
 0x24b   :  { %6208 = vmatmul.mubr.bf16.gmra.mrb[76].mxu1 %v4551_v15  ;;  %v4356_v15 = vmax.f32 %v3940_v43, 0.0  ;;  %v4383_v48 = vmax.f32 %v3967_v55, 0.0  ;;  %v3566_v0 = vadd.f32 %v11667_v63, %v11743_v44  ;;  %v2568_v52 = vrot.slane %v13067_v1, %v11062_v34 }
 0x24c   :  { %6217 = vmatprep.mubr.bf16.mxu1 %v4565_v39  ;;  %v13092_v39 = vld [vmem:[#allocation40_spill] sm:$0xff]  ;;  %v4376_v35 = vmax.f32 %v3960_v9, 0.0  ;;  %v4382_v19 = vmax.f32 %v3966_v3, 0.0  ;;  %v4583_v36 = vpack.c.bf16 %v4362_v42, %v4349_v46  ;;  %v3565_v49 = vadd.f32 %v11672_v21, %v11737_v32 }
 0x24d   :  { %v11766_v22 = vadd.f32 %v13092_v39, %v11622_v33  ;;  %6797 = vmatmul.mubr.bf16.gmra.mrb[80].mxu0 %v4570_v10  ;;  %v3336_v33 = vrot.slane %v13090_v40, %v10463_v56  ;;  %v4370_v10 = vmax.f32 %v3954_v11, 0.0  ;;  %v4577_v31 = vpack.c.bf16 %v4356_v15, %v4343_v16  ;;  %v13093_v39 = vld [vmem:[#allocation9_spill] sm:$0xff]  ;;  %v13094_v42 = vld [vmem:[#allocation8_spill] sm:$0xff] }
 0x24e   :  { %6806 = vmatprep.mubr.bf16.mxu0 %v4584_v58  ;;  %v3585_v62 = vadd.f32 %v2568_v52, %v11107_v13  ;;  %v4597_v4 = vpack.c.bf16 %v4389_v60, %v4376_v35  ;;  %v4369_v58 = vmax.f32 %v3953_v27, 0.0  ;;  %v3982_v38 = vmax.f32 %v3566_v0, 0.0 }
 0x24f   :  { %v3972_v43 = vadd.f32 %v3336_v33, %v11205_v20  ;;  %v3579_v12 = vadd.f32 %v11667_v63, %v11766_v22  ;;  %v3959_v50 = vadd.f32 %v3336_v33, %v11213_v28  ;;  %v3578_v20 = vadd.f32 %v11672_v21, %v11762_v30 }
 0x250   :  { %v3605_v11 = vadd.f32 %v11676_v8, %v11766_v22  ;;  %v4591_v23 = vpack.c.bf16 %v4383_v48, %v4370_v10  ;;  %v3572_v29 = vadd.f32 %v2568_v52, %v13093_v39  ;;  %v4590_v28 = vpack.c.bf16 %v4382_v19, %v4369_v58 }
 0x251   :  { %v4388_v63 = vmax.f32 %v3972_v43, 0.0  ;;  %v3995_v55 = vmax.f32 %v3579_v12, 0.0  ;;  %v3592_v15 = vadd.f32 %v11676_v8, %v11743_v44  ;;  %v4375_v9 = vmax.f32 %v3959_v50, 0.0 }
 0x252   :  { %v4001_v21 = vmax.f32 %v3585_v62, 0.0  ;;  %v3994_v3 = vmax.f32 %v3578_v20, 0.0  ;;  %v3981_v16 = vmax.f32 %v3565_v49, 0.0  ;;  %v4021_v10 = vmax.f32 %v3605_v11, 0.0 }
 0x253   :  { %6218 = vmatmul.mubr.bf16.gmra.mrb[80].mxu1 %v4564_v25  ;;  %v2564_v25 = vrot.slane %v13067_v1, %v11054_v41  ;;  %v4596_v60 = vpack.c.bf16 %v4388_v63, %v4375_v9  ;;  %v3988_v27 = vmax.f32 %v3572_v29, 0.0  ;;  %v2616_v1 = vrot.slane %v10604_v57, %v11054_v41 }
 0x254   :  { %6227 = vmatprep.mubr.bf16.mxu1 %v4578_v17  ;;  %v2620_v17 = vrot.slane %v10604_v57, %v11062_v34  ;;  %v4398_v8 = vpack.c.bf16 %v3995_v55, %v3982_v38  ;;  %v4008_v43 = vmax.f32 %v3592_v15, 0.0  ;;  %v3591_v0 = vadd.f32 %v11681_v59, %v11737_v32 }
 0x255   :  { %6807 = vmatmul.mubr.bf16.gmra.mrb[84].mxu0 %v4583_v36  ;;  %v3571_v33 = vadd.f32 %v2564_v25, %v13094_v42  ;;  %v3584_v46 = vadd.f32 %v2564_v25, %v11100_v5  ;;  %v3604_v52 = vadd.f32 %v11681_v59, %v11762_v30  ;;  %v4404_v35 = vpack.c.bf16 %v4001_v21, %v3988_v27 }
 0x256   :  { %6816 = vmatprep.mubr.bf16.mxu0 %v4597_v4  ;;  %v3611_v48 = vadd.f32 %v2620_v17, %v11107_v13  ;;  %v11808_v19 = vpack.c.bf16 %v3994_v3, %v3981_v16  ;;  %v3598_v12 = vadd.f32 %v2620_v17, %v13093_v39  ;;  %v3610_v36 = vadd.f32 %v2616_v1, %v11100_v5 }
 0x257   :  { %v3987_v50 = vmax.f32 %v3571_v33, 0.0  ;;  %v4000_v62 = vmax.f32 %v3584_v46, 0.0  ;;  %v11812_v20 = vpack.c.bf16 %v4021_v10, %v4008_v43  ;;  %v3597_v58 = vadd.f32 %v2616_v1, %v13094_v42  ;;  %v9309_v10 = vld [vmem:[%s12916_s5 + $0x600] ss:$8 sps:$4 sm:$0xff]  }
 0x258   :  { %v4027_v4 = vmax.f32 %v3611_v48, 0.0  ;;  %v3618_v59 = vadd.f32 %v11685_v2, %v11743_v44  ;;  %v3631_v49 = vadd.f32 %v11685_v2, %v11766_v22  ;;  %v4007_v11 = vmax.f32 %v3591_v0, 0.0 }
 0x259   :  { %v2668_v38 = vrot.slane %v10595_v45, %v11054_v41  ;;  %v4014_v29 = vmax.f32 %v3598_v12, 0.0  ;;  %v4026_v55 = vmax.f32 %v3610_v36, 0.0  ;;  %v3617_v25 = vadd.f32 %v11689_v51, %v11737_v32 }
 0x25a   :  { %v3630_v15 = vadd.f32 %v11689_v51, %v11762_v30  ;;  %v4403_v9 = vpack.c.bf16 %v4000_v62, %v3987_v50  ;;  %v3657_v3 = vadd.f32 %v11693_v37, %v11766_v22  ;;  %v4013_v16 = vmax.f32 %v3597_v58, 0.0 }
 0x25b   :  { %6228 = vmatmul.mubr.bf16.gmra.mrb[84].mxu1 %v4577_v31  ;;  %v2672_v31 = vrot.slane %v10595_v45, %v11062_v34  ;;  %v3636_v2 = vadd.f32 %v2668_v38, %v11100_v5  ;;  %v4417_v17 = vpack.c.bf16 %v4027_v4, %v4014_v29  ;;  %v4034_v33 = vmax.f32 %v3618_v59, 0.0 }
 0x25c   :  { %6237 = vmatprep.mubr.bf16.mxu1 %v4591_v23  ;;  %v4020_v23 = vmax.f32 %v3604_v52, 0.0  ;;  %v4047_v46 = vmax.f32 %v3631_v49, 0.0  ;;  %v3623_v27 = vadd.f32 %v2668_v38, %v13094_v42  ;;  %v3644_v48 = vadd.f32 %v11693_v37, %v11743_v44 }
 0x25d   :  { %6817 = vmatmul.mubr.bf16.gmra.mrb[88].mxu0 %v4596_v60  ;;  %v3637_v63 = vadd.f32 %v2672_v31, %v11107_v13  ;;  %v3624_v21 = vadd.f32 %v2672_v31, %v13093_v39  ;;  %v4416_v1 = vpack.c.bf16 %v4026_v55, %v4013_v16  ;;  %v4033_v43 = vmax.f32 %v3617_v25, 0.0 }
 0x25e   :  { %6859 = vmatprep.mubr.bf16.mxu0 %v4404_v35  ;;  %v11835_v60 = vpack.c.bf16 %v4020_v23, %v4007_v11  ;;  %v4046_v0 = vmax.f32 %v3630_v15, 0.0  ;;  %v2724_v52 = vrot.slane %v10606_v61, %v11062_v34  ;;  %v4052_v12 = vmax.f32 %v3636_v2, 0.0  ;;  %v9312_v11 = vld [vmem:[%s12916_s5 + $0x610] ss:$8 sps:$4 sm:$0xff]  }
 0x25f   :  { %v4053_v51 = vmax.f32 %v3637_v63, 0.0  ;;  %v4040_v35 = vmax.f32 %v3624_v21, 0.0  ;;  %v4073_v36 = vmax.f32 %v3657_v3, 0.0  ;;  %v2720_v50 = vrot.slane %v10606_v61, %v11054_v41 }
 0x260   :  { %v11847_v62 = vpack.c.bf16 %v4047_v46, %v4034_v33  ;;  %v3663_v37 = vadd.f32 %v2724_v52, %v11107_v13  ;;  %v3656_v31 = vadd.f32 %v11698_v54, %v11762_v30  ;;  %v4039_v58 = vmax.f32 %v3623_v27, 0.0  ;;  %v13095_v46 = vld [vmem:[#allocation12_spill] sm:$0xff] }
 0x261   :  { %v4430_v4 = vpack.c.bf16 %v4053_v51, %v4040_v35  ;;  %v4060_v59 = vmax.f32 %v3644_v48, 0.0  ;;  %v3662_v49 = vadd.f32 %v2720_v50, %v11100_v5  ;;  %v11858_v23 = vpack.c.bf16 %v4046_v0, %v4033_v43  ;;  %v9323_v0 = vld [vmem:[%s12916_s5 + $0x300] ss:$8 sps:$4 sm:$0xff]  }
 0x262   :  { %v3650_v63 = vadd.f32 %v2724_v52, %v13093_v39  ;;  %v3670_v38 = vadd.f32 %v11708_v47, %v11743_v44  ;;  %v11865_v29 = vpack.c.bf16 %v4052_v12, %v4039_v58  ;;  %v3649_v25 = vadd.f32 %v2720_v50, %v13094_v42  ;;  %v9320_v52 = vld [vmem:[%s12916_s5 + $0x634] ss:$8 sps:$4 sm:$0xff]  }
 0x263   :  { %6238 = vmatmul.mubr.bf16.gmra.mrb[88].mxu1 %v4590_v28  ;;  %v9314_v28 = vld [vmem:[%s12916_s5 + $0x614] ss:$8 sps:$4 sm:$0xff]   ;;  %v11867_v55 = vpack.c.bf16 %v4073_v36, %v4060_v59  ;;  %v3683_v15 = vadd.f32 %v11708_v47, %v11766_v22  ;;  %v4079_v21 = vmax.f32 %v3663_v37, 0.0  ;;  %v4072_v3 = vmax.f32 %v3656_v31, 0.0  ;;  %v9315_v47 = vld [vmem:[%s12916_s5 + $0x620] ss:$8 sps:$4 sm:$0xff]  }
 0x264   :  { %6280 = vmatprep.mubr.bf16.mxu1 %v4398_v8  ;;  %v3643_v8 = vadd.f32 %v11698_v54, %v11737_v32  ;;  %v2776_v54 = vrot.slane %v10600_v7, %v11062_v34  ;;  %v4078_v16 = vmax.f32 %v3662_v49, 0.0  ;;  %v3669_v33 = vadd.f32 %v11714_v24, %v11737_v32 }
 0x265   :  { %6860 = vmatmul.mubr.bf16.vlgmr.msra.gmra.mrb[28].mxu0 %v4403_v9  ;;  %v9317_v9 = vld [vmem:[%s12916_s5 + $0x624] ss:$8 sps:$4 sm:$0xff]   ;;  %v3586_v51 = vadd.f32 %v11730_v18, %v11102_v26  ;;  %v4066_v27 = vmax.f32 %v3650_v63, 0.0  ;;  %v4086_v48 = vmax.f32 %v3670_v38, 0.0  ;;  %v3682_v43 = vadd.f32 %v11714_v24, %v11762_v30 }
 0x266   :  { %7021 = vmatpush1.bf16.msra.mxu0 %v9309_v10  ;;  %6869 = vmatprep.mubr.bf16.mxu0 %v4417_v17  ;;  %v4059_v2 = vmax.f32 %v3643_v8, 0.0  ;;  %v3689_v17 = vadd.f32 %v2776_v54, %v11107_v13  ;;  %v3573_v10 = vadd.f32 %v11730_v18, %v13095_v46  ;;  %v4099_v18 = vmax.f32 %v3683_v15, 0.0 }
 0x267   :  { %7022 = vmatprep.subr.bf16.mxu0 %v9314_v28  ;;  %v4065_v28 = vmax.f32 %v3649_v25, 0.0  ;;  %v4002_v12 = vmax.f32 %v3586_v51, 0.0  ;;  %v4443_v24 = vpack.c.bf16 %v4079_v21, %v4066_v27  ;;  %v2772_v37 = vrot.slane %v10600_v7, %v11054_v41  ;;  %v9326_v21 = vld [vmem:[%s12916_s5 + $0x324] ss:$8 sps:$4 sm:$0xff]  }
 0x268   :  { %v3989_v35 = vmax.f32 %v3573_v10, 0.0  ;;  %v11899_v36 = vpack.c.bf16 %v4072_v3, %v4059_v2  ;;  %v4105_v50 = vmax.f32 %v3689_v17, 0.0  ;;  %v4085_v31 = vmax.f32 %v3669_v33, 0.0  ;;  %v13097_v2 = vld [vmem:[#allocation11_spill] sm:$0xff] }
 0x269   :  { %v11903_v8 = vpack.c.bf16 %v4078_v16, %v4065_v28  ;;  %v11907_v58 = vadd.f32 %v11722_v53, %v11743_v44  ;;  %v3675_v63 = vadd.f32 %v2772_v37, %v13094_v42  ;;  %v11920_v25 = vpack.c.bf16 %v4099_v18, %v4086_v48 }
 0x26a   :  { %7023 = vmatpush1.bf16.msra.mxu0 %v9312_v11  ;;  %v11912_v59 = vpack.c.bf16 %v4002_v12, %v3989_v35  ;;  %v4098_v11 = vmax.f32 %v3682_v43, 0.0  ;;  %v3688_v15 = vadd.f32 %v2772_v37, %v11100_v5  ;;  %v2624_v3 = vrot.slane %v10604_v57, %v13097_v2  ;;  %v13099_v12 = vld [vmem:[#allocation13_spill] sm:$0xff] }
 0x26b   :  { %6281 = vmatmul.mubr.bf16.vlgmr.msra.gmra.mrb[28].mxu1 %v11808_v19  ;;  %v3676_v19 = vadd.f32 %v2776_v54, %v13093_v39  ;;  %7024 = vmatprep.subr.bf16.mxu0 %v9317_v9  ;;  %v9325_v54 = vld [vmem:[%s12916_s5 + $0x310] ss:$8 sps:$4 sm:$0xff]   ;;  %v3709_v9 = vadd.f32 %v11722_v53, %v11766_v22  ;;  %v2676_v27 = vrot.slane %v10595_v45, %v13097_v2  ;;  %v4091_v48 = vmax.f32 %v3675_v63, 0.0  ;;  %v9328_v45 = vld [vmem:[%s12916_s5 + $0x334] ss:$8 sps:$4 sm:$0xff]  }
 0x26c   :  { %6290 = vmatprep.mubr.bf16.mxu1 %v11812_v20  ;;  %8245 = vmatpush1.bf16.msra.mxu1 %v9323_v0  ;;  %v9324_v20 = vld [vmem:[%s12916_s5 + $0x314] ss:$8 sps:$4 sm:$0xff]   ;;  %v3599_v53 = vadd.f32 %v2624_v3, %v13095_v46  ;;  %v3612_v51 = vadd.f32 %v2624_v3, %v11102_v26  ;;  %v11942_v57 = vpack.c.bf16 %v4098_v11, %v4085_v31  ;;  %v4104_v0 = vmax.f32 %v3688_v15, 0.0  ;;  %v9329_v15 = vld [vmem:[%s12916_s5 + $0x330] ss:$8 sps:$4 sm:$0xff]  }
 0x26d   :  { %8230 = vmatprep.subr.bf16.mxu1 %v9324_v20  ;;  %6870 = vmatmul.mubr.bf16.gmra.mrb[32].mxu0 %v4416_v1  ;;  %v9318_v1 = vld [vmem:[%s12916_s5 + $0x630] ss:$8 sps:$4 sm:$0xff]   ;;  %v4092_v49 = vmax.f32 %v3676_v19, 0.0  ;;  %v4112_v19 = vmax.f32 %v11907_v58, 0.0  ;;  %v3625_v28 = vadd.f32 %v2676_v27, %v13095_v46  ;;  %v4125_v18 = vmax.f32 %v3709_v9, 0.0 }
 0x26e   :  { %6879 = vmatprep.mubr.bf16.mxu0 %v4430_v4  ;;  %7025 = vmatpush1.bf16.msra.mxu0 %v9315_v47  ;;  %v13096_v4 = vld [vmem:[#allocation27_spill] sm:$0xff]  ;;  %v13098_v47 = vld [vmem:[#allocation25_spill] sm:$0xff] }
 0x26f   :  { %v2828_v38 = vrot.slane %v13096_v4, %v11062_v34  ;;  %7026 = vmatprep.subr.bf16.mxu0 %v9320_v52  ;;  %v11930_v17 = vpack.c.bf16 %v4105_v50, %v4092_v49  ;;  %v3695_v10 = vadd.f32 %v13098_v47, %v11737_v32  ;;  %v3708_v43 = vadd.f32 %v13098_v47, %v11762_v30  ;;  %v13100_v50 = vld [vmem:[#allocation10_spill] sm:$0xff]  ;;  %v9330_v9 = vld [vmem:[%s12916_s5 + $0x344] ss:$8 sps:$4 sm:$0xff]  }
 0x270   :  { %8246 = vmatpush1.bf16.msra.mxu1 %v9325_v54  ;;  %v4028_v52 = vmax.f32 %v3612_v51, 0.0  ;;  %v2824_v35 = vrot.slane %v13096_v4, %v11054_v41  ;;  %v2856_v37 = vrot.slane %v13100_v50, %v13099_v12  ;;  %v3638_v49 = vadd.f32 %v2676_v27, %v11102_v26 }
 0x271   :  { %8231 = vmatprep.subr.bf16.mxu1 %v9326_v21  ;;  %v3702_v16 = vadd.f32 %v2828_v38, %v13093_v39  ;;  %v3715_v33 = vadd.f32 %v2828_v38, %v11107_v13  ;;  %v4111_v20 = vmax.f32 %v3695_v10, 0.0  ;;  %v4124_v11 = vmax.f32 %v3708_v43, 0.0  ;;  %v13101_v38 = vld [vmem:[#allocation26_spill] sm:$0xff] }
 0x272   :  { %7027 = vmatpush1.bf16.msra.mxu0 %v9318_v1  ;;  %v3701_v63 = vadd.f32 %v2824_v35, %v13094_v42  ;;  %v2880_v54 = vrot.slane %v13101_v38, %v11062_v34  ;;  %v4041_v21 = vmax.f32 %v3625_v28, 0.0  ;;  %v4054_v3 = vmax.f32 %v3638_v49, 0.0 }
 0x273   :  { %6291 = vmatmul.mubr.bf16.gmra.mrb[32].mxu1 %v11835_v60  ;;  %v9327_v60 = vld [vmem:[%s12916_s5 + $0x320] ss:$8 sps:$4 sm:$0xff]   ;;  %v4118_v31 = vmax.f32 %v3702_v16, 0.0  ;;  %v4131_v58 = vmax.f32 %v3715_v33, 0.0  ;;  %v2728_v16 = vrot.slane %v10606_v61, %v13097_v2  ;;  %v11975_v33 = vpack.c.bf16 %v4104_v0, %v4091_v48 }
 0x274   :  { %6300 = vmatprep.mubr.bf16.mxu1 %v11847_v62  ;;  %8247 = vmatpush1.bf16.msra.mxu1 %v9327_v60  ;;  %v4015_v62 = vmax.f32 %v3599_v53, 0.0  ;;  %v11977_v47 = vpack.c.bf16 %v4125_v18, %v4112_v19  ;;  %v3735_v10 = vadd.f32 %v2856_v37, %v11766_v22  ;;  %v3741_v53 = vadd.f32 %v2880_v54, %v11107_v13 }
 0x275   :  { %8232 = vmatprep.subr.bf16.mxu1 %v9328_v45  ;;  %6880 = vmatmul.mubr.bf16.gmra.mrb[36].mxu0 %v11865_v29  ;;  %v3714_v29 = vadd.f32 %v2824_v35, %v11100_v5  ;;  %v11982_v51 = vpack.c.bf16 %v4131_v58, %v4118_v31  ;;  %v11984_v27 = vpack.c.bf16 %v4054_v3, %v4041_v21  ;;  %v4117_v48 = vmax.f32 %v3701_v63, 0.0  ;;  %v13103_v35 = vld [vmem:[#allocation28_spill] sm:$0xff] }
 0x276   :  { %6889 = vmatprep.mubr.bf16.mxu0 %v4443_v24  ;;  %v11959_v1 = vpack.c.bf16 %v4028_v52, %v4015_v62  ;;  %v3722_v24 = vadd.f32 %v2856_v37, %v11743_v44  ;;  %v3651_v43 = vadd.f32 %v2728_v16, %v13095_v46  ;;  %v2780_v60 = vrot.slane %v10600_v7, %v13097_v2  ;;  %v9332_v7 = vld [vmem:[%s12916_s5 + $0x354] ss:$8 sps:$4 sm:$0xff]  }
 0x277   :  { %13102 = vst [vmem:[#allocation32_spill] sm:$0xff] %v11984_v27  ;;  %v11990_v61 = vpack.c.bf16 %v4124_v11, %v4111_v20  ;;  %v4130_v19 = vmax.f32 %v3714_v29, 0.0  ;;  %v3728_v0 = vadd.f32 %v2880_v54, %v13093_v39  ;;  %v2876_v62 = vrot.slane %v13101_v38, %v11054_v41  ;;  %v9334_v54 = vld [vmem:[%s12916_s5 + $0x364] ss:$8 sps:$4 sm:$0xff]  }
 0x278   :  { %8248 = vmatpush1.bf16.msra.mxu1 %v9329_v15  ;;  %v4138_v45 = vmax.f32 %v3722_v24, 0.0  ;;  %v3677_v52 = vadd.f32 %v2780_v60, %v13095_v46  ;;  %v4151_v28 = vmax.f32 %v3735_v10, 0.0  ;;  %v4157_v18 = vmax.f32 %v3741_v53, 0.0  ;;  %v13105_v10 = vld [vmem:[#allocation14_spill] sm:$0xff] }
 0x279   :  { %8233 = vmatprep.subr.bf16.mxu1 %v9330_v9  ;;  %v2852_v20 = vrot.slane %v13100_v50, %v13097_v2  ;;  %v2932_v37 = vrot.slane %v13103_v35, %v11062_v34  ;;  %v3740_v31 = vadd.f32 %v2876_v62, %v11100_v5  ;;  %v4067_v58 = vmax.f32 %v3651_v43, 0.0 }
 0x27a   :  { %v3690_v11 = vadd.f32 %v2780_v60, %v11102_v26  ;;  %v3727_v29 = vadd.f32 %v2876_v62, %v13094_v42  ;;  %v4093_v24 = vmax.f32 %v3677_v52, 0.0  ;;  %v2832_v21 = vrot.slane %v13096_v4, %v13097_v2 }
 0x27b   :  { %6301 = vmatmul.mubr.bf16.gmra.mrb[36].mxu1 %v11858_v23  ;;  %v9331_v23 = vld [vmem:[%s12916_s5 + $0x340] ss:$8 sps:$4 sm:$0xff]   ;;  %v12012_v63 = vadd.f32 %v2852_v20, %v11737_v32  ;;  %v3767_v50 = vadd.f32 %v2932_v37, %v11107_v13  ;;  %v12029_v3 = vpack.c.bf16 %v4130_v19, %v4117_v48  ;;  %v2908_v53 = vrot.slane %v13105_v10, %v13099_v12 }
 0x27c   :  { %6310 = vmatprep.mubr.bf16.mxu1 %v11867_v55  ;;  %8249 = vmatpush1.bf16.msra.mxu1 %v9331_v23  ;;  %v3664_v55 = vadd.f32 %v2728_v16, %v11102_v26  ;;  %v4106_v9 = vmax.f32 %v3690_v11, 0.0  ;;  %v4144_v16 = vmax.f32 %v3728_v0, 0.0  ;;  %v3754_v43 = vadd.f32 %v2932_v37, %v13093_v39  ;;  %v9335_v0 = vld [vmem:[%s12916_s5 + $0x360] ss:$8 sps:$4 sm:$0xff]  }
 0x27d   :  { %8234 = vmatprep.subr.bf16.mxu1 %v9332_v7  ;;  %6890 = vmatmul.mubr.bf16.gmra.mrb[40].mxu0 %v11903_v8  ;;  %v12015_v8 = vadd.f32 %v2852_v20, %v11762_v30  ;;  %v12035_v60 = vpack.c.bf16 %v4151_v28, %v4138_v45  ;;  %v4156_v23 = vmax.f32 %v3740_v31, 0.0  ;;  %v3703_v7 = vadd.f32 %v2832_v21, %v13095_v46 }
 0x27e   :  { %6899 = vmatprep.mubr.bf16.mxu0 %v11930_v17  ;;  %v4080_v49 = vmax.f32 %v3664_v55, 0.0  ;;  %v9333_v17 = vld [vmem:[%s12916_s5 + $0x350] ss:$8 sps:$4 sm:$0xff]   ;;  %v12037_v62 = vpack.c.bf16 %v4106_v9, %v4093_v24  ;;  %v4482_v4 = vpack.c.bf16 %v4157_v18, %v4144_v16  ;;  %v12042_v48 = vadd.f32 %v2908_v53, %v11743_v44  ;;  %v9338_v24 = vld [vmem:[%s12916_s5 + $0x384] ss:$8 sps:$4 sm:$0xff]  }
 0x27f   :  { %v4183_v19 = vmax.f32 %v3767_v50, 0.0  ;;  %v4143_v52 = vmax.f32 %v3727_v29, 0.0  ;;  %v3716_v28 = vadd.f32 %v2832_v21, %v11102_v26  ;;  %v4170_v18 = vmax.f32 %v3754_v43, 0.0  ;;  %v9340_v55 = vld [vmem:[%s12916_s5 + $0x394] ss:$8 sps:$4 sm:$0xff]  }
 0x280   :  { %8250 = vmatpush1.bf16.msra.mxu1 %v9333_v17  ;;  %v12025_v15 = vpack.c.bf16 %v4080_v49, %v4067_v58  ;;  %13106 = vst [vmem:[#allocation38_spill] sm:$0xff] %v12037_v62  ;;  %v12058_v20 = vrot.slane %v13103_v35, %v11054_v41  ;;  %v12069_v49 = vadd.f32 %v2908_v53, %v11766_v22  ;;  %v4119_v11 = vmax.f32 %v3703_v7, 0.0  ;;  %v13109_v53 = vld [vmem:[#allocation33_spill] sm:$0xff] }
 0x281   :  { %8235 = vmatprep.subr.bf16.mxu1 %v9334_v54  ;;  %v12066_v58 = vpack.c.bf16 %v4156_v23, %v4143_v52  ;;  %v12071_v29 = vpack.c.bf16 %v4183_v19, %v4170_v18  ;;  %v2936_v21 = vrot.slane %v13103_v35, %v13097_v2  ;;  %v3040_v43 = vrot.slane %v13109_v53, %v13097_v2  ;;  %v13110_v19 = vld [vmem:[#allocation30_spill] sm:$0xff]  ;;  %v13113_v35 = vld [vmem:[#allocation35_spill] sm:$0xff] }
 0x282   :  { %13104 = vst [vmem:[#allocation37_spill] sm:$0xff] %v12025_v15  ;;  %v12075_v50 = vadd.f32 %v12058_v20, %v11100_v5  ;;  %v3248_v18 = vrot.slane %v13113_v35, %v13097_v2  ;;  %v9341_v15 = vld [vmem:[%s12916_s5 + $0x390] ss:$8 sps:$4 sm:$0xff]  }
 0x283   :  { %6311 = vmatmul.mubr.bf16.gmra.mrb[40].mxu1 %v11899_v36  ;;  %v2884_v36 = vrot.slane %v13101_v38, %v13097_v2  ;;  %v13107_v38 = vld [vmem:[#allocation29_spill] sm:$0xff] }
 0x284   :  { %6320 = vmatprep.mubr.bf16.mxu1 %v11920_v25  ;;  %8251 = vmatpush1.bf16.msra.mxu1 %v9335_v0  ;;  %v9336_v25 = vld [vmem:[%s12916_s5 + $0x374] ss:$8 sps:$4 sm:$0xff]   ;;  %v12062_v37 = vrot.slane %v13107_v38, %v11062_v34  ;;  %v2988_v16 = vrot.slane %v13107_v38, %v13097_v2  ;;  %v3092_v0 = vrot.slane %v13110_v19, %v13097_v2 }
 0x285   :  { %8236 = vmatprep.subr.bf16.mxu1 %v9336_v25  ;;  %6900 = vmatmul.mubr.bf16.gmra.mrb[44].mxu0 %v11975_v33  ;;  %v3729_v31 = vadd.f32 %v2884_v36, %v13095_v46  ;;  %v4132_v33 = vmax.f32 %v3716_v28, 0.0  ;;  %v3742_v54 = vadd.f32 %v2884_v36, %v11102_v26  ;;  %v13111_v36 = vld [vmem:[#allocation34_spill] sm:$0xff]  ;;  %v13112_v25 = vld [vmem:[#allocation31_spill] sm:$0xff] }
 0x286   :  { %6909 = vmatprep.mubr.bf16.mxu0 %v11982_v51  ;;  %v12079_v17 = vadd.f32 %v12062_v37, %v11107_v13  ;;  %v9337_v51 = vld [vmem:[%s12916_s5 + $0x370] ss:$8 sps:$4 sm:$0xff]   ;;  %v3144_v52 = vrot.slane %v13111_v36, %v13097_v2  ;;  %v3196_v28 = vrot.slane %v13112_v25, %v13097_v2 }
 0x287   :  { %v12088_v9 = vpack.c.bf16 %v4132_v33, %v4119_v11  ;;  %v4145_v23 = vmax.f32 %v3729_v31, 0.0  ;;  %v4158_v7 = vmax.f32 %v3742_v54, 0.0  ;;  %v3300_v11 = vrot.slane %v13086_v14, %v13097_v2 }
 0x288   :  { %8252 = vmatpush1.bf16.msra.mxu1 %v9337_v51  ;;  %v3352_v31 = vrot.slane %v13090_v40, %v13097_v2  ;;  %v3755_v54 = vadd.f32 %v2936_v21, %v13095_v46  ;;  %v3833_v33 = vadd.f32 %v3092_v0, %v13095_v46  ;;  %v3859_v45 = vadd.f32 %v3144_v52, %v13095_v46 }
 0x289   :  { %8237 = vmatprep.subr.bf16.mxu1 %v9338_v24  ;;  %13108 = vst [vmem:[#allocation36_spill] sm:$0xff] %v12088_v9  ;;  %v12114_v51 = vpack.c.bf16 %v4158_v7, %v4145_v23  ;;  %v3781_v24 = vadd.f32 %v2988_v16, %v13095_v46  ;;  %v3885_v6 = vadd.f32 %v3196_v28, %v13095_v46 }
 0x28a   :  { %v3768_v23 = vadd.f32 %v2936_v21, %v11102_v26  ;;  %v4171_v7 = vmax.f32 %v3755_v54, 0.0  ;;  %v3846_v9 = vadd.f32 %v3092_v0, %v11102_v26  ;;  %v4249_v62 = vmax.f32 %v3833_v33, 0.0 }
 0x28b   :  { %6321 = vmatmul.mubr.bf16.gmra.mrb[44].mxu1 %v11942_v57  ;;  %v9339_v57 = vld [vmem:[%s12916_s5 + $0x380] ss:$8 sps:$4 sm:$0xff]   ;;  %13114 = vst [vmem:[#allocation39_spill] sm:$0xff] %v12114_v51  ;;  %v4197_v56 = vmax.f32 %v3781_v24, 0.0  ;;  %v3820_v51 = vadd.f32 %v3040_v43, %v11102_v26  ;;  %v3872_v21 = vadd.f32 %v3144_v52, %v11102_v26  ;;  %v4275_v54 = vmax.f32 %v3859_v45, 0.0 }
 0x28c   :  { %6330 = vmatprep.mubr.bf16.mxu1 %v11977_v47  ;;  %8253 = vmatpush1.bf16.msra.mxu1 %v9339_v57  ;;  %v3807_v47 = vadd.f32 %v3040_v43, %v13095_v46  ;;  %v3794_v57 = vadd.f32 %v2988_v16, %v11102_v26  ;;  %v4184_v27 = vmax.f32 %v3768_v23, 0.0  ;;  %v4262_v43 = vmax.f32 %v3846_v9, 0.0 }
 0x28d   :  { %8238 = vmatprep.subr.bf16.mxu1 %v9340_v55  ;;  %6910 = vmatmul.mubr.bf16.gmra.mrb[48].mxu0 %v12029_v3  ;;  %v4236_v16 = vmax.f32 %v3820_v51, 0.0  ;;  %v3898_v0 = vadd.f32 %v3196_v28, %v11102_v26  ;;  %v4301_v33 = vmax.f32 %v3885_v6, 0.0  ;;  %v3911_v23 = vadd.f32 %v3248_v18, %v13095_v46  ;;  %v9343_v6 = vld [vmem:[%s12916_s5 + $0x3a0] ss:$8 sps:$4 sm:$0xff]  }
 0x28e   :  { %6919 = vmatprep.mubr.bf16.mxu0 %v4482_v4  ;;  %v4223_v55 = vmax.f32 %v3807_v47, 0.0  ;;  %v4210_v3 = vmax.f32 %v3794_v57, 0.0  ;;  %v9342_v4 = vld [vmem:[%s12916_s5 + $0x3a4] ss:$8 sps:$4 sm:$0xff]   ;;  %v12138_v24 = vpack.c.bf16 %v4184_v27, %v4171_v7  ;;  %v12146_v52 = vpack.c.bf16 %v4262_v43, %v4249_v62  ;;  %v9344_v62 = vld [vmem:[%s12916_s5 + $0x3b4] ss:$8 sps:$4 sm:$0xff]  }
 0x28f   :  { %v4314_v57 = vmax.f32 %v3898_v0, 0.0  ;;  %v3924_v51 = vadd.f32 %v3248_v18, %v11102_v26  ;;  %v4327_v27 = vmax.f32 %v3911_v23, 0.0  ;;  %v3937_v9 = vadd.f32 %v3300_v11, %v13095_v46 }
 0x290   :  { %8254 = vmatpush1.bf16.msra.mxu1 %v9341_v15  ;;  %v12140_v47 = vpack.c.bf16 %v4210_v3, %v4197_v56  ;;  %v4288_v15 = vmax.f32 %v3872_v21, 0.0  ;;  %v12144_v45 = vpack.c.bf16 %v4236_v16, %v4223_v55  ;;  %v3963_v18 = vadd.f32 %v3352_v31, %v13095_v46 }
 0x291   :  { %8239 = vmatprep.subr.bf16.mxu1 %v9342_v4  ;;  %v12160_v28 = vpack.c.bf16 %v4314_v57, %v4301_v33  ;;  %v3976_v7 = vadd.f32 %v3352_v31, %v11102_v26  ;;  %v2904_v55 = vrot.slane %v13105_v10, %v13097_v2  ;;  %v4353_v3 = vmax.f32 %v3937_v9, 0.0  ;;  %v13115_v10 = vld [vmem:[#allocation15_spill] sm:$0xff] }
 0x292   :  { %v12153_v56 = vpack.c.bf16 %v4288_v15, %v4275_v54  ;;  %v3780_v54 = vadd.f32 %v12062_v37, %v13093_v39  ;;  %v4379_v46 = vmax.f32 %v3963_v18, 0.0  ;;  %v2960_v31 = vrot.slane %v13115_v10, %v13099_v12 }
 0x293   :  { %6331 = vmatmul.mubr.bf16.gmra.mrb[48].mxu1 %v11990_v61  ;;  %v3950_v61 = vadd.f32 %v3300_v11, %v11102_v26  ;;  %v3753_v11 = vadd.f32 %v12058_v20, %v13094_v42  ;;  %v4392_v16 = vmax.f32 %v3976_v7, 0.0  ;;  %v4164_v26 = vmax.f32 %v12042_v48, 0.0  ;;  %v9345_v20 = vld [vmem:[%s12916_s5 + $0x3b0] ss:$8 sps:$4 sm:$0xff]   ;;  %v9348_v7 = vld [vmem:[%s12916_s5 + $0x3d4] ss:$8 sps:$4 sm:$0xff]  }
 0x294   :  { %6340 = vmatprep.mubr.bf16.mxu1 %v12035_v60  ;;  %8255 = vmatpush1.bf16.msra.mxu1 %v9343_v6  ;;  %v4340_v60 = vmax.f32 %v3924_v51, 0.0  ;;  %v13116_v37 = vmax.f32 %v12012_v63, 0.0  ;;  %v13117_v43 = vmax.f32 %v12015_v8, 0.0  ;;  %v3760_v33 = vadd.f32 %v2904_v55, %v11762_v30 }
 0x295   :  { %8240 = vmatprep.subr.bf16.mxu1 %v9344_v62  ;;  %6920 = vmatmul.mubr.bf16.gmra.mrb[52].mxu0 %v12066_v58  ;;  %v4366_v21 = vmax.f32 %v3950_v61, 0.0  ;;  %v4182_v58 = vmax.f32 %v12075_v50, 0.0  ;;  %v4209_v48 = vmax.f32 %v12079_v17, 0.0  ;;  %v9346_v50 = vld [vmem:[%s12916_s5 + $0x3c4] ss:$8 sps:$4 sm:$0xff]   ;;  %v12192_v15 = vpack.c.bf16 %v4392_v16, %v4379_v46 }
 0x296   :  { %6929 = vmatprep.mubr.bf16.mxu0 %v12071_v29  ;;  %v12172_v4 = vpack.c.bf16 %v4340_v60, %v4327_v27  ;;  %v4475_v0 = vpack.c.bf16 %v13117_v43, %v13116_v37  ;;  %v13118_v23 = vmax.f32 %v12069_v49, 0.0  ;;  %v4169_v51 = vmax.f32 %v3753_v11, 0.0  ;;  %v9347_v62 = vld [vmem:[%s12916_s5 + $0x3c0] ss:$8 sps:$4 sm:$0xff]  }
 0x297   :  { %v12181_v29 = vpack.c.bf16 %v4366_v21, %v4353_v3  ;;  %v3787_v63 = vadd.f32 %v2960_v31, %v11766_v22  ;;  %v2980_v8 = vrot.slane %v13107_v38, %v11054_v41  ;;  %v3747_v6 = vadd.f32 %v2904_v55, %v11737_v32 }
 0x298   :  { %8256 = vmatpush1.bf16.msra.mxu1 %v9345_v20  ;;  %v4489_v57 = vpack.c.bf16 %v13118_v23, %v4164_v26  ;;  %v4196_v17 = vmax.f32 %v3780_v54, 0.0  ;;  %v3036_v27 = vrot.slane %v13109_v53, %v11062_v34  ;;  %v4494_v9 = vpack.c.bf16 %v4182_v58, %v4169_v51  ;;  %v13119_v26 = vld [vmem:[#allocation19_spill] sm:$0xff] }
 0x299   :  { %8241 = vmatprep.subr.bf16.mxu1 %v9346_v50  ;;  %v3774_v61 = vadd.f32 %v2960_v31, %v11743_v44  ;;  %v3792_v49 = vadd.f32 %v2980_v8, %v11100_v5  ;;  %v4176_v60 = vmax.f32 %v3760_v33, 0.0  ;;  %v4203_v55 = vmax.f32 %v3787_v63, 0.0  ;;  %v9349_v31 = vld [vmem:[%s12916_s5 + $0x3d0] ss:$8 sps:$4 sm:$0xff]  }
 0x29a   :  { %v4508_v38 = vpack.c.bf16 %v4209_v48, %v4196_v17  ;;  %v3819_v18 = vadd.f32 %v3036_v27, %v11107_v13  ;;  %v3779_v11 = vadd.f32 %v2980_v8, %v13094_v42  ;;  %v4163_v3 = vmax.f32 %v3747_v6, 0.0 }
 0x29b   :  { %6341 = vmatmul.mubr.bf16.gmra.mrb[52].mxu1 %v4475_v0  ;;  %v2956_v21 = vrot.slane %v13115_v10, %v13097_v2  ;;  %v3806_v54 = vadd.f32 %v3036_v27, %v13093_v39  ;;  %v4190_v46 = vmax.f32 %v3774_v61, 0.0  ;;  %v4208_v16 = vmax.f32 %v3792_v49, 0.0  ;;  %v9350_v0 = vld [vmem:[%s12916_s5 + $0x3e4] ss:$8 sps:$4 sm:$0xff]   ;;  %v9351_v27 = vld [vmem:[%s12916_s5 + $0x3e0] ss:$8 sps:$4 sm:$0xff]  }
 0x29c   :  { %6350 = vmatprep.mubr.bf16.mxu1 %v4489_v57  ;;  %8257 = vmatpush1.bf16.msra.mxu1 %v9347_v62  ;;  %v3012_v58 = vrot.slane %v13119_v26, %v13099_v12  ;;  %v4488_v20 = vpack.c.bf16 %v4176_v60, %v4163_v3  ;;  %v4235_v43 = vmax.f32 %v3819_v18, 0.0  ;;  %v4195_v48 = vmax.f32 %v3779_v11, 0.0  ;;  %v9352_v49 = vld [vmem:[%s12916_s5 + $0x3f4] ss:$8 sps:$4 sm:$0xff]   ;;  %v13120_v3 = vld [vmem:[#allocation16_spill] sm:$0xff] }
 0x29d   :  { %8242 = vmatprep.subr.bf16.mxu1 %v9348_v7  ;;  %6930 = vmatmul.mubr.bf16.gmra.mrb[56].mxu0 %v4494_v9  ;;  %v3786_v37 = vadd.f32 %v2956_v21, %v11762_v30  ;;  %v4502_v33 = vpack.c.bf16 %v4203_v55, %v4190_v46  ;;  %v3032_v23 = vrot.slane %v13109_v53, %v11054_v41  ;;  %v4222_v51 = vmax.f32 %v3806_v54, 0.0  ;;  %v9353_v54 = vld [vmem:[%s12916_s5 + $0x3f0] ss:$8 sps:$4 sm:$0xff]  }
 0x29e   :  { %6939 = vmatprep.mubr.bf16.mxu0 %v4508_v38  ;;  %v3813_v50 = vadd.f32 %v3012_v58, %v11766_v22  ;;  %v3773_v57 = vadd.f32 %v2956_v21, %v11737_v32  ;;  %v3088_v63 = vrot.slane %v13110_v19, %v11062_v34  ;;  %v4507_v8 = vpack.c.bf16 %v4208_v16, %v4195_v48 }
 0x29f   :  { %v3800_v6 = vadd.f32 %v3012_v58, %v11743_v44  ;;  %v3818_v17 = vadd.f32 %v3032_v23, %v11100_v5  ;;  %v4202_v9 = vmax.f32 %v3786_v37, 0.0  ;;  %v4521_v53 = vpack.c.bf16 %v4235_v43, %v4222_v51 }
 0x2a0   :  { %8258 = vmatpush1.bf16.msra.mxu1 %v9349_v31  ;;  %v3845_v61 = vadd.f32 %v3088_v63, %v11107_v13  ;;  %v4229_v62 = vmax.f32 %v3813_v50, 0.0  ;;  %v3805_v60 = vadd.f32 %v3032_v23, %v13094_v42  ;;  %v4189_v38 = vmax.f32 %v3773_v57, 0.0 }
 0x2a1   :  { %8243 = vmatprep.subr.bf16.mxu1 %v9350_v0  ;;  %v3008_v18 = vrot.slane %v13119_v26, %v13097_v2  ;;  %v3832_v7 = vadd.f32 %v3088_v63, %v13093_v39  ;;  %v4216_v55 = vmax.f32 %v3800_v6, 0.0  ;;  %v4234_v11 = vmax.f32 %v3818_v17, 0.0 }
 0x2a2   :  { %v3064_v21 = vrot.slane %v13120_v3, %v13099_v12  ;;  %v4501_v46 = vpack.c.bf16 %v4202_v9, %v4189_v38  ;;  %v4261_v58 = vmax.f32 %v3845_v61, 0.0  ;;  %v3084_v43 = vrot.slane %v13110_v19, %v11054_v41 }
 0x2a3   :  { %6351 = vmatmul.mubr.bf16.gmra.mrb[56].mxu1 %v4488_v20  ;;  %v3812_v16 = vadd.f32 %v3008_v18, %v11762_v30  ;;  %v4515_v31 = vpack.c.bf16 %v4229_v62, %v4216_v55  ;;  %v4221_v20 = vmax.f32 %v3805_v60, 0.0  ;;  %v3799_v0 = vadd.f32 %v3008_v18, %v11737_v32 }
 0x2a4   :  { %6360 = vmatprep.mubr.bf16.mxu1 %v4502_v33  ;;  %8259 = vmatpush1.bf16.msra.mxu1 %v9351_v27  ;;  %v3839_v37 = vadd.f32 %v3064_v21, %v11766_v22  ;;  %v4248_v33 = vmax.f32 %v3832_v7, 0.0  ;;  %v3140_v48 = vrot.slane %v13111_v36, %v11062_v34  ;;  %v3826_v23 = vadd.f32 %v3064_v21, %v11743_v44 }
 0x2a5   :  { %8244 = vmatprep.subr.bf16.mxu1 %v9352_v49  ;;  %6940 = vmatmul.mubr.bf16.gmra.mrb[60].mxu0 %v4507_v8  ;;  %v4520_v50 = vpack.c.bf16 %v4234_v11, %v4221_v20  ;;  %v3844_v57 = vadd.f32 %v3084_v43, %v11100_v5  ;;  %v4228_v51 = vmax.f32 %v3812_v16, 0.0  ;;  %v3831_v19 = vadd.f32 %v3084_v43, %v13094_v42  ;;  %v13121_v49 = vld [vmem:[#allocation20_spill] sm:$0xff] }
 0x2a6   :  { %6949 = vmatprep.mubr.bf16.mxu0 %v4521_v53  ;;  %v4534_v63 = vpack.c.bf16 %v4261_v58, %v4248_v33  ;;  %v3871_v8 = vadd.f32 %v3140_v48, %v11107_v13  ;;  %v4255_v6 = vmax.f32 %v3839_v37, 0.0  ;;  %v4215_v17 = vmax.f32 %v3799_v0, 0.0 }
 0x2a7   :  { %v3060_v27 = vrot.slane %v13120_v3, %v13097_v2  ;;  %v3858_v9 = vadd.f32 %v3140_v48, %v13093_v39  ;;  %v4242_v53 = vmax.f32 %v3826_v23, 0.0  ;;  %v4260_v61 = vmax.f32 %v3844_v57, 0.0 }
 0x2a8   :  { %8260 = vmatpush1.bf16.msra.mxu1 %v9353_v54  ;;  %v3116_v62 = vrot.slane %v13121_v49, %v13099_v12  ;;  %v4514_v60 = vpack.c.bf16 %v4228_v51, %v4215_v17  ;;  %v4287_v18 = vmax.f32 %v3871_v8, 0.0  ;;  %v4247_v55 = vmax.f32 %v3831_v19, 0.0 }
 0x2a9   :  { %v3838_v38 = vadd.f32 %v3060_v27, %v11762_v30  ;;  %v4528_v7 = vpack.c.bf16 %v4255_v6, %v4242_v53  ;;  %v3136_v21 = vrot.slane %v13111_v36, %v11054_v41  ;;  %v3825_v54 = vadd.f32 %v3060_v27, %v11737_v32 }
 0x2aa   :  { %v3865_v11 = vadd.f32 %v3116_v62, %v11766_v22  ;;  %v3192_v16 = vrot.slane %v13112_v25, %v11062_v34  ;;  %v4533_v58 = vpack.c.bf16 %v4260_v61, %v4247_v55  ;;  %v3188_v61 = vrot.slane %v13112_v25, %v11054_v41 }
 0x2ab   :  { %6361 = vmatmul.mubr.bf16.gmra.mrb[60].mxu1 %v4501_v46  ;;  %v4274_v46 = vmax.f32 %v3858_v9, 0.0  ;;  %v3870_v20 = vadd.f32 %v3136_v21, %v11100_v5  ;;  %v4254_v37 = vmax.f32 %v3838_v38, 0.0  ;;  %v3857_v36 = vadd.f32 %v3136_v21, %v13094_v42 }
 0x2ac   :  { %6370 = vmatprep.mubr.bf16.mxu1 %v4515_v31  ;;  %v3852_v31 = vadd.f32 %v3116_v62, %v11743_v44  ;;  %v3897_v0 = vadd.f32 %v3192_v16, %v11107_v13  ;;  %v4281_v33 = vmax.f32 %v3865_v11, 0.0  ;;  %v4241_v48 = vmax.f32 %v3825_v54, 0.0 }
 0x2ad   :  { %6950 = vmatmul.mubr.bf16.gmra.mrb[64].mxu0 %v4520_v50  ;;  %v4547_v43 = vpack.c.bf16 %v4287_v18, %v4274_v46  ;;  %v3112_v50 = vrot.slane %v13121_v49, %v13097_v2  ;;  %v3884_v23 = vadd.f32 %v3192_v16, %v13093_v39  ;;  %v4286_v51 = vmax.f32 %v3870_v20, 0.0 }
 0x2ae   :  { %6959 = vmatprep.mubr.bf16.mxu0 %v4534_v63  ;;  %v4268_v57 = vmax.f32 %v3852_v31, 0.0  ;;  %v13122_v63 = vld [vmem:[#allocation17_spill] sm:$0xff]  ;;  %v4527_v6 = vpack.c.bf16 %v4254_v37, %v4241_v48  ;;  %v4313_v17 = vmax.f32 %v3897_v0, 0.0  ;;  %v4273_v9 = vmax.f32 %v3857_v36, 0.0 }
 0x2af   :  { %v3168_v8 = vrot.slane %v13122_v63, %v13099_v12  ;;  %v3864_v19 = vadd.f32 %v3112_v50, %v11762_v30  ;;  %v3851_v62 = vadd.f32 %v3112_v50, %v11737_v32  ;;  %v3244_v38 = vrot.slane %v13113_v35, %v11062_v34 }
 0x2b0   :  { %v4541_v27 = vpack.c.bf16 %v4281_v33, %v4268_v57  ;;  %v4546_v18 = vpack.c.bf16 %v4286_v51, %v4273_v9  ;;  %v3896_v55 = vadd.f32 %v3188_v61, %v11100_v5  ;;  %v3883_v25 = vadd.f32 %v3188_v61, %v13094_v42 }
 0x2b1   :  { %v3891_v53 = vadd.f32 %v3168_v8, %v11766_v22  ;;  %v4280_v11 = vmax.f32 %v3864_v19, 0.0  ;;  %v3923_v54 = vadd.f32 %v3244_v38, %v11107_v13  ;;  %v4267_v16 = vmax.f32 %v3851_v62, 0.0 }
 0x2b2   :  { %v3910_v31 = vadd.f32 %v3244_v38, %v13093_v39  ;;  %v4312_v37 = vmax.f32 %v3896_v55, 0.0  ;;  %v3240_v51 = vrot.slane %v13113_v35, %v11054_v41  ;;  %v3296_v19 = vrot.slane %v13086_v14, %v11062_v34 }
 0x2b3   :  { %6371 = vmatmul.mubr.bf16.gmra.mrb[64].mxu1 %v4514_v60  ;;  %v4300_v60 = vmax.f32 %v3884_v23, 0.0  ;;  %v4307_v46 = vmax.f32 %v3891_v53, 0.0  ;;  %v4540_v33 = vpack.c.bf16 %v4280_v11, %v4267_v16  ;;  %v4339_v48 = vmax.f32 %v3923_v54, 0.0 }
 0x2b4   :  { %6380 = vmatprep.mubr.bf16.mxu1 %v4528_v7  ;;  %v3878_v7 = vadd.f32 %v3168_v8, %v11743_v44  ;;  %v4299_v23 = vmax.f32 %v3883_v25, 0.0  ;;  %v3922_v9 = vadd.f32 %v3240_v51, %v11100_v5  ;;  %v3949_v62 = vadd.f32 %v3296_v19, %v11107_v13 }
 0x2b5   :  { %6960 = vmatmul.mubr.bf16.gmra.mrb[68].mxu0 %v4533_v58  ;;  %v4560_v21 = vpack.c.bf16 %v4313_v17, %v4300_v60  ;;  %v3164_v58 = vrot.slane %v13122_v63, %v13097_v2  ;;  %v3909_v35 = vadd.f32 %v3240_v51, %v13094_v42 }
 0x2b6   :  { %6969 = vmatprep.mubr.bf16.mxu0 %v4547_v43  ;;  %v4294_v20 = vmax.f32 %v3878_v7, 0.0  ;;  %v13123_v43 = vld [vmem:[#allocation21_spill] sm:$0xff]  ;;  %v4559_v17 = vpack.c.bf16 %v4312_v37, %v4299_v23  ;;  %v3936_v7 = vadd.f32 %v3296_v19, %v13093_v39  ;;  %v4338_v11 = vmax.f32 %v3922_v9, 0.0 }
 0x2b7   :  { %v3220_v0 = vrot.slane %v13123_v43, %v13099_v12  ;;  %v3890_v36 = vadd.f32 %v3164_v58, %v11762_v30  ;;  %v3877_v8 = vadd.f32 %v3164_v58, %v11737_v32  ;;  %v4365_v16 = vmax.f32 %v3949_v62, 0.0 }
 0x2b8   :  { %v4554_v50 = vpack.c.bf16 %v4307_v46, %v4294_v20  ;;  %v3292_v37 = vrot.slane %v13086_v14, %v11054_v41 }
 0x2b9   :  { %v3917_v57 = vadd.f32 %v3220_v0, %v11766_v22  ;;  %v4306_v53 = vmax.f32 %v3890_v36, 0.0  ;;  %v4293_v38 = vmax.f32 %v3877_v8, 0.0  ;;  %v3348_v36 = vrot.slane %v13090_v40, %v11062_v34 }
 0x2ba   :  { %v3948_v23 = vadd.f32 %v3292_v37, %v11100_v5  ;;  %v3935_v14 = vadd.f32 %v3292_v37, %v13094_v42 }
 0x2bb   :  { %6381 = vmatmul.mubr.bf16.gmra.mrb[68].mxu1 %v4527_v6  ;;  %v4326_v6 = vmax.f32 %v3910_v31, 0.0  ;;  %v4333_v60 = vmax.f32 %v3917_v57, 0.0  ;;  %v4553_v46 = vpack.c.bf16 %v4306_v53, %v4293_v38  ;;  %v4325_v31 = vmax.f32 %v3909_v35, 0.0  ;;  %v13125_v53 = vld [vmem:[#allocation22_spill] sm:$0xff] }
 0x2bc   :  { %6390 = vmatprep.mubr.bf16.mxu1 %v4541_v27  ;;  %v3904_v27 = vadd.f32 %v3220_v0, %v11743_v44  ;;  %v3975_v8 = vadd.f32 %v3348_v36, %v11107_v13  ;;  %v3962_v34 = vadd.f32 %v3348_v36, %v13093_v39  ;;  %v4364_v9 = vmax.f32 %v3948_v23, 0.0  ;;  %v13127_v36 = vld [vmem:[#allocation45_spill] sm:$0xff]  ;;  %v13128_v23 = vld [vmem:[#allocation44_spill] sm:$0xff] }
 0x2bd   :  { %6970 = vmatmul.mubr.bf16.gmra.mrb[72].mxu0 %v4546_v18  ;;  %v4573_v61 = vpack.c.bf16 %v4339_v48, %v4326_v6  ;;  %v3216_v18 = vrot.slane %v13123_v43, %v13097_v2  ;;  %v4572_v48 = vpack.c.bf16 %v4338_v11, %v4325_v31  ;;  %v4351_v38 = vmax.f32 %v3935_v14, 0.0  ;;  %v13130_v14 = vld [vmem:[#allocation41_spill] sm:$0xff] }
 0x2be   :  { %6979 = vmatprep.mubr.bf16.mxu0 %v4560_v21  ;;  %v4320_v55 = vmax.f32 %v3904_v27, 0.0  ;;  %v13124_v21 = vld [vmem:[#allocation18_spill] sm:$0xff]  ;;  %v4391_v13 = vmax.f32 %v3975_v8, 0.0  ;;  %v4378_v39 = vmax.f32 %v3962_v34, 0.0 }
 0x2bf   :  { %v3272_v54 = vrot.slane %v13124_v21, %v13099_v12  ;;  %v3916_v25 = vadd.f32 %v3216_v18, %v11762_v30  ;;  %v3903_v0 = vadd.f32 %v3216_v18, %v11737_v32  ;;  %v4585_v11 = vpack.c.bf16 %v4364_v9, %v4351_v38 }
 0x2c0   :  { %v4567_v58 = vpack.c.bf16 %v4333_v60, %v4320_v55 }
 0x2c1   :  { %v3943_v20 = vadd.f32 %v3272_v54, %v11766_v22  ;;  %v4332_v57 = vmax.f32 %v3916_v25, 0.0  ;;  %v4319_v19 = vmax.f32 %v3903_v0, 0.0  ;;  %v4599_v25 = vpack.c.bf16 %v4391_v13, %v4378_v39 }
 0x2c3   :  { %6391 = vmatmul.mubr.bf16.gmra.mrb[72].mxu1 %v4540_v33  ;;  %v4352_v33 = vmax.f32 %v3936_v7, 0.0  ;;  %v4359_v6 = vmax.f32 %v3943_v20, 0.0  ;;  %v4566_v62 = vpack.c.bf16 %v4332_v57, %v4319_v19  ;;  %v3344_v7 = vrot.slane %v13090_v40, %v11054_v41  ;;  %v13126_v20 = vld [vmem:[#allocation42_spill] sm:$0xff] }
 0x2c4   :  { %6400 = vmatprep.mubr.bf16.mxu1 %v4554_v50  ;;  %v3930_v50 = vadd.f32 %v3272_v54, %v11743_v44  ;;  %v3320_v41 = vrot.slane %v13125_v53, %v13097_v2  ;;  %v2968_v37 = vrot.slane %v13115_v10, %v13126_v20 }
 0x2c5   :  { %6980 = vmatmul.mubr.bf16.gmra.mrb[76].mxu0 %v4559_v17  ;;  %v4586_v51 = vpack.c.bf16 %v4365_v16, %v4352_v33  ;;  %v3268_v17 = vrot.slane %v13124_v21, %v13097_v2 }
 0x2c6   :  { %6989 = vmatprep.mubr.bf16.mxu0 %v4573_v61  ;;  %v4346_v27 = vmax.f32 %v3930_v50, 0.0  ;;  %v3324_v61 = vrot.slane %v13125_v53, %v13099_v12  ;;  %v3974_v12 = vadd.f32 %v3344_v7, %v11100_v5  ;;  %v3776_v57 = vadd.f32 %v2968_v37, %v13128_v23 }
 0x2c7   :  { %v3942_v60 = vadd.f32 %v3268_v17, %v11762_v30  ;;  %v3929_v55 = vadd.f32 %v3268_v17, %v11737_v32  ;;  %v3020_v17 = vrot.slane %v13119_v26, %v13126_v20 }
 0x2c8   :  { %v4580_v35 = vpack.c.bf16 %v4359_v6, %v4346_v27  ;;  %v3969_v18 = vadd.f32 %v3324_v61, %v11766_v22  ;;  %v3956_v54 = vadd.f32 %v3324_v61, %v11743_v44  ;;  %v4390_v31 = vmax.f32 %v3974_v12, 0.0  ;;  %v13131_v27 = vld [vmem:[#allocation7_spill] sm:$0xff] }
 0x2c9   :  { %v4345_v22 = vmax.f32 %v3929_v55, 0.0  ;;  %v3968_v44 = vadd.f32 %v3320_v41, %v11762_v30  ;;  %v13129_v6 = vmov 0   ;;  %v2964_v30 = vrot.slane %v13115_v10, %v13130_v14 }
 0x2ca   :  { %v4385_v16 = vmax.f32 %v3969_v18, 0.0  ;;  %v4372_v40 = vmax.f32 %v3956_v54, 0.0  ;;  %v4192_v19 = vmax.f32 %v3776_v57, 0.0  ;;  %v3815_v61 = vadd.f32 %v3020_v17, %v13127_v36 }
 0x2cb   :  { %6401 = vmatmul.mubr.bf16.gmra.mrb[76].mxu1 %v4553_v46  ;;  %v4358_v46 = vmax.f32 %v3942_v60, 0.0  ;;  %v4384_v2 = vmax.f32 %v3968_v44, 0.0  ;;  %v3802_v13 = vadd.f32 %v3020_v17, %v13128_v23  ;;  %v3016_v18 = vrot.slane %v13119_v26, %v13130_v14 }
 0x2cc   :  { %6410 = vmatprep.mubr.bf16.mxu1 %v4567_v58  ;;  %v3961_v58 = vadd.f32 %v3344_v7, %v13094_v42  ;;  %v4593_v5 = vpack.c.bf16 %v4385_v16, %v4372_v40  ;;  %v3955_v42 = vadd.f32 %v3320_v41, %v11737_v32  ;;  %v3788_v32 = vadd.f32 %v2964_v30, %v13131_v27 }
 0x2cd   :  { %6990 = vmatmul.mubr.bf16.gmra.mrb[80].mxu0 %v4572_v48  ;;  %v4579_v0 = vpack.c.bf16 %v4358_v46, %v4345_v22  ;;  %v3789_v48 = vadd.f32 %v2968_v37, %v13127_v36  ;;  %v4231_v10 = vmax.f32 %v3815_v61, 0.0  ;;  %v4218_v7 = vmax.f32 %v3802_v13, 0.0 }
 0x2ce   :  { %6999 = vmatprep.mubr.bf16.mxu0 %v4586_v51  ;;  %v4377_v33 = vmax.f32 %v3961_v58, 0.0  ;;  %v4371_v8 = vmax.f32 %v3955_v42, 0.0  ;;  %v3072_v55 = vrot.slane %v13120_v3, %v13126_v20  ;;  %v3068_v58 = vrot.slane %v13120_v3, %v13130_v14 }
 0x2cf   :  { %v4205_v51 = vmax.f32 %v3789_v48, 0.0  ;;  %v4517_v54 = vpack.c.bf16 %v4231_v10, %v4218_v7  ;;  %v3124_v41 = vrot.slane %v13121_v49, %v13126_v20  ;;  %v3120_v42 = vrot.slane %v13121_v49, %v13130_v14 }
 0x2d0   :  { %v4598_v50 = vpack.c.bf16 %v4390_v31, %v4377_v33  ;;  %v4592_v34 = vpack.c.bf16 %v4384_v2, %v4371_v8  ;;  %v3841_v12 = vadd.f32 %v3072_v55, %v13127_v36  ;;  %v3828_v46 = vadd.f32 %v3072_v55, %v13128_v23  ;;  %v13133_v33 = vld [vmem:[#allocation32_spill] sm:$0xff] }
 0x2d1   :  { %v4504_v9 = vpack.c.bf16 %v4205_v51, %v4192_v19  ;;  %v3840_v31 = vadd.f32 %v3068_v58, %v13131_v27  ;;  %v3854_v44 = vadd.f32 %v3124_v41, %v13128_v23  ;;  %v3176_v57 = vrot.slane %v13122_v63, %v13126_v20 }
 0x2d2   :  { %v4257_v26 = vmax.f32 %v3841_v12, 0.0  ;;  %v4244_v22 = vmax.f32 %v3828_v46, 0.0  ;;  %v3866_v51 = vadd.f32 %v3120_v42, %v13131_v27  ;;  %v3172_v61 = vrot.slane %v13122_v63, %v13130_v14 }
 0x2d3   :  { %6411 = vmatmul.mubr.bf16.gmra.mrb[80].mxu1 %v4566_v62  ;;  %v13132_v62 = vld [vmem:[#allocation43_spill] sm:$0xff]  ;;  %v3880_v17 = vadd.f32 %v3176_v57, %v13128_v23  ;;  %v3228_v13 = vrot.slane %v13123_v43, %v13126_v20  ;;  %v3224_v12 = vrot.slane %v13123_v43, %v13130_v14  ;;  %v3280_v46 = vrot.slane %v13124_v21, %v13126_v20 }
 0x2d4   :  { %6420 = vmatprep.mubr.bf16.mxu1 %v4580_v35  ;;  %v3775_v60 = vadd.f32 %v2964_v30, %v13132_v62  ;;  %v4204_v35 = vmax.f32 %v3788_v32, 0.0  ;;  %v4530_v37 = vpack.c.bf16 %v4257_v26, %v4244_v22  ;;  %v3893_v30 = vadd.f32 %v3176_v57, %v13127_v36  ;;  %v13134_v32 = vld [vmem:[#allocation37_spill] sm:$0xff] }
 0x2d5   :  { %7000 = vmatmul.mubr.bf16.gmra.mrb[84].mxu0 %v4585_v11  ;;  %v3814_v11 = vadd.f32 %v3016_v18, %v13131_v27  ;;  %v3853_v19 = vadd.f32 %v3120_v42, %v13132_v62  ;;  %v3892_v10 = vadd.f32 %v3172_v61, %v13131_v27  ;;  %v3879_v7 = vadd.f32 %v3172_v61, %v13132_v62 }
 0x2d6   :  { %7009 = vmatprep.mubr.bf16.mxu0 %v4599_v25  ;;  %v4191_v38 = vmax.f32 %v3775_v60, 0.0  ;;  %v4309_v49 = vmax.f32 %v3893_v30, 0.0  ;;  %v4296_v60 = vmax.f32 %v3880_v17, 0.0  ;;  %v3906_v55 = vadd.f32 %v3228_v13, %v13128_v23 }
 0x2d7   :  { %v4230_v25 = vmax.f32 %v3814_v11, 0.0  ;;  %v13135_v11 = vld [vmem:[#allocation38_spill] sm:$0xff]  ;;  %v3918_v26 = vadd.f32 %v3224_v12, %v13131_v27  ;;  %v3905_v22 = vadd.f32 %v3224_v12, %v13132_v62 }
 0x2d8   :  { %v4503_v39 = vpack.c.bf16 %v4204_v35, %v4191_v38  ;;  %v4556_v38 = vpack.c.bf16 %v4309_v49, %v4296_v60 }
 0x2db   :  { %6421 = vmatmul.mubr.bf16.gmra.mrb[84].mxu1 %v4579_v0  ;;  %v3867_v0 = vadd.f32 %v3124_v41, %v13127_v36  ;;  %v3932_v41 = vadd.f32 %v3280_v46, %v13128_v23 }
 0x2dc   :  { %6430 = vmatprep.mubr.bf16.mxu1 %v4593_v5  ;;  %v4256_v5 = vmax.f32 %v3840_v31, 0.0  ;;  %v13136_v31 = vld [vmem:[#allocation36_spill] sm:$0xff] }
 0x2dd   :  { %7010 = vmatmul.mubr.bf16.gmra.mrb[88].mxu0 %v4598_v50  ;;  %v4283_v3 = vmax.f32 %v3867_v0, 0.0  ;;  %v4270_v50 = vmax.f32 %v3854_v44, 0.0  ;;  %v3276_v0 = vrot.slane %v13124_v21, %v13130_v14  ;;  %v3332_v44 = vrot.slane %v13125_v53, %v13126_v20 }
 0x2de   :  { %7052 = vmatprep.mubr.bf16.mxu0 %v13129_v6  ;;  %v3328_v20 = vrot.slane %v13125_v53, %v13130_v14 }
 0x2df   :  { %v4543_v8 = vpack.c.bf16 %v4283_v3, %v4270_v50  ;;  %v3931_v42 = vadd.f32 %v3276_v0, %v13132_v62  ;;  %v3958_v50 = vadd.f32 %v3332_v44, %v13128_v23 }
 0x2e0   :  { %v3957_v17 = vadd.f32 %v3328_v20, %v13132_v62 }
 0x2e3   :  { %6431 = vmatmul.mubr.bf16.gmra.mrb[88].mxu1 %v4592_v34  ;;  %v4282_v34 = vmax.f32 %v3866_v51, 0.0  ;;  %v4347_v51 = vmax.f32 %v3931_v42, 0.0 }
 0x2e4   :  { %6553 = vmatprep.mubr.bf16.mxu1 %v4504_v9  ;;  %v4269_v9 = vmax.f32 %v3853_v19, 0.0 }
 0x2e5   :  { %8154 = vmatmul.mubr.msk.bf16.vlgmr.msra.gmra.mrb[28].mxu0 %vm5813_vm1, %v11912_v59  ;;  %v3801_v59 = vadd.f32 %v3016_v18, %v13132_v62  ;;  %v3919_v18 = vadd.f32 %v3228_v13, %v13127_v36 }
 0x2e6   :  { %7062 = vmatprep.mubr.bf16.mxu0 %v13129_v6  ;;  %v4542_v35 = vpack.c.bf16 %v4282_v34, %v4269_v9  ;;  %v4373_v34 = vmax.f32 %v3957_v17, 0.0 }
 0x2e7   :  { %v4217_v16 = vmax.f32 %v3801_v59, 0.0  ;;  %v4335_v63 = vmax.f32 %v3919_v18, 0.0  ;;  %v4322_v59 = vmax.f32 %v3906_v55, 0.0 }
 0x2e9   :  { %v4516_v40 = vpack.c.bf16 %v4230_v25, %v4217_v16  ;;  %v4569_v16 = vpack.c.bf16 %v4335_v63, %v4322_v59 }
 0x2eb   :  { %6554 = vmatmul.mubr.bf16.vlgmr.msra.gmra.mrb[60].mxu1 %v4503_v39  ;;  %v4308_v39 = vmax.f32 %v3892_v10, 0.0 }
 0x2ec   :  { %6563 = vmatprep.mubr.bf16.mxu1 %v4517_v54  ;;  %v4295_v54 = vmax.f32 %v3879_v7, 0.0 }
 0x2ed   :  { %8155 = vmatmul.mubr.msk.bf16.gmra.mrb[32].mxu0 %vm5813_vm1, %v11959_v1  ;;  %v3827_v1 = vadd.f32 %v3068_v58, %v13132_v62  ;;  %v3945_v58 = vadd.f32 %v3280_v46, %v13127_v36 }
 0x2ee   :  { %7072 = vmatprep.mubr.bf16.mxu0 %v13129_v6  ;;  %v4555_v25 = vpack.c.bf16 %v4308_v39, %v4295_v54 }
 0x2ef   :  { %v4243_v48 = vmax.f32 %v3827_v1, 0.0  ;;  %v4361_v43 = vmax.f32 %v3945_v58, 0.0  ;;  %v4348_v1 = vmax.f32 %v3932_v41, 0.0  ;;  %v13139_v58 = vld [vmem:[#allocation24_spill] sm:$0xff] }
 0x2f1   :  { %v4529_v2 = vpack.c.bf16 %v4256_v5, %v4243_v48  ;;  %v4582_v3 = vpack.c.bf16 %v4361_v43, %v4348_v1  ;;  %v3971_v48 = vadd.f32 %v3332_v44, %v13127_v36  ;;  %v3970_v36 = vadd.f32 %v3328_v20, %v13131_v27 }
 0x2f3   :  { %6564 = vmatmul.mubr.bf16.gmra.mrb[64].mxu1 %v4516_v40  ;;  %v4334_v40 = vmax.f32 %v3918_v26, 0.0  ;;  %v4387_v21 = vmax.f32 %v3971_v48, 0.0  ;;  %v4386_v23 = vmax.f32 %v3970_v36, 0.0  ;;  %v13138_v26 = vld [vmem:[#allocation23_spill] sm:$0xff] }
 0x2f4   :  { %6573 = vmatprep.mubr.bf16.mxu1 %v4530_v37  ;;  %v4321_v37 = vmax.f32 %v3905_v22, 0.0 }
 0x2f5   :  { %8156 = vmatmul.mubr.msk.bf16.gmra.mrb[36].mxu0 %vm5813_vm1, %v13133_v33  ;;  %v3944_v33 = vadd.f32 %v3276_v0, %v13131_v27 }
 0x2f6   :  { %7082 = vmatprep.mubr.bf16.mxu0 %v13129_v6  ;;  %v4568_v5 = vpack.c.bf16 %v4334_v40, %v4321_v37  ;;  %v7277_v40 = vld [vmem:[%s12918_s7] sm:$0x3] }
 0x2f7   :  { %v4360_v57 = vmax.f32 %v3944_v33, 0.0 }
 0x2f9   :  { %v4581_v30 = vpack.c.bf16 %v4360_v57, %v4347_v51 }
 0x2fb   :  { %6574 = vmatmul.mubr.bf16.gmra.mrb[68].mxu1 %v4529_v2  ;;  %v13137_v2 = vld [vmem:[#allocation39_spill] sm:$0xff] }
 0x2fc   :  { %6583 = vmatprep.mubr.bf16.mxu1 %v4543_v8  ;;  %v4374_v8 = vmax.f32 %v3958_v50, 0.0  ;;  %v12524_v50 = vrot.slane %v7277_v40, %v13138_v26 }
 0x2fd   :  { %8157 = vmatmul.mubr.msk.bf16.gmra.mrb[40].mxu0 %vm5813_vm1, %v13134_v32  ;;  %v4594_v32 = vpack.c.bf16 %v4386_v23, %v4373_v34 }
 0x2fe   :  { %7092 = vmatprep.mubr.bf16.mxu0 %v13129_v6  ;;  %v4595_v19 = vpack.c.bf16 %v4387_v21, %v4374_v8 }
 0x303   :  { %6584 = vmatmul.mubr.bf16.gmra.mrb[72].mxu1 %v4542_v35 }
 0x304   :  { %6593 = vmatprep.mubr.bf16.mxu1 %v4556_v38 }
 0x305   :  { %8158 = vmatmul.mubr.msk.bf16.gmra.mrb[44].mxu0 %vm5813_vm1, %v13135_v11 }
 0x306   :  { %7102 = vmatprep.mubr.bf16.mxu0 %v13129_v6 }
 0x30b   :  { %6594 = vmatmul.mubr.bf16.gmra.mrb[76].mxu1 %v4555_v25  ;;  %v4801_v25 = vld [vmem:[%s12917_s6] sm:$0x3]  ;;  %s9382_s6 = smov [#allocation3]  }
 0x30c   :  { %6603 = vmatprep.mubr.bf16.mxu1 %v4569_v16  ;;  %v12508_v16 = vrot.slane %v4801_v25, %v13138_v26  ;;  %v12511_v22 = vrot.slane %v4801_v25, %v13139_v58  ;;  %s7735_s7 = sshll.u32 %s9382_s6, 4  ;;  %s7736_s7 = int_to_ptr.vmem [resolvable:$true] %s7735_s7 }
 0x30d   :  { %8159 = vmatmul.mubr.msk.bf16.gmra.mrb[48].mxu0 %vm5813_vm1, %v13136_v31  ;;  %s9354_s27 = scalar_lea.vmem %s7736_s7, 256  ;;  %p9359_p1 = scmp.lt.s32.totalorder %s7736_s7, %s7736_s7 }
 0x30e   :  { %7112 = vmatprep.mubr.bf16.mxu0 %v13129_v6  ;;  %p9355_p0 = scmp.ne.s32.totalorder %s7736_s7, %s9354_s27  ;;  %p9360_p2 = scmp.lt.s32.totalorder %s9354_s27, %s9354_s27 }
 0x310   :  { %p9361_p3 = por %p9360_p2, %p9359_p1 }
 0x312   :  { %p9362_p4 = pnand %p9361_p3, %p9355_p0 }
 0x313   :  { %6604 = vmatmul.mubr.bf16.gmra.mrb[80].mxu1 %v4568_v5 }
 0x314   :  { %6613 = vmatprep.mubr.bf16.mxu1 %v4582_v3  ;;  %v12521_v3 = vrot.slane %v7277_v40, %v13139_v58 }
 0x315   :  { %8160 = vmatmul.mubr.msk.bf16.gmra.mrb[52].mxu0 %vm5813_vm1, %v13137_v2 }
 0x316   :  { %7122 = vmatprep.mubr.bf16.mxu0 %v13129_v6 }
 0x31b   :  { %6614 = vmatmul.mubr.bf16.gmra.mrb[84].mxu1 %v4581_v30 }
 0x31c   :  { %6623 = vmatprep.mubr.bf16.mxu1 %v4595_v19 }
 0x31d   :  { %8161 = vmatmul.mubr.msk.bf16.gmra.mrb[56].mxu0 %vm5813_vm1, %v12138_v24 }
 0x31e   :  { %7132 = vmatprep.mubr.bf16.mxu0 %v13129_v6 }
 0x323   :  { %6624 = vmatmul.mubr.bf16.gmra.mrb[88].mxu1 %v4594_v32 }
 0x325   :  { %8162 = vmatmul.mubr.msk.bf16.gmra.mrb[60].mxu0 %vm5813_vm1, %v12140_v47 }
 0x326   :  { %7142 = vmatprep.mubr.bf16.mxu0 %v13129_v6 }
 0x32d   :  { %8163 = vmatmul.mubr.msk.bf16.gmra.mrb[64].mxu0 %vm5813_vm1, %v12144_v45 }
 0x32e   :  { %7152 = vmatprep.mubr.bf16.mxu0 %v13129_v6 }
 0x335   :  { %8164 = vmatmul.mubr.msk.bf16.gmra.mrb[68].mxu0 %vm5813_vm1, %v12146_v52 }
 0x336   :  { %7162 = vmatprep.mubr.bf16.mxu0 %v13129_v6 }
 0x33d   :  { %8165 = vmatmul.mubr.msk.bf16.gmra.mrb[72].mxu0 %vm5813_vm1, %v12153_v56 }
 0x33e   :  { %v6282_v24 = vpop.f32.mrb[28].mxu1  ;;  %7172 = vmatprep.mubr.bf16.mxu0 %v13129_v6 }
 0x33f   :  { %v6284_v53 = vpop.f32.mrb[29].mxu1  ;;  %v8261_v41 = vadd.f32 %v6282_v24, %v12508_v16 }
 0x340   :  { %v6286_v47 = vpop.f32.mrb[30].mxu1  ;;  %v8263_v31 = vadd.f32 %v6284_v53, %v12511_v22 }
 0x341   :  { %v6288_v14 = vpop.f32.mrb[31].mxu1  ;;  %v8265_v37 = vadd.f32 %v6286_v47, %v12508_v16 }
 0x342   :  { %v8267_v44 = vadd.f32 %v6288_v14, %v12511_v22 }
 0x345   :  { %8166 = vmatmul.mubr.msk.bf16.gmra.mrb[76].mxu0 %vm5813_vm1, %v12160_v28 }
 0x346   :  { %v6292_v27 = vpop.f32.mrb[32].mxu1  ;;  %7182 = vmatprep.mubr.bf16.mxu0 %v13129_v6 }
 0x347   :  { %v6294_v45 = vpop.f32.mrb[33].mxu1  ;;  %v8269_v19 = vadd.f32 %v6292_v27, %v12508_v16 }
 0x348   :  { %v12444_v62 = vpop.f32.mrb[34].mxu1  ;;  %v8271_v34 = vadd.f32 %v6294_v45, %v12511_v22 }
 0x349   :  { %v12446_v52 = vpop.f32.mrb[35].mxu1  ;;  %v8273_v14 = vadd.f32 %v12444_v62, %v12508_v16 }
 0x34d   :  { %8167 = vmatmul.mubr.msk.bf16.gmra.mrb[80].mxu0 %vm5813_vm1, %v12172_v4 }
 0x34e   :  { %v12448_v49 = vpop.f32.mrb[36].mxu1  ;;  %7192 = vmatprep.mubr.bf16.mxu0 %v13129_v6 }
 0x34f   :  { %v12452_v56 = vpop.f32.mrb[37].mxu1 }
 0x350   :  { %v12455_v9 = vpop.f32.mrb[38].mxu1 }
 0x351   :  { %v12457_v61 = vpop.f32.mrb[39].mxu1 }
 0x355   :  { %8168 = vmatmul.mubr.msk.bf16.gmra.mrb[84].mxu0 %vm5813_vm1, %v12181_v29 }
 0x356   :  { %v12459_v28 = vpop.f32.mrb[40].mxu1  ;;  %7202 = vmatprep.mubr.bf16.mxu0 %v13129_v6 }
 0x357   :  { %v12463_v60 = vpop.f32.mrb[41].mxu1 }
 0x358   :  { %v12466_v13 = vpop.f32.mrb[42].mxu1 }
 0x359   :  { %v12468_v4 = vpop.f32.mrb[43].mxu1 }
 0x35d   :  { %8169 = vmatmul.mubr.msk.bf16.gmra.mrb[88].mxu0 %vm5813_vm1, %v12192_v15 }
 0x35e   :  { %v12470_v35 = vpop.f32.mrb[44].mxu1 }
 0x35f   :  { %v12474_v10 = vpop.f32.mrb[45].mxu1 }
 0x360   :  { %v12476_v38 = vpop.f32.mrb[46].mxu1 }
 0x361   :  { %v12478_v18 = vpop.f32.mrb[47].mxu1 }
 0x366   :  { %v12480_v29 = vpop.f32.mrb[48].mxu1 }
 0x367   :  { %v12482_v7 = vpop.f32.mrb[49].mxu1 }
 0x368   :  { %v12484_v6 = vpop.f32.mrb[50].mxu1 }
 0x369   :  { %v12486_v55 = vpop.f32.mrb[51].mxu1 }
 0x36e   :  { %v12488_v39 = vpop.f32.mrb[52].mxu1 }
 0x36f   :  { %v12490_v11 = vpop.f32.mrb[53].mxu1 }
 0x370   :  { %v12492_v63 = vpop.f32.mrb[54].mxu1 }
 0x371   :  { %v12494_v15 = vpop.f32.mrb[55].mxu1 }
 0x376   :  { %v12496_v54 = vpop.f32.mrb[56].mxu1 }
 0x377   :  { %v12498_v12 = vpop.f32.mrb[57].mxu1 }
 0x378   :  { %v12500_v59 = vpop.f32.mrb[58].mxu1 }
 0x379   :  { %v12502_v46 = vpop.f32.mrb[59].mxu1 }
 0x3b8   :  { %v7054_v43 = vpop.f32.mrb[28].mxu0 }
 0x3b9   :  { %v8262_v0 = vadd.f32 %v8261_v41, %v7054_v43  ;;  %v7056_v1 = vpop.f32.mrb[29].mxu0  ;;  %v8275_v41 = vadd.f32 %v12446_v52, %v12511_v22  ;;  %v8277_v52 = vadd.f32 %v12448_v49, %v12508_v16 }
 0x3ba   :  { %v8264_v5 = vadd.f32 %v8263_v31, %v7056_v1  ;;  %v7058_v33 = vpop.f32.mrb[30].mxu0 }
 0x3bb   :  { %v7213_v48 = vmax.f32 %v8262_v0, 0.0  ;;  %v8266_v42 = vadd.f32 %v8265_v37, %v7058_v33  ;;  %v7060_v57 = vpop.f32.mrb[31].mxu0 }
 0x3bc   :  { %v7214_v2 = vmax.f32 %v8264_v5, 0.0  ;;  %v8268_v21 = vadd.f32 %v8267_v44, %v7060_v57 }
 0x3bd   :  { %v7215_v20 = vmax.f32 %v8266_v42, 0.0  ;;  %v7289_v23 = vmul.f32 %v12524_v50, %v7213_v48 }
 0x3be   :  { %v12526_v51 = vpop.f32.mrb[60].mxu1  ;;  %v7216_v30 = vmax.f32 %v8268_v21, 0.0  ;;  %v7290_v36 = vmul.f32 %v12521_v3, %v7214_v2 }
 0x3bf   :  { %v12528_v8 = vpop.f32.mrb[61].mxu1  ;;  %v7291_v25 = vmul.f32 %v12524_v50, %v7215_v20  ;;  %v8279_v20 = vadd.f32 %v12452_v56, %v12511_v22 }
 0x3c0   :  { %v12532_v17 = vpop.f32.mrb[62].mxu1  ;;  %v7292_v24 = vmul.f32 %v12521_v3, %v7216_v30  ;;  %v7064_v53 = vpop.f32.mrb[32].mxu0  ;;  %v7354_v47 = vsel %vm7353_vm2, %v7290_v36, 0.0 }
 0x3c1   :  { %v12536_v32 = vpop.f32.mrb[63].mxu1  ;;  %v8270_v26 = vadd.f32 %v8269_v19, %v7064_v53  ;;  %v7066_v27 = vpop.f32.mrb[33].mxu0  ;;  %v7355_v58 = vadd.f32 %v7354_v47, %v7289_v23 }
 0x3c2   :  { %v8272_v40 = vadd.f32 %v8271_v34, %v7066_v27  ;;  %v7068_v45 = vpop.f32.mrb[34].mxu0  ;;  %v7358_v31 = vsel %vm7353_vm2, %v7292_v24, 0.0  ;;  %v8281_v34 = vadd.f32 %v12455_v9, %v12508_v16 }
 0x3c3   :  { %v7217_v43 = vmax.f32 %v8270_v26, 0.0  ;;  %v8274_v37 = vadd.f32 %v8273_v14, %v7068_v45  ;;  %v7070_v0 = vpop.f32.mrb[35].mxu0  ;;  %7356 = vadd.xlane.f32.xlu0 %v7355_v58  ;;  %v7359_v1 = vadd.f32 %v7358_v31, %v7291_v25  ;;  %v8283_v14 = vadd.f32 %v12457_v61, %v12511_v22 }
 0x3c4   :  { %v7218_v44 = vmax.f32 %v8272_v40, 0.0  ;;  %v8276_v5 = vadd.f32 %v8275_v41, %v7070_v0  ;;  %v8285_v61 = vadd.f32 %v12459_v28, %v12508_v16 }
 0x3c5   :  { %v7219_v33 = vmax.f32 %v8274_v37, 0.0  ;;  %v7293_v21 = vmul.f32 %v12524_v50, %v7217_v43 }
 0x3c6   :  { %v12546_v62 = vpop.f32.mrb[64].mxu1  ;;  %v7220_v42 = vmax.f32 %v8276_v5, 0.0  ;;  %v7294_v57 = vmul.f32 %v12521_v3, %v7218_v44 }
 0x3c7   :  { %v12548_v48 = vpop.f32.mrb[65].mxu1  ;;  %7360 = vadd.xlane.f32.xlu0 %v7359_v1  ;;  %v7295_v49 = vmul.f32 %v12524_v50, %v7219_v33  ;;  %v8287_v33 = vadd.f32 %v12463_v60, %v12511_v22 }
 0x3c8   :  { %v12553_v2 = vpop.f32.mrb[66].mxu1  ;;  %v7296_v30 = vmul.f32 %v12521_v3, %v7220_v42  ;;  %v7074_v19 = vpop.f32.mrb[36].mxu0  ;;  %v7362_v23 = vsel %vm7353_vm2, %v7294_v57, 0.0 }
 0x3c9   :  { %v12559_v36 = vpop.f32.mrb[67].mxu1  ;;  %v8278_v24 = vadd.f32 %v8277_v52, %v7074_v19  ;;  %v7076_v53 = vpop.f32.mrb[37].mxu0  ;;  %v7363_v47 = vadd.f32 %v7362_v23, %v7293_v21 }
 0x3ca   :  { %v8280_v25 = vadd.f32 %v8279_v20, %v7076_v53  ;;  %v7078_v56 = vpop.f32.mrb[38].mxu0  ;;  %v7366_v26 = vsel %vm7353_vm2, %v7296_v30, 0.0  ;;  %v8289_v20 = vadd.f32 %v12466_v13, %v12508_v16 }
 0x3cb   :  { %v7221_v27 = vmax.f32 %v8278_v24, 0.0  ;;  %v8282_v58 = vadd.f32 %v8281_v34, %v7078_v56  ;;  %v7080_v41 = vpop.f32.mrb[39].mxu0  ;;  %7364 = vadd.xlane.f32.xlu1 %v7363_v47  ;;  %v7367_v40 = vadd.f32 %v7366_v26, %v7295_v49  ;;  %v8291_v34 = vadd.f32 %v12468_v4, %v12511_v22 }
 0x3cc   :  { %v7222_v45 = vmax.f32 %v8280_v25, 0.0  ;;  %v8284_v31 = vadd.f32 %v8283_v14, %v7080_v41 }
 0x3cd   :  { %v7223_v43 = vmax.f32 %v8282_v58, 0.0  ;;  %v7297_v44 = vmul.f32 %v12524_v50, %v7221_v27 }
 0x3ce   :  { %v12568_v9 = vpop.f32.mrb[68].mxu1  ;;  %v7298_v0 = vmul.f32 %v12521_v3, %v7222_v45  ;;  %v7224_v1 = vmax.f32 %v8284_v31, 0.0 }
 0x3cf   :  { %v12570_v37 = vpop.f32.mrb[69].mxu1  ;;  %7368 = vadd.xlane.f32.xlu1 %v7367_v40  ;;  %v7299_v28 = vmul.f32 %v12524_v50, %v7223_v43  ;;  %v8293_v40 = vadd.f32 %v12470_v35, %v12508_v16  ;;  %v8295_v43 = vadd.f32 %v12474_v10, %v12511_v22 }
 0x3d0   :  { %v12576_v5 = vpop.f32.mrb[70].mxu1  ;;  %v7300_v42 = vmul.f32 %v12521_v3, %v7224_v1  ;;  %v7084_v52 = vpop.f32.mrb[40].mxu0  ;;  %v7370_v21 = vsel %vm7353_vm2, %v7298_v0, 0.0 }
 0x3d1   :  { %v12581_v57 = vpop.f32.mrb[71].mxu1  ;;  %v8286_v30 = vadd.f32 %v8285_v61, %v7084_v52  ;;  %v7086_v19 = vpop.f32.mrb[41].mxu0  ;;  %v7371_v23 = vadd.f32 %v7370_v21, %v7297_v44 }
 0x3d2   :  { %v8288_v49 = vadd.f32 %v8287_v33, %v7086_v19  ;;  %v7088_v60 = vpop.f32.mrb[42].mxu0  ;;  %v7374_v24 = vsel %vm7353_vm2, %v7300_v42, 0.0  ;;  %v8297_v33 = vadd.f32 %v12476_v38, %v12508_v16 }
 0x3d3   :  { %v7225_v53 = vmax.f32 %v8286_v30, 0.0  ;;  %v8290_v47 = vadd.f32 %v8289_v20, %v7088_v60  ;;  %v7090_v14 = vpop.f32.mrb[43].mxu0  ;;  %7372 = vadd.xlane.f32.xlu0 %v7371_v23  ;;  %v7375_v25 = vadd.f32 %v7374_v24, %v7299_v28  ;;  %v8299_v20 = vadd.f32 %v12478_v18, %v12511_v22 }
 0x3d4   :  { %v7226_v56 = vmax.f32 %v8288_v49, 0.0  ;;  %v8292_v26 = vadd.f32 %v8291_v34, %v7090_v14 }
 0x3d5   :  { %v7227_v27 = vmax.f32 %v8290_v47, 0.0  ;;  %7376 = vadd.xlane.f32.xlu1 %v7375_v25  ;;  %v7301_v45 = vmul.f32 %v12524_v50, %v7225_v53  ;;  %v8301_v25 = vadd.f32 %v12480_v29, %v12508_v16 }
 0x3d6   :  { %v12590_v13 = vpop.f32.mrb[72].mxu1  ;;  %v7302_v41 = vmul.f32 %v12521_v3, %v7226_v56  ;;  %v7228_v4 = vmax.f32 %v8292_v26, 0.0 }
 0x3d7   :  { %v12592_v58 = vpop.f32.mrb[73].mxu1  ;;  %v7303_v42 = vmul.f32 %v12524_v50, %v7227_v27  ;;  %v8303_v27 = vadd.f32 %v12482_v7, %v12511_v22 }
 0x3d8   :  { %v12598_v31 = vpop.f32.mrb[74].mxu1  ;;  %v7304_v0 = vmul.f32 %v12521_v3, %v7228_v4  ;;  %v7094_v61 = vpop.f32.mrb[44].mxu0  ;;  %v7378_v44 = vsel %vm7353_vm2, %v7302_v41, 0.0 }
 0x3d9   :  { %v12603_v1 = vpop.f32.mrb[75].mxu1  ;;  %v8294_v35 = vadd.f32 %v8293_v40, %v7094_v61  ;;  %v7096_v52 = vpop.f32.mrb[45].mxu0  ;;  %v7379_v21 = vadd.f32 %v7378_v44, %v7301_v45 }
 0x3da   :  { %v8296_v28 = vadd.f32 %v8295_v43, %v7096_v52  ;;  %v7098_v10 = vpop.f32.mrb[46].mxu0  ;;  %v7382_v30 = vsel %vm7353_vm2, %v7304_v0, 0.0  ;;  %v8305_v43 = vadd.f32 %v12484_v6, %v12508_v16 }
 0x3db   :  { %v7229_v19 = vmax.f32 %v8294_v35, 0.0  ;;  %v8298_v23 = vadd.f32 %v8297_v33, %v7098_v10  ;;  %v7100_v34 = vpop.f32.mrb[47].mxu0  ;;  %7380 = vadd.xlane.f32.xlu0 %v7379_v21  ;;  %v7383_v49 = vadd.f32 %v7382_v30, %v7303_v42  ;;  %v8307_v33 = vadd.f32 %v12486_v55, %v12511_v22 }
 0x3dc   :  { %v7230_v60 = vmax.f32 %v8296_v28, 0.0  ;;  %v8300_v24 = vadd.f32 %v8299_v20, %v7100_v34 }
 0x3dd   :  { %v7231_v53 = vmax.f32 %v8298_v23, 0.0  ;;  %7384 = vadd.xlane.f32.xlu1 %v7383_v49  ;;  %v7305_v56 = vmul.f32 %v12524_v50, %v7229_v19  ;;  %v8309_v49 = vadd.f32 %v12488_v39, %v12508_v16 }
 0x3de   :  { %v12612_v38 = vpop.f32.mrb[76].mxu1  ;;  %v7306_v14 = vmul.f32 %v12521_v3, %v7230_v60  ;;  %v7232_v18 = vmax.f32 %v8300_v24, 0.0 }
 0x3df   :  { %v12614_v47 = vpop.f32.mrb[77].mxu1  ;;  %v7307_v0 = vmul.f32 %v12524_v50, %v7231_v53  ;;  %v8311_v53 = vadd.f32 %v12490_v11, %v12511_v22 }
 0x3e0   :  { %v12620_v26 = vpop.f32.mrb[78].mxu1  ;;  %v7308_v41 = vmul.f32 %v12521_v3, %v7232_v18  ;;  %v7104_v40 = vpop.f32.mrb[48].mxu0  ;;  %v7386_v45 = vsel %vm7353_vm2, %v7306_v14, 0.0 }
 0x3e1   :  { %v12625_v4 = vpop.f32.mrb[79].mxu1  ;;  %v8302_v29 = vadd.f32 %v8301_v25, %v7104_v40  ;;  %v7106_v61 = vpop.f32.mrb[49].mxu0  ;;  %v7387_v44 = vadd.f32 %v7386_v45, %v7305_v56 }
 0x3e2   :  { %v8304_v42 = vadd.f32 %v8303_v27, %v7106_v61  ;;  %v7108_v7 = vpop.f32.mrb[50].mxu0  ;;  %v7390_v35 = vsel %vm7353_vm2, %v7308_v41, 0.0  ;;  %v8313_v27 = vadd.f32 %v12492_v63, %v12508_v16 }
 0x3e3   :  { %v7233_v52 = vmax.f32 %v8302_v29, 0.0  ;;  %v8306_v21 = vadd.f32 %v8305_v43, %v7108_v7  ;;  %v7110_v20 = vpop.f32.mrb[51].mxu0  ;;  %7388 = vadd.xlane.f32.xlu0 %v7387_v44  ;;  %v7391_v28 = vadd.f32 %v7390_v35, %v7307_v0  ;;  %v8315_v43 = vadd.f32 %v12494_v15, %v12511_v22 }
 0x3e4   :  { %v7234_v10 = vmax.f32 %v8304_v42, 0.0  ;;  %v8308_v30 = vadd.f32 %v8307_v33, %v7110_v20 }
 0x3e5   :  { %v7235_v19 = vmax.f32 %v8306_v21, 0.0  ;;  %7392 = vadd.xlane.f32.xlu1 %v7391_v28  ;;  %v7309_v60 = vmul.f32 %v12524_v50, %v7233_v52  ;;  %v8317_v28 = vadd.f32 %v12496_v54, %v12508_v16 }
 0x3e6   :  { %v12634_v6 = vpop.f32.mrb[80].mxu1  ;;  %v7310_v34 = vmul.f32 %v12521_v3, %v7234_v10  ;;  %v7236_v55 = vmax.f32 %v8308_v30, 0.0 }
 0x3e7   :  { %v12636_v23 = vpop.f32.mrb[81].mxu1  ;;  %v7311_v41 = vmul.f32 %v12524_v50, %v7235_v19  ;;  %v8319_v19 = vadd.f32 %v12498_v12, %v12511_v22 }
 0x3e8   :  { %v12642_v24 = vpop.f32.mrb[82].mxu1  ;;  %v7312_v14 = vmul.f32 %v12521_v3, %v7236_v55  ;;  %v7114_v25 = vpop.f32.mrb[52].mxu0  ;;  %v7394_v56 = vsel %vm7353_vm2, %v7310_v34, 0.0 }
 0x3e9   :  { %v12647_v18 = vpop.f32.mrb[83].mxu1  ;;  %v8310_v39 = vadd.f32 %v8309_v49, %v7114_v25  ;;  %v7116_v40 = vpop.f32.mrb[53].mxu0  ;;  %v7395_v45 = vadd.f32 %v7394_v56, %v7309_v60 }
 0x3ea   :  { %v8312_v0 = vadd.f32 %v8311_v53, %v7116_v40  ;;  %v7118_v11 = vpop.f32.mrb[54].mxu0  ;;  %v7398_v29 = vsel %vm7353_vm2, %v7312_v14, 0.0  ;;  %v8321_v53 = vadd.f32 %v12500_v59, %v12508_v16 }
 0x3eb   :  { %v7237_v61 = vmax.f32 %v8310_v39, 0.0  ;;  %v8314_v44 = vadd.f32 %v8313_v27, %v7118_v11  ;;  %v7120_v33 = vpop.f32.mrb[55].mxu0  ;;  %7396 = vadd.xlane.f32.xlu0 %v7395_v45  ;;  %v7399_v42 = vadd.f32 %v7398_v29, %v7311_v41  ;;  %v8323_v27 = vadd.f32 %v12502_v46, %v12511_v22 }
 0x3ec   :  { %v7238_v7 = vmax.f32 %v8312_v0, 0.0  ;;  %v8316_v35 = vadd.f32 %v8315_v43, %v7120_v33 }
 0x3ed   :  { %v7239_v52 = vmax.f32 %v8314_v44, 0.0  ;;  %7400 = vadd.xlane.f32.xlu1 %v7399_v42  ;;  %v7313_v10 = vmul.f32 %v12524_v50, %v7237_v61  ;;  %v8325_v42 = vadd.f32 %v12526_v51, %v12508_v16 }
 0x3ee   :  { %v12656_v63 = vpop.f32.mrb[84].mxu1  ;;  %v7314_v20 = vmul.f32 %v12521_v3, %v7238_v7  ;;  %v7240_v15 = vmax.f32 %v8316_v35, 0.0 }
 0x3ef   :  { %v12658_v21 = vpop.f32.mrb[85].mxu1  ;;  %v7315_v14 = vmul.f32 %v12524_v50, %v7239_v52  ;;  %v8327_v52 = vadd.f32 %v12528_v8, %v12511_v22 }
 0x3f0   :  { %v12664_v30 = vpop.f32.mrb[86].mxu1  ;;  %v7316_v34 = vmul.f32 %v12521_v3, %v7240_v15  ;;  %v7124_v49 = vpop.f32.mrb[56].mxu0  ;;  %v7402_v60 = vsel %vm7353_vm2, %v7314_v20, 0.0 }
 0x3f1   :  { %v12669_v55 = vpop.f32.mrb[87].mxu1  ;;  %v8318_v54 = vadd.f32 %v8317_v28, %v7124_v49  ;;  %v7126_v25 = vpop.f32.mrb[57].mxu0  ;;  %v7403_v56 = vadd.f32 %v7402_v60, %v7313_v10 }
 0x3f2   :  { %v8320_v41 = vadd.f32 %v8319_v19, %v7126_v25  ;;  %v7128_v12 = vpop.f32.mrb[58].mxu0  ;;  %v7406_v39 = vsel %vm7353_vm2, %v7316_v34, 0.0  ;;  %v8329_v19 = vadd.f32 %v12532_v17, %v12508_v16 }
 0x3f3   :  { %v7241_v40 = vmax.f32 %v8318_v54, 0.0  ;;  %v8322_v45 = vadd.f32 %v8321_v53, %v7128_v12  ;;  %v7130_v43 = vpop.f32.mrb[59].mxu0  ;;  %7404 = vadd.xlane.f32.xlu0 %v7403_v56  ;;  %v7407_v0 = vadd.f32 %v7406_v39, %v7315_v14  ;;  %v8331_v53 = vadd.f32 %v12536_v32, %v12511_v22 }
 0x3f4   :  { %v7242_v11 = vmax.f32 %v8320_v41, 0.0  ;;  %v8324_v29 = vadd.f32 %v8323_v27, %v7130_v43  ;;  %v8333_v43 = vadd.f32 %v12546_v62, %v12508_v16  ;;  %v8339_v62 = vadd.f32 %v12559_v36, %v12511_v22 }
 0x3f5   :  { %v7243_v61 = vmax.f32 %v8322_v45, 0.0  ;;  %7408 = vadd.xlane.f32.xlu1 %v7407_v0  ;;  %v7317_v7 = vmul.f32 %v12524_v50, %v7241_v40  ;;  %v8335_v0 = vadd.f32 %v12548_v48, %v12511_v22 }
 0x3f6   :  { %v12678_v59 = vpop.f32.mrb[88].mxu1  ;;  %v7318_v33 = vmul.f32 %v12521_v3, %v7242_v11  ;;  %v7244_v46 = vmax.f32 %v8324_v29, 0.0 }
 0x3f7   :  { %v12680_v44 = vpop.f32.mrb[89].mxu1  ;;  %v7319_v34 = vmul.f32 %v12524_v50, %v7243_v61 }
 0x3f8   :  { %v12686_v35 = vpop.f32.mrb[90].mxu1  ;;  %v7320_v20 = vmul.f32 %v12521_v3, %v7244_v46  ;;  %v7134_v28 = vpop.f32.mrb[60].mxu0  ;;  %v7410_v10 = vsel %vm7353_vm2, %v7318_v33, 0.0  ;;  %v8337_v33 = vadd.f32 %v12553_v2, %v12508_v16 }
 0x3f9   :  { %v12691_v15 = vpop.f32.mrb[91].mxu1  ;;  %v8326_v51 = vadd.f32 %v8325_v42, %v7134_v28  ;;  %v7136_v49 = vpop.f32.mrb[61].mxu0  ;;  %v7411_v60 = vadd.f32 %v7410_v10, %v7317_v7 }
 0x3fa   :  { %v8328_v14 = vadd.f32 %v8327_v52, %v7136_v49  ;;  %v7138_v8 = vpop.f32.mrb[62].mxu0  ;;  %v7414_v54 = vsel %vm7353_vm2, %v7320_v20, 0.0 }
 0x3fb   :  { %v7245_v25 = vmax.f32 %v8326_v51, 0.0  ;;  %v8330_v56 = vadd.f32 %v8329_v19, %v7138_v8  ;;  %v7140_v27 = vpop.f32.mrb[63].mxu0  ;;  %7412 = vadd.xlane.f32.xlu0 %v7411_v60  ;;  %v7415_v41 = vadd.f32 %v7414_v54, %v7319_v34  ;;  %v8341_v8 = vadd.f32 %v12568_v9, %v12508_v16 }
 0x3fc   :  { %v7246_v12 = vmax.f32 %v8328_v14, 0.0  ;;  %v8332_v39 = vadd.f32 %v8331_v53, %v7140_v27  ;;  %v8343_v54 = vadd.f32 %v12570_v37, %v12511_v22  ;;  %v8347_v9 = vadd.f32 %v12581_v57, %v12511_v22 }
 0x3fd   :  { %v7247_v17 = vmax.f32 %v8330_v56, 0.0  ;;  %7416 = vadd.xlane.f32.xlu1 %v7415_v41  ;;  %v7321_v32 = vmul.f32 %v12524_v50, %v7245_v25  ;;  %v8345_v41 = vadd.f32 %v12576_v5, %v12508_v16 }
 0x3fe   :  { %v7322_v40 = vmul.f32 %v12521_v3, %v7246_v12  ;;  %v7248_v45 = vmax.f32 %v8332_v39, 0.0 }
 0x3ff   :  { %v7323_v46 = vmul.f32 %v12524_v50, %v7247_v17 }
 0x400   :  { %v7324_v11 = vmul.f32 %v12521_v3, %v7248_v45  ;;  %v7144_v29 = vpop.f32.mrb[64].mxu0  ;;  %v7418_v61 = vsel %vm7353_vm2, %v7322_v40, 0.0 }
 0x401   :  { %v8334_v42 = vadd.f32 %v8333_v43, %v7144_v29  ;;  %v7146_v7 = vpop.f32.mrb[65].mxu0  ;;  %v7419_v52 = vadd.f32 %v7418_v61, %v7321_v32 }
 0x402   :  { %v8336_v20 = vadd.f32 %v8335_v0, %v7146_v7  ;;  %v7148_v28 = vpop.f32.mrb[66].mxu0  ;;  %v7422_v48 = vsel %vm7353_vm2, %v7324_v11, 0.0  ;;  %v8349_v7 = vadd.f32 %v12590_v13, %v12508_v16  ;;  %v8355_v13 = vadd.f32 %v12603_v1, %v12511_v22 }
 0x403   :  { %v7249_v10 = vmax.f32 %v8334_v42, 0.0  ;;  %v8338_v19 = vadd.f32 %v8337_v33, %v7148_v28  ;;  %v7150_v34 = vpop.f32.mrb[67].mxu0  ;;  %7420 = vadd.xlane.f32.xlu0 %v7419_v52  ;;  %v7423_v51 = vadd.f32 %v7422_v48, %v7323_v46  ;;  %v8351_v52 = vadd.f32 %v12592_v58, %v12511_v22 }
 0x404   :  { %v7250_v49 = vmax.f32 %v8336_v20, 0.0  ;;  %v8340_v60 = vadd.f32 %v8339_v62, %v7150_v34  ;;  %v8353_v48 = vadd.f32 %v12598_v31, %v12508_v16 }
 0x405   :  { %v7251_v2 = vmax.f32 %v8338_v19, 0.0  ;;  %7424 = vadd.xlane.f32.xlu1 %v7423_v51  ;;  %v7325_v36 = vmul.f32 %v12524_v50, %v7249_v10 }
 0x406   :  { %v7326_v53 = vmul.f32 %v12521_v3, %v7250_v49  ;;  %v7252_v14 = vmax.f32 %v8340_v60, 0.0 }
 0x407   :  { %v7327_v12 = vmul.f32 %v12524_v50, %v7251_v2 }
 0x408   :  { %v7328_v25 = vmul.f32 %v12521_v3, %v7252_v14  ;;  %v7154_v56 = vpop.f32.mrb[68].mxu0  ;;  %v7426_v27 = vsel %vm7353_vm2, %v7326_v53, 0.0 }
 0x409   :  { %v8342_v39 = vadd.f32 %v8341_v8, %v7154_v56  ;;  %v7156_v17 = vpop.f32.mrb[69].mxu0  ;;  %v7427_v40 = vadd.f32 %v7426_v27, %v7325_v36  ;;  %v8357_v27 = vadd.f32 %v12612_v38, %v12508_v16  ;;  %v8363_v38 = vadd.f32 %v12625_v4, %v12511_v22 }
 0x40a   :  { %v8344_v45 = vadd.f32 %v8343_v54, %v7156_v17  ;;  %v7158_v43 = vpop.f32.mrb[70].mxu0  ;;  %v7430_v37 = vsel %vm7353_vm2, %v7328_v25, 0.0 }
 0x40b   :  { %v7253_v32 = vmax.f32 %v8342_v39, 0.0  ;;  %v8346_v0 = vadd.f32 %v8345_v41, %v7158_v43  ;;  %v7160_v11 = vpop.f32.mrb[71].mxu0  ;;  %7428 = vadd.xlane.f32.xlu0 %v7427_v40  ;;  %v7431_v29 = vadd.f32 %v7430_v37, %v7327_v12  ;;  %v8359_v41 = vadd.f32 %v12614_v47, %v12511_v22 }
 0x40c   :  { %v7254_v61 = vmax.f32 %v8344_v45, 0.0  ;;  %v8348_v33 = vadd.f32 %v8347_v9, %v7160_v11  ;;  %v8361_v40 = vadd.f32 %v12620_v26, %v12508_v16 }
 0x40d   :  { %v7255_v5 = vmax.f32 %v8346_v0, 0.0  ;;  %7432 = vadd.xlane.f32.xlu1 %v7431_v29  ;;  %v7329_v57 = vmul.f32 %v12524_v50, %v7253_v32 }
 0x40e   :  { %v7330_v46 = vmul.f32 %v12521_v3, %v7254_v61  ;;  %v7256_v42 = vmax.f32 %v8348_v33, 0.0 }
 0x40f   :  { %v7331_v10 = vmul.f32 %v12524_v50, %v7255_v5 }
 0x410   :  { %v7332_v62 = vmul.f32 %v12521_v3, %v7256_v42  ;;  %v7164_v20 = vpop.f32.mrb[72].mxu0  ;;  %v7434_v28 = vsel %vm7353_vm2, %v7330_v46, 0.0 }
 0x411   :  { %v8350_v19 = vadd.f32 %v8349_v7, %v7164_v20  ;;  %v7166_v34 = vpop.f32.mrb[73].mxu0  ;;  %v7435_v51 = vadd.f32 %v7434_v28, %v7329_v57  ;;  %v8365_v57 = vadd.f32 %v12634_v6, %v12508_v16  ;;  %v8371_v6 = vadd.f32 %v12647_v18, %v12511_v22 }
 0x412   :  { %v8352_v49 = vadd.f32 %v8351_v52, %v7166_v34  ;;  %v7168_v60 = vpop.f32.mrb[74].mxu0  ;;  %v7438_v58 = vsel %vm7353_vm2, %v7332_v62, 0.0  ;;  %v8367_v52 = vadd.f32 %v12636_v23, %v12511_v22 }
 0x413   :  { %v7257_v2 = vmax.f32 %v8350_v19, 0.0  ;;  %v8354_v53 = vadd.f32 %v8353_v48, %v7168_v60  ;;  %v7170_v14 = vpop.f32.mrb[75].mxu0  ;;  %7436 = vadd.xlane.f32.xlu0 %v7435_v51  ;;  %v7439_v8 = vadd.f32 %v7438_v58, %v7331_v10  ;;  %v8369_v48 = vadd.f32 %v12642_v24, %v12508_v16 }
 0x414   :  { %v7258_v36 = vmax.f32 %v8352_v49, 0.0  ;;  %v8356_v54 = vadd.f32 %v8355_v13, %v7170_v14 }
 0x415   :  { %v7259_v31 = vmax.f32 %v8354_v53, 0.0  ;;  %7440 = vadd.xlane.f32.xlu1 %v7439_v8  ;;  %v7333_v1 = vmul.f32 %v12524_v50, %v7257_v2 }
 0x416   :  { %v7334_v25 = vmul.f32 %v12521_v3, %v7258_v36  ;;  %v7260_v56 = vmax.f32 %v8356_v54, 0.0 }
 0x417   :  { %v7335_v9 = vmul.f32 %v12524_v50, %v7259_v31  ;;  %v8373_v31 = vadd.f32 %v12656_v63, %v12508_v16  ;;  %v8379_v63 = vadd.f32 %v12669_v55, %v12511_v22 }
 0x418   :  { %v7336_v12 = vmul.f32 %v12521_v3, %v7260_v56  ;;  %v7174_v39 = vpop.f32.mrb[76].mxu0  ;;  %v7442_v17 = vsel %vm7353_vm2, %v7334_v25, 0.0  ;;  %v8375_v25 = vadd.f32 %v12658_v21, %v12511_v22 }
 0x419   :  { %v8358_v45 = vadd.f32 %v8357_v27, %v7174_v39  ;;  %v7176_v43 = vpop.f32.mrb[77].mxu0  ;;  %v7443_v37 = vadd.f32 %v7442_v17, %v7333_v1 }
 0x41a   :  { %v8360_v32 = vadd.f32 %v8359_v41, %v7176_v43  ;;  %v7178_v0 = vpop.f32.mrb[78].mxu0  ;;  %v7446_v47 = vsel %vm7353_vm2, %v7336_v12, 0.0  ;;  %v8377_v41 = vadd.f32 %v12664_v30, %v12508_v16 }
 0x41b   :  { %v7261_v11 = vmax.f32 %v8358_v45, 0.0  ;;  %v8362_v29 = vadd.f32 %v8361_v40, %v7178_v0  ;;  %v7180_v61 = vpop.f32.mrb[79].mxu0  ;;  %7444 = vadd.xlane.f32.xlu0 %v7443_v37  ;;  %v7447_v33 = vadd.f32 %v7446_v47, %v7335_v9 }
 0x41c   :  { %v7262_v5 = vmax.f32 %v8360_v32, 0.0  ;;  %v8364_v46 = vadd.f32 %v8363_v38, %v7180_v61  ;;  %v8381_v61 = vadd.f32 %v12678_v59, %v12508_v16  ;;  %v8387_v59 = vadd.f32 %v12691_v15, %v12511_v22 }
 0x41d   :  { %v7263_v26 = vmax.f32 %v8362_v29, 0.0  ;;  %7448 = vadd.xlane.f32.xlu1 %v7447_v33  ;;  %v7337_v4 = vmul.f32 %v12524_v50, %v7261_v11  ;;  %v8383_v33 = vadd.f32 %v12680_v44, %v12511_v22 }
 0x41e   :  { %v7338_v42 = vmul.f32 %v12521_v3, %v7262_v5  ;;  %v7264_v7 = vmax.f32 %v8364_v46, 0.0 }
 0x41f   :  { %v7339_v10 = vmul.f32 %v12524_v50, %v7263_v26 }
 0x420   :  { %v7340_v62 = vmul.f32 %v12521_v3, %v7264_v7  ;;  %v7184_v20 = vpop.f32.mrb[80].mxu0  ;;  %v7450_v28 = vsel %vm7353_vm2, %v7338_v42, 0.0  ;;  %v8385_v42 = vadd.f32 %v12686_v35, %v12508_v16 }
 0x421   :  { %v8366_v19 = vadd.f32 %v8365_v57, %v7184_v20  ;;  %v7186_v34 = vpop.f32.mrb[81].mxu0  ;;  %v7451_v51 = vadd.f32 %v7450_v28, %v7337_v4 }
 0x422   :  { %v8368_v13 = vadd.f32 %v8367_v52, %v7186_v34  ;;  %v7188_v49 = vpop.f32.mrb[82].mxu0  ;;  %v7454_v23 = vsel %vm7353_vm2, %v7340_v62, 0.0 }
 0x423   :  { %v7265_v60 = vmax.f32 %v8366_v19, 0.0  ;;  %v8370_v58 = vadd.f32 %v8369_v48, %v7188_v49  ;;  %v7190_v2 = vpop.f32.mrb[83].mxu0  ;;  %7452 = vadd.xlane.f32.xlu0 %v7451_v51  ;;  %v7455_v53 = vadd.f32 %v7454_v23, %v7339_v10 }
 0x424   :  { %v7266_v14 = vmax.f32 %v8368_v13, 0.0  ;;  %v8372_v8 = vadd.f32 %v8371_v6, %v7190_v2  ;;  %v8170_v2 = vld [vmem:[#allocation2] ss:$0 sm:$0xff] }
 0x425   :  { %v7267_v24 = vmax.f32 %v8370_v58, 0.0  ;;  %7456 = vadd.xlane.f32.xlu1 %v7455_v53  ;;  %v7341_v18 = vmul.f32 %v12524_v50, %v7265_v60 }
 0x426   :  { %v7342_v36 = vmul.f32 %v12521_v3, %v7266_v14  ;;  %v7268_v54 = vmax.f32 %v8372_v8, 0.0 }
 0x427   :  { %v7343_v12 = vmul.f32 %v12524_v50, %v7267_v24 }
 0x428   :  { %v7344_v56 = vmul.f32 %v12521_v3, %v7268_v54  ;;  %v7194_v27 = vpop.f32.mrb[84].mxu0  ;;  %v7458_v1 = vsel %vm7353_vm2, %v7342_v36, 0.0 }
 0x429   :  { %v8374_v39 = vadd.f32 %v8373_v31, %v7194_v27  ;;  %v7196_v17 = vpop.f32.mrb[85].mxu0  ;;  %v7459_v40 = vadd.f32 %v7458_v1, %v7341_v18 }
 0x42a   :  { %v8376_v9 = vadd.f32 %v8375_v25, %v7196_v17  ;;  %v7198_v45 = vpop.f32.mrb[86].mxu0  ;;  %v7462_v21 = vsel %vm7353_vm2, %v7344_v56, 0.0 }
 0x42b   :  { %v7269_v43 = vmax.f32 %v8374_v39, 0.0  ;;  %v8378_v37 = vadd.f32 %v8377_v41, %v7198_v45  ;;  %v7200_v38 = vpop.f32.mrb[87].mxu0  ;;  %7460 = vadd.xlane.f32.xlu0 %v7459_v40  ;;  %v7463_v32 = vadd.f32 %v7462_v21, %v7343_v12 }
 0x42c   :  { %v7270_v0 = vmax.f32 %v8376_v9, 0.0  ;;  %v8380_v47 = vadd.f32 %v8379_v63, %v7200_v38 }
 0x42d   :  { %v7271_v30 = vmax.f32 %v8378_v37, 0.0  ;;  %7464 = vadd.xlane.f32.xlu1 %v7463_v32  ;;  %v7345_v55 = vmul.f32 %v12524_v50, %v7269_v43  ;;  %v13140_v32 = vlaneseq }
 0x42e   :  { %v7346_v11 = vmul.f32 %v12521_v3, %v7270_v0  ;;  %v7272_v29 = vmax.f32 %v8380_v47, 0.0 }
 0x42f   :  { %v7347_v7 = vmul.f32 %v12524_v50, %v7271_v30  ;;  %v7557_v0 = vand.u32 127, %v13140_v32 }
 0x430   :  { %v7348_v5 = vmul.f32 %v12521_v3, %v7272_v29  ;;  %v7204_v46 = vpop.f32.mrb[88].mxu0  ;;  %v7466_v26 = vsel %vm7353_vm2, %v7346_v11, 0.0 }
 0x431   :  { %v8382_v57 = vadd.f32 %v8381_v61, %v7204_v46  ;;  %v7206_v4 = vpop.f32.mrb[89].mxu0  ;;  %v7467_v52 = vadd.f32 %v7466_v26, %v7345_v55  ;;  %v7562_v11 = vadd.s32 4294967288, %v7557_v0  ;;  %v13141_v55 = vld [vmem:[#allocation6_spill] sm:$0xff] }
 0x432   :  { %v8384_v62 = vadd.f32 %v8383_v33, %v7206_v4  ;;  %v7208_v20 = vpop.f32.mrb[90].mxu0  ;;  %v7470_v44 = vsel %vm7353_vm2, %v7348_v5, 0.0  ;;  %v12806_v33 = vsub.s32 %v7557_v0, %v13141_v55 }
 0x433   :  { %v7273_v28 = vmax.f32 %v8382_v57, 0.0  ;;  %v8386_v48 = vadd.f32 %v8385_v42, %v7208_v20  ;;  %v7210_v10 = vpop.f32.mrb[91].mxu0  ;;  %7468 = vadd.xlane.f32.xlu0 %v7467_v52  ;;  %v7471_v19 = vadd.f32 %v7470_v44, %v7347_v7  ;;  %v12809_v5 = vsub.s32 %v7562_v11, %v13141_v55 }
 0x434   :  { %v7274_v34 = vmax.f32 %v8384_v62, 0.0  ;;  %v8388_v51 = vadd.f32 %v8387_v59, %v7210_v10 }
 0x435   :  { %v7275_v16 = vmax.f32 %v8386_v48, 0.0  ;;  %7472 = vadd.xlane.f32.xlu1 %v7471_v19  ;;  %v7349_v13 = vmul.f32 %v12524_v50, %v7273_v28 }
 0x436   :  { %v7350_v35 = vmul.f32 %v12521_v3, %v7274_v34  ;;  %v7276_v6 = vmax.f32 %v8388_v51, 0.0 }
 0x437   :  { %v7351_v49 = vmul.f32 %v12524_v50, %v7275_v16 }
 0x438   :  { %v7352_v22 = vmul.f32 %v12521_v3, %v7276_v6  ;;  %v7474_v15 = vsel %vm7353_vm2, %v7350_v35, 0.0 }
 0x439   :  { %v7475_v23 = vadd.f32 %v7474_v15, %v7349_v13 }
 0x43a   :  { %v7478_v60 = vsel %vm7353_vm2, %v7352_v22, 0.0 }
 0x43b   :  { %7476 = vadd.xlane.f32.xlu0 %v7475_v23  ;;  %v7479_v58 = vadd.f32 %v7478_v60, %v7351_v49 }
 0x43d   :  { %7480 = vadd.xlane.f32.xlu1 %v7479_v58 }
 0x450   :  { %v7357_v53 = vpop.xlane.xlu0 %7356 }
 0x451   :  { %7489 = vperm.xlu0 %8716, %v8170_v2  }
 0x454   :  { %v7361_v14 = vpop.xlane.xlu0 %7360 }
 0x458   :  { %v7365_v36 = vpop.xlane.xlu1 %7364 }
 0x45c   :  { %v7369_v31 = vpop.xlane.xlu1 %7368 }
 0x460   :  { %v7373_v8 = vpop.xlane.xlu0 %7372 }
 0x462   :  { %v7377_v18 = vpop.xlane.xlu1 %7376 }
 0x468   :  { %v7381_v24 = vpop.xlane.xlu0 %7380 }
 0x46a   :  { %v7385_v56 = vpop.xlane.xlu1 %7384 }
 0x470   :  { %v7389_v54 = vpop.xlane.xlu0 %7388 }
 0x472   :  { %v7393_v27 = vpop.xlane.xlu1 %7392 }
 0x478   :  { %v7397_v3 = vpop.xlane.xlu0 %7396 }
 0x47a   :  { %v7401_v41 = vpop.xlane.xlu1 %7400 }
 0x480   :  { %v7405_v25 = vpop.xlane.xlu0 %7404 }
 0x482   :  { %v7409_v39 = vpop.xlane.xlu1 %7408 }
 0x488   :  { %v7413_v50 = vpop.xlane.xlu0 %7412 }
 0x48a   :  { %v7417_v40 = vpop.xlane.xlu1 %7416 }
 0x490   :  { %v7421_v1 = vpop.xlane.xlu0 %7420 }
 0x492   :  { %v7425_v9 = vpop.xlane.xlu1 %7424 }
 0x498   :  { %v7429_v12 = vpop.xlane.xlu0 %7428 }
 0x49a   :  { %v7433_v21 = vpop.xlane.xlu1 %7432 }
 0x4a0   :  { %v7437_v17 = vpop.xlane.xlu0 %7436 }
 0x4a2   :  { %v7441_v37 = vpop.xlane.xlu1 %7440 }
 0x4a8   :  { %v7445_v63 = vpop.xlane.xlu0 %7444 }
 0x4aa   :  { %v7449_v47 = vpop.xlane.xlu1 %7448 }
 0x4b0   :  { %v7453_v45 = vpop.xlane.xlu0 %7452 }
 0x4b2   :  { %v7457_v29 = vpop.xlane.xlu1 %7456 }
 0x4b8   :  { %v7461_v43 = vpop.xlane.xlu0 %7460 }
 0x4ba   :  { %v7465_v46 = vpop.xlane.xlu1 %7464 }
 0x4c0   :  { %v7469_v38 = vpop.xlane.xlu0 %7468 }
 0x4c2   :  { %v7473_v16 = vpop.xlane.xlu1 %7472 }
 0x4c8   :  { %v7477_v30 = vpop.xlane.xlu0 %7476 }
 0x4d0   :  { %v7490_v61 = vpop.permute.xlu0 %7489 }
 0x4d1   :  { %v7492_v26 = vadd.f32 %v7490_v61, %v7357_v53  ;;  %v7493_v42 = vadd.f32 %v7490_v61, %v7361_v14  ;;  %v7494_v7 = vadd.f32 %v7490_v61, %v7365_v36  ;;  %v7495_v57 = vadd.f32 %v7490_v61, %v7369_v31  ;;  %v7481_v31 = vpop.xlane.xlu1 %7480 }
 0x4d2   :  { %v7496_v4 = vadd.f32 %v7490_v61, %v7373_v8  ;;  %v7497_v52 = vadd.f32 %v7490_v61, %v7377_v18  ;;  %v7498_v59 = vadd.f32 %v7490_v61, %v7381_v24  ;;  %v7499_v62 = vadd.f32 %v7490_v61, %v7385_v56 }
 0x4d3   :  { %v12811_v20 = vadd.f32 %v7490_v61, %v7389_v54  ;;  %v12813_v44 = vadd.f32 %v7490_v61, %v7393_v27  ;;  %v12815_v28 = vadd.f32 %v7490_v61, %v7397_v3  ;;  %v12817_v48 = vadd.f32 %v7490_v61, %v7401_v41 }
 0x4d4   :  { %v12819_v10 = vadd.f32 %v7490_v61, %v7405_v25  ;;  %v12821_v19 = vadd.f32 %v7490_v61, %v7409_v39  ;;  %v12823_v34 = vadd.f32 %v7490_v61, %v7413_v50  ;;  %v12825_v51 = vadd.f32 %v7490_v61, %v7417_v40 }
 0x4d5   :  { %v7508_v35 = vadd.f32 %v7490_v61, %v7421_v1  ;;  %v7509_v6 = vadd.f32 %v7490_v61, %v7425_v9  ;;  %v7510_v13 = vadd.f32 %v7490_v61, %v7429_v12  ;;  %v7511_v22 = vadd.f32 %v7490_v61, %v7433_v21 }
 0x4d6   :  { %v7512_v15 = vadd.f32 %v7490_v61, %v7437_v17  ;;  %v7513_v49 = vadd.f32 %v7490_v61, %v7441_v37  ;;  %v7514_v23 = vadd.f32 %v7490_v61, %v7445_v63  ;;  %v7515_v60 = vadd.f32 %v7490_v61, %v7449_v47 }
 0x4d7   :  { %v7561_v58 = vrot.slane %v7492_v26, %v12806_v33  ;;  %v7566_v2 = vrot.slane %v7493_v42, %v12809_v5  ;;  %v7572_v53 = vrot.slane %v7494_v7, %v12806_v33  ;;  %v7576_v14 = vrot.slane %v7495_v57, %v12809_v5 }
 0x4d8   :  { %v7581_v8 = vrot.slane %v7496_v4, %v12806_v33  ;;  %v7585_v24 = vrot.slane %v7497_v52, %v12809_v5  ;;  %v7590_v36 = vrot.slane %v7498_v59, %v12806_v33  ;;  %v7594_v54 = vrot.slane %v7499_v62, %v12809_v5 }
 0x4d9   :  { %v7516_v3 = vadd.f32 %v7490_v61, %v7453_v45  ;;  %v7517_v18 = vadd.f32 %v7490_v61, %v7457_v29  ;;  %v7518_v25 = vadd.f32 %v7490_v61, %v7461_v43  ;;  %v7519_v56 = vadd.f32 %v7490_v61, %v7465_v46 }
 0x4da   :  { %v7520_v50 = vadd.f32 %v7490_v61, %v7469_v38  ;;  %v7521_v27 = vadd.f32 %v7490_v61, %v7473_v16  ;;  %v7522_v1 = vadd.f32 %v7490_v61, %v7477_v30  ;;  %v7523_v41 = vadd.f32 %v7490_v61, %v7481_v31 }
 0x4db   :  { %v7568_v12 = vsel %vm7567_vm3, %v7566_v2, %v7561_v58  ;;  %v7577_v39 = vsel %vm7567_vm3, %v7576_v14, %v7572_v53  ;;  %v7599_v17 = vrot.slane %v12811_v20, %v12806_v33  ;;  %v7603_v40 = vrot.slane %v12813_v44, %v12809_v5 }
 0x4dc   :  { %v7586_v63 = vsel %vm7567_vm3, %v7585_v24, %v7581_v8  ;;  %v7595_v9 = vsel %vm7567_vm3, %v7594_v54, %v7590_v36  ;;  %v7635_v45 = vrot.slane %v7508_v35, %v12806_v33  ;;  %v7639_v21 = vrot.slane %v7509_v6, %v12809_v5 }
 0x4dd   :  { %v7608_v43 = vrot.slane %v12815_v28, %v12806_v33  ;;  %v7644_v37 = vrot.slane %v7510_v13, %v12806_v33  ;;  %v7648_v38 = vrot.slane %v7511_v22, %v12809_v5  ;;  %v7653_v32 = vrot.slane %v7512_v15, %v12806_v33 }
 0x4de   :  { %v7612_v0 = vrot.slane %v12817_v48, %v12809_v5  ;;  %v7617_v47 = vrot.slane %v12819_v10, %v12806_v33  ;;  %v7657_v30 = vrot.slane %v7513_v49, %v12809_v5  ;;  %v7662_v11 = vrot.slane %v7514_v23, %v12806_v33 }
 0x4df   :  { %v7621_v29 = vrot.slane %v12821_v19, %v12809_v5  ;;  %v7640_v61 = vsel %vm7567_vm3, %v7639_v21, %v7635_v45  ;;  %v7649_v55 = vsel %vm7567_vm3, %v7648_v38, %v7644_v37  ;;  %v7666_v46 = vrot.slane %v7515_v60, %v12809_v5 }
 0x4e0   :  { %v7626_v26 = vrot.slane %v12823_v34, %v12806_v33  ;;  %v7658_v42 = vsel %vm7567_vm3, %v7657_v30, %v7653_v32  ;;  %v7671_v7 = vrot.slane %v7516_v3, %v12806_v33  ;;  %v7675_v57 = vrot.slane %v7517_v18, %v12809_v5 }
 0x4e1   :  { %v7630_v4 = vrot.slane %v12825_v51, %v12809_v5  ;;  %v7680_v52 = vrot.slane %v7518_v25, %v12806_v33  ;;  %v7684_v59 = vrot.slane %v7519_v56, %v12809_v5  ;;  %v7689_v62 = vrot.slane %v7520_v50, %v12806_v33 }
 0x4e2   :  { %v7667_v20 = vsel %vm7567_vm3, %v7666_v46, %v7662_v11  ;;  %v7693_v44 = vrot.slane %v7521_v27, %v12809_v5  ;;  %v7705_v28 = vsel %vm7704_vm4, %v7577_v39, %v7568_v12  ;;  %v7718_v48 = vsel %vm7704_vm4, %v7649_v55, %v7640_v61 }
 0x4e3   :  { %v7698_v10 = vrot.slane %v7522_v1, %v12806_v33  ;;  %v7702_v19 = vrot.slane %v7523_v41, %v12809_v5  ;;  %v7707_v34 = vsel %vm7706_vm5, %v7586_v63, %v7705_v28  ;;  %v7719_v51 = vsel %vm7706_vm5, %v7658_v42, %v7718_v48 }
 0x4e4   :  { %v7604_v16 = vsel %vm7567_vm3, %v7603_v40, %v7599_v17  ;;  %v7676_v35 = vsel %vm7567_vm3, %v7675_v57, %v7671_v7  ;;  %v7709_v6 = vsel %vm7708_vm6, %v7595_v9, %v7707_v34  ;;  %v7720_v13 = vsel %vm7708_vm6, %v7667_v20, %v7719_v51 }
 0x4e5   :  { %v7613_v22 = vsel %vm7567_vm3, %v7612_v0, %v7608_v43  ;;  %v7685_v33 = vsel %vm7567_vm3, %v7684_v59, %v7680_v52  ;;  %v7711_v5 = vsel %vm7710_vm7, %v7604_v16, %v7709_v6  ;;  %v7721_v15 = vsel %vm7710_vm7, %v7676_v35, %v7720_v13 }
 0x4e6   :  { %v7622_v49 = vsel %vm7567_vm3, %v7621_v29, %v7617_v47  ;;  %v7694_v23 = vsel %vm7567_vm3, %v7693_v44, %v7689_v62  ;;  %v7713_v60 = vsel %vm7712_vm8, %v7613_v22, %v7711_v5  ;;  %v7722_v58 = vsel %vm7712_vm8, %v7685_v33, %v7721_v15 }
 0x4e7   :  { %v7631_v2 = vsel %vm7567_vm3, %v7630_v4, %v7626_v26  ;;  %v7703_v53 = vsel %vm7567_vm3, %v7702_v19, %v7698_v10  ;;  %v7715_v14 = vsel %vm7714_vm9, %v7622_v49, %v7713_v60  ;;  %v7723_v8 = vsel %vm7714_vm9, %v7694_v23, %v7722_v58 }
 0x4e8   :  { %v7717_v24 = vsel %vm7716_vm10, %v7631_v2, %v7715_v14  ;;  %v7724_v36 = vsel %vm7716_vm10, %v7703_v53, %v7723_v8 }
 0x4e9   :  { %7728 = vst.msk [vmem:[#allocation3] sm:$0xff] %vm7727_vm11, %v7717_v24  ;;  %7729 = vst.msk [vmem:[#allocation3 + $0x8] sm:$0xff] %vm7727_vm11, %v7724_v36 }
 0x4ea   :  { %9365 = shalt.err (!%p9362_p4)
}
 0x4eb   :  { %s9366_s30 = scalar_lea.hbm %s12920_s9, 256 }
 0x4ec   :  { %p9367_p5 = scmp.ne.s32.totalorder %s12920_s9, %s9366_s30  ;;  %p9370_p6 = scmp.lt.u32.totalorder %s9366_s30, %s12920_s9 }
 0x4ee   :  { %p9372_p7 = pnand %p9370_p6, %p9367_p5 }
 0x4f0   :  { %9375 = shalt.err (!%p9372_p7)
}
 0x4f1   :  { %s9383_s13 = smov 128   ;;  %s9384_s1 = smov 8  }
 0x4f2   :  { %7741 = dma.vmem_to_hbm [thread:$0]  %s7736_s7, 256, %s12920_s9, [#allocation4], %s9383_s13, %s9383_s13, %s9384_s1  }
 0x4f3   :  { %9376 = dma.done.wait [#allocation4], 256  }
 0x4f4   :  { %9377 = vsyncadd [#allocation4], 4294967040 }
 0x4f5   :  { %7745 = vsyncpa [#allocation4], 1 }

</bundles_post_ra>
